<compile_context>
chip_gen: v7x
topology: tpu7x:2x2x1
jax: 0.10.0
libtpu: 0.0.40
codegen_flags: <defaults>
</compile_context>

<pallas_src>
import jax
import jax.numpy as jnp
import numpy as np
from jax import lax
from jax.experimental import pallas as pl
from jax.experimental.pallas import tpu as pltpu


def _round_up(v, m):
    return (v + m - 1) // m * m


def resblock_kernel(xc1_ref, w1_ref, s1_ref, b1_ref, w2_ref, s2_ref, b2_ref,
                    idn_ref, o_ref, ypad_ref):
    """Fused ResBlock forward for one batch element (lane-dense layout).

    xc1_ref : (1, H, W, K1p)   conv1 input, 3x3 taps folded into K (bf16)
    w1_ref  : (K1p, Pp)        conv1 weights, taps folded into K (bf16)
    s1/b1   : (1, Pp)          folded BN1 scale / bias (f32)
    w2_ref  : (3, 3, Pp, Pp)   conv2 weights (bf16)
    s2/b2   : (1, Pp)          folded BN2 scale / bias (f32)
    idn_ref : (1, H, W, Pp)    residual identity (f32)
    o_ref   : (1, H, W, Pp)    output (lane-dense last dim)
    ypad_ref: (H+2, W+2, Pp)   bf16 VMEM scratch for the padded intermediate
    """
    _, H, W, K1p = xc1_ref.shape
    Pp = o_ref.shape[3]

    # ---- conv1: a single lane-dense MXU matmul (K = 9*C taps, padded) ----
    lhs = xc1_ref[0].reshape(H * W, K1p)                     # bf16, tile-aligned
    acc1 = jnp.dot(lhs, w1_ref[...], preferred_element_type=jnp.float32)

    # ---- bn1 + relu in f32, round to bf16 for the second MXU pass ----
    y1 = jnp.maximum(acc1 * s1_ref[...] + b1_ref[...], 0.0)
    y1 = y1.reshape(H, W, Pp).astype(jnp.bfloat16)

    # ---- padded intermediate: zero only the 1-pixel halo, overwrite interior
    zrow = jnp.zeros((1, W + 2, Pp), jnp.bfloat16)
    zcol = jnp.zeros((H, 1, Pp), jnp.bfloat16)
    ypad_ref[0:1, :, :] = zrow
    ypad_ref[H + 1:H + 2, :, :] = zrow
    ypad_ref[1:H + 1, 0:1, :] = zcol
    ypad_ref[1:H + 1, W + 1:W + 2, :] = zcol
    ypad_ref[1:H + 1, 1:W + 1, :] = y1

    # ---- conv2: 9 lane-dense matmuls (K = Pp = 128-multiple) over shifted
    # windows loaded straight from the scratch ref ----
    acc2 = None
    for ky in range(3):
        for kx in range(3):
            win = ypad_ref[ky:ky + H, kx:kx + W, :].reshape(H * W, Pp)
            part = jnp.dot(win, w2_ref[ky, kx],
                           preferred_element_type=jnp.float32)
            acc2 = part if acc2 is None else acc2 + part

    # ---- bn2 + residual add (f32) + relu; lane-dense store ----
    identity = idn_ref[0].reshape(H * W, Pp)
    out = jnp.maximum(acc2 * s2_ref[...] + b2_ref[...] + identity, 0.0)
    o_ref[0] = out.reshape(H, W, Pp).astype(o_ref.dtype)


def fold_bn(gamma, beta, mean, var, eps=1e-5):
    scale = gamma / jnp.sqrt(var + eps)
    bias = beta - mean * scale
    return scale, bias


@jax.jit
def resblock_forward(x_nchw, w1, bn1, w2, bn2):
    """ResBlock forward. x_nchw: (B, C, H, W). Requires inplanes == planes and
    stride == 1 (downsample=None), matching the residual add."""
    g1, be1, m1, v1 = bn1
    g2, be2, m2, v2 = bn2
    s1, b1 = fold_bn(g1, be1, m1, v1)
    s2, b2 = fold_bn(g2, be2, m2, v2)

    B, C, H, W = x_nchw.shape
    P = w1.shape[-1]
    assert C == P, "ResBlock with downsample=None requires inplanes == planes"

    Pp = _round_up(P, 128)          # lane-dense output channels
    K1 = 9 * C                      # conv1 contraction: 3x3 taps x C channels
    K1p = _round_up(K1, 128)        # lane-dense contraction

    x_nhwc = jnp.transpose(x_nchw, (0, 2, 3, 1))                  # (B,H,W,C) f32
    x_pad = jnp.pad(x_nhwc, ((0, 0), (1, 1), (1, 1), (0, 0)))     # (B,H+2,W+2,C)

    # Host-side im2col over the 3x3 taps: conv1 becomes one lane-dense matmul.
    taps = [x_pad[:, ky:ky + H, kx:kx + W, :]
            for ky in range(3) for kx in range(3)]
    x_c1 = jnp.concatenate(taps, axis=-1)                         # (B,H,W,9C)
    x_c1 = jnp.pad(x_c1, ((0, 0), (0, 0), (0, 0), (0, K1p - K1)))
    x_c1 = x_c1.astype(jnp.bfloat16)

    # Fold conv1 weights the same way; zero-pad K and N to lane-dense widths.
    w1r = jnp.pad(w1.reshape(K1, P), ((0, K1p - K1), (0, Pp - P)))
    w1r = w1r.astype(jnp.bfloat16)
    w2p = jnp.pad(w2, ((0, 0), (0, 0), (0, Pp - P), (0, Pp - P)))
    w2p = w2p.astype(jnp.bfloat16)

    s1p = jnp.pad(s1, (0, Pp - P)).reshape(1, Pp).astype(jnp.float32)
    b1p = jnp.pad(b1, (0, Pp - P)).reshape(1, Pp).astype(jnp.float32)
    s2p = jnp.pad(s2, (0, Pp - P)).reshape(1, Pp).astype(jnp.float32)
    b2p = jnp.pad(b2, (0, Pp - P)).reshape(1, Pp).astype(jnp.float32)

    # Residual identity stays f32 (lane-padded channels).
    idn = jnp.pad(x_nhwc, ((0, 0), (0, 0), (0, 0), (0, Pp - C)))
    idn = idn.astype(jnp.float32)

    out_padded = pl.pallas_call(
        resblock_kernel,
        out_shape=jax.ShapeDtypeStruct((B, H, W, Pp), jnp.float32),
        grid_spec=pltpu.PrefetchScalarGridSpec(
            num_scalar_prefetch=0,
            grid=(B,),
            in_specs=[
                pl.BlockSpec((1, H, W, K1p), lambda b: (b, 0, 0, 0)),
                pl.BlockSpec((K1p, Pp), lambda b: (0, 0)),
                pl.BlockSpec((1, Pp), lambda b: (0, 0)),
                pl.BlockSpec((1, Pp), lambda b: (0, 0)),
                pl.BlockSpec((3, 3, Pp, Pp), lambda b: (0, 0, 0, 0)),
                pl.BlockSpec((1, Pp), lambda b: (0, 0)),
                pl.BlockSpec((1, Pp), lambda b: (0, 0)),
                pl.BlockSpec((1, H, W, Pp), lambda b: (b, 0, 0, 0)),
            ],
            out_specs=pl.BlockSpec((1, H, W, Pp), lambda b: (b, 0, 0, 0)),
            scratch_shapes=[pltpu.VMEM((H + 2, W + 2, Pp), jnp.bfloat16)],
        ),
        compiler_params=pltpu.CompilerParams(
            dimension_semantics=("parallel",),
            vmem_limit_bytes=32 * 1024 * 1024),
    )(x_c1, w1r, s1p, b1p, w2p, s2p, b2p, idn)

    out = out_padded[:, :, :, :P]                                  # drop lane pad
    return jnp.transpose(out, (0, 3, 1, 2)).astype(x_nchw.dtype)


def resblock_reference(x_nchw, w1, bn1, w2, bn2):
    """Plain-JAX reference with the same bf16 MXU-input rounding."""
    g1, be1, m1, v1 = bn1
    g2, be2, m2, v2 = bn2
    s1, b1 = fold_bn(g1, be1, m1, v1)
    s2, b2 = fold_bn(g2, be2, m2, v2)
    x = jnp.transpose(x_nchw, (0, 2, 3, 1))  # NHWC
    dn = lax.conv_dimension_numbers(x.shape, w1.shape, ("NHWC", "HWIO", "NHWC"))
    y = lax.conv_general_dilated(
        x.astype(jnp.bfloat16), w1.astype(jnp.bfloat16), (1, 1), "SAME",
        dimension_numbers=dn, preferred_element_type=jnp.float32)
    y = jnp.maximum(y * s1 + b1, 0.0)
    y = lax.conv_general_dilated(
        y.astype(jnp.bfloat16), w2.astype(jnp.bfloat16), (1, 1), "SAME",
        dimension_numbers=dn, preferred_element_type=jnp.float32)
    y = jnp.maximum(y * s2 + b2 + x, 0.0)
    return jnp.transpose(y, (0, 3, 1, 2))


if __name__ == "__main__":
    B, C, H, W = 2, 8, 16, 16   # inplanes == planes == 8, stride=1, no downsample
    P = C

    key = jax.random.PRNGKey(0)
    kx, kw1, kw2, kg1, kb1, kg2, kb2 = jax.random.split(key, 7)

    x = jax.random.normal(kx, (B, C, H, W), jnp.float32)

    # conv weights: HWIO layout for the kernel (Torch OIHW would be transposed)
    w1 = jax.random.normal(kw1, (3, 3, C, P), jnp.float32) * 0.1
    w2 = jax.random.normal(kw2, (3, 3, P, P), jnp.float32) * 0.1

    # BatchNorm params (eval mode): affine gamma/beta random, running stats at init
    bn1 = (1.0 + 0.1 * jax.random.normal(kg1, (P,), jnp.float32),
           0.1 * jax.random.normal(kb1, (P,), jnp.float32),
           jnp.zeros((P,), jnp.float32),
           jnp.ones((P,), jnp.float32))
    bn2 = (1.0 + 0.1 * jax.random.normal(kg2, (P,), jnp.float32),
           0.1 * jax.random.normal(kb2, (P,), jnp.float32),
           jnp.zeros((P,), jnp.float32),
           jnp.ones((P,), jnp.float32))

    out = resblock_forward(x, w1, bn1, w2, bn2)
    out = jax.block_until_ready(out)

    ref = jax.block_until_ready(resblock_reference(x, w1, bn1, w2, bn2))
    np.testing.assert_allclose(np.asarray(out), np.asarray(ref),
                               rtol=2e-2, atol=2e-2)

    print("KERNEL_OK")
</pallas_src>

<mosaic_0001>
module attributes {stable_mosaic.version = 11 : i64} {
  func.func @resblock_kernel(%arg0: i32, %arg1: memref<1x16x16x128xbf16, #tpu.memory_space<vmem>>, %arg2: memref<128x128xbf16, #tpu.memory_space<vmem>>, %arg3: memref<1x128xf32, #tpu.memory_space<vmem>>, %arg4: memref<1x128xf32, #tpu.memory_space<vmem>>, %arg5: memref<3x3x128x128xbf16, #tpu.memory_space<vmem>>, %arg6: memref<1x128xf32, #tpu.memory_space<vmem>>, %arg7: memref<1x128xf32, #tpu.memory_space<vmem>>, %arg8: memref<1x16x16x128xf32, #tpu.memory_space<vmem>>, %arg9: memref<1x16x16x128xf32, #tpu.memory_space<vmem>>, %arg10: memref<18x18x128xbf16, #tpu.memory_space<vmem>>) attributes {dimension_semantics = [#tpu.dimension_semantics<parallel>], iteration_bounds = array<i64: 2>, scalar_prefetch = 0 : i64, scratch_operands = 1 : i64, tpu.core_type = #tpu.core_type<tc>, window_params = [{transform_indices = @transform_0, window_bounds = array<i64: 1, 16, 16, 128>}, {pipeline_mode = #tpu.pipeline_mode<synchronous>, transform_indices = @transform_1, window_bounds = array<i64: 128, 128>}, {pipeline_mode = #tpu.pipeline_mode<synchronous>, transform_indices = @transform_2, window_bounds = array<i64: 1, 128>}, {pipeline_mode = #tpu.pipeline_mode<synchronous>, transform_indices = @transform_3, window_bounds = array<i64: 1, 128>}, {pipeline_mode = #tpu.pipeline_mode<synchronous>, transform_indices = @transform_4, window_bounds = array<i64: 3, 3, 128, 128>}, {pipeline_mode = #tpu.pipeline_mode<synchronous>, transform_indices = @transform_5, window_bounds = array<i64: 1, 128>}, {pipeline_mode = #tpu.pipeline_mode<synchronous>, transform_indices = @transform_6, window_bounds = array<i64: 1, 128>}, {transform_indices = @transform_7, window_bounds = array<i64: 1, 16, 16, 128>}, {transform_indices = @transform_8, window_bounds = array<i64: 1, 16, 16, 128>}]} {
    %c0 = arith.constant 0 : index
    %c0_0 = arith.constant 0 : index
    %c0_1 = arith.constant 0 : index
    %c0_2 = arith.constant 0 : index
    %0 = vector.load %arg1[%c0, %c0_0, %c0_1, %c0_2] : memref<1x16x16x128xbf16, #tpu.memory_space<vmem>>, vector<1x16x16x128xbf16>
    %1 = vector.shape_cast %0 : vector<1x16x16x128xbf16> to vector<16x16x128xbf16>
    %2 = vector.shape_cast %1 : vector<16x16x128xbf16> to vector<256x128xbf16>
    %c0_3 = arith.constant 0 : index
    %c0_4 = arith.constant 0 : index
    %3 = vector.load %arg2[%c0_3, %c0_4] : memref<128x128xbf16, #tpu.memory_space<vmem>>, vector<128x128xbf16>
    %cst = arith.constant dense<0.000000e+00> : vector<256x128xf32>
    %4 = tpu.matmul %2, %3, %cst {dimension_numbers = #tpu.dot_dimension_numbers<[1], [0], [0], [1], [0, 0, 1, 1], [], []>} : vector<256x128xbf16>, vector<128x128xbf16>, vector<256x128xf32> -> vector<256x128xf32>
    %c0_5 = arith.constant 0 : index
    %c0_6 = arith.constant 0 : index
    %5 = vector.load %arg3[%c0_5, %c0_6] : memref<1x128xf32, #tpu.memory_space<vmem>>, vector<1x128xf32>
    %6 = vector.broadcast %5 : vector<1x128xf32> to vector<256x128xf32>
    %7 = arith.mulf %4, %6 : vector<256x128xf32>
    %c0_7 = arith.constant 0 : index
    %c0_8 = arith.constant 0 : index
    %8 = vector.load %arg4[%c0_7, %c0_8] : memref<1x128xf32, #tpu.memory_space<vmem>>, vector<1x128xf32>
    %9 = vector.broadcast %8 : vector<1x128xf32> to vector<256x128xf32>
    %10 = arith.addf %7, %9 : vector<256x128xf32>
    %cst_9 = arith.constant 0.000000e+00 : f32
    %11 = vector.broadcast %cst_9 : f32 to vector<256x128xf32>
    %12 = arith.maximumf %10, %11 : vector<256x128xf32>
    %13 = vector.shape_cast %12 : vector<256x128xf32> to vector<16x16x128xf32>
    %14 = arith.truncf %13 : vector<16x16x128xf32> to vector<16x16x128xbf16>
    %cst_10 = arith.constant 0.000000e+00 : bf16
    %15 = vector.broadcast %cst_10 : bf16 to vector<1x18x128xbf16>
    %cst_11 = arith.constant 0.000000e+00 : bf16
    %16 = vector.broadcast %cst_11 : bf16 to vector<16x1x128xbf16>
    %c0_12 = arith.constant 0 : index
    %c0_13 = arith.constant 0 : index
    %c0_14 = arith.constant 0 : index
    %17 = vector.load %arg10[%c0_12, %c0_13, %c0_14] : memref<18x18x128xbf16, #tpu.memory_space<vmem>>, vector<1x18x128xbf16>
    tpu.vector_store %arg10[%c0_12, %c0_13, %c0_14], %15 {strides = array<i32>} : memref<18x18x128xbf16, #tpu.memory_space<vmem>>, vector<1x18x128xbf16>,
    %c17 = arith.constant 17 : index
    %c0_15 = arith.constant 0 : index
    %c0_16 = arith.constant 0 : index
    %18 = vector.load %arg10[%c17, %c0_15, %c0_16] : memref<18x18x128xbf16, #tpu.memory_space<vmem>>, vector<1x18x128xbf16>
    tpu.vector_store %arg10[%c17, %c0_15, %c0_16], %15 {strides = array<i32>} : memref<18x18x128xbf16, #tpu.memory_space<vmem>>, vector<1x18x128xbf16>,
    %c1 = arith.constant 1 : index
    %c0_17 = arith.constant 0 : index
    %c0_18 = arith.constant 0 : index
    %19 = vector.load %arg10[%c1, %c0_17, %c0_18] : memref<18x18x128xbf16, #tpu.memory_space<vmem>>, vector<16x1x128xbf16>
    tpu.vector_store %arg10[%c1, %c0_17, %c0_18], %16 {strides = array<i32>} : memref<18x18x128xbf16, #tpu.memory_space<vmem>>, vector<16x1x128xbf16>,
    %c1_19 = arith.constant 1 : index
    %c17_20 = arith.constant 17 : index
    %c0_21 = arith.constant 0 : index
    %20 = vector.load %arg10[%c1_19, %c17_20, %c0_21] : memref<18x18x128xbf16, #tpu.memory_space<vmem>>, vector<16x1x128xbf16>
    tpu.vector_store %arg10[%c1_19, %c17_20, %c0_21], %16 {strides = array<i32>} : memref<18x18x128xbf16, #tpu.memory_space<vmem>>, vector<16x1x128xbf16>,
    %c1_22 = arith.constant 1 : index
    %c1_23 = arith.constant 1 : index
    %c0_24 = arith.constant 0 : index
    %21 = vector.load %arg10[%c1_22, %c1_23, %c0_24] : memref<18x18x128xbf16, #tpu.memory_space<vmem>>, vector<16x16x128xbf16>
    tpu.vector_store %arg10[%c1_22, %c1_23, %c0_24], %14 {strides = array<i32>} : memref<18x18x128xbf16, #tpu.memory_space<vmem>>, vector<16x16x128xbf16>,
    %c0_25 = arith.constant 0 : index
    %c0_26 = arith.constant 0 : index
    %c0_27 = arith.constant 0 : index
    %22 = vector.load %arg10[%c0_25, %c0_26, %c0_27] : memref<18x18x128xbf16, #tpu.memory_space<vmem>>, vector<16x16x128xbf16>
    %23 = vector.shape_cast %22 : vector<16x16x128xbf16> to vector<256x128xbf16>
    %c0_28 = arith.constant 0 : index
    %c0_29 = arith.constant 0 : index
    %c0_30 = arith.constant 0 : index
    %c0_31 = arith.constant 0 : index
    %24 = vector.load %arg5[%c0_28, %c0_29, %c0_30, %c0_31] : memref<3x3x128x128xbf16, #tpu.memory_space<vmem>>, vector<1x1x128x128xbf16>
    %25 = vector.shape_cast %24 : vector<1x1x128x128xbf16> to vector<128x128xbf16>
    %cst_32 = arith.constant dense<0.000000e+00> : vector<256x128xf32>
    %26 = tpu.matmul %23, %25, %cst_32 {dimension_numbers = #tpu.dot_dimension_numbers<[1], [0], [0], [1], [0, 0, 1, 1], [], []>} : vector<256x128xbf16>, vector<128x128xbf16>, vector<256x128xf32> -> vector<256x128xf32>
    %c0_33 = arith.constant 0 : index
    %c1_34 = arith.constant 1 : index
    %c0_35 = arith.constant 0 : index
    %27 = vector.load %arg10[%c0_33, %c1_34, %c0_35] : memref<18x18x128xbf16, #tpu.memory_space<vmem>>, vector<16x16x128xbf16>
    %28 = vector.shape_cast %27 : vector<16x16x128xbf16> to vector<256x128xbf16>
    %c0_36 = arith.constant 0 : index
    %c1_37 = arith.constant 1 : index
    %c0_38 = arith.constant 0 : index
    %c0_39 = arith.constant 0 : index
    %29 = vector.load %arg5[%c0_36, %c1_37, %c0_38, %c0_39] : memref<3x3x128x128xbf16, #tpu.memory_space<vmem>>, vector<1x1x128x128xbf16>
    %30 = vector.shape_cast %29 : vector<1x1x128x128xbf16> to vector<128x128xbf16>
    %cst_40 = arith.constant dense<0.000000e+00> : vector<256x128xf32>
    %31 = tpu.matmul %28, %30, %cst_40 {dimension_numbers = #tpu.dot_dimension_numbers<[1], [0], [0], [1], [0, 0, 1, 1], [], []>} : vector<256x128xbf16>, vector<128x128xbf16>, vector<256x128xf32> -> vector<256x128xf32>
    %32 = arith.addf %26, %31 : vector<256x128xf32>
    %c0_41 = arith.constant 0 : index
    %c2 = arith.constant 2 : index
    %c0_42 = arith.constant 0 : index
    %33 = vector.load %arg10[%c0_41, %c2, %c0_42] : memref<18x18x128xbf16, #tpu.memory_space<vmem>>, vector<16x16x128xbf16>
    %34 = vector.shape_cast %33 : vector<16x16x128xbf16> to vector<256x128xbf16>
    %c0_43 = arith.constant 0 : index
    %c2_44 = arith.constant 2 : index
    %c0_45 = arith.constant 0 : index
    %c0_46 = arith.constant 0 : index
    %35 = vector.load %arg5[%c0_43, %c2_44, %c0_45, %c0_46] : memref<3x3x128x128xbf16, #tpu.memory_space<vmem>>, vector<1x1x128x128xbf16>
    %36 = vector.shape_cast %35 : vector<1x1x128x128xbf16> to vector<128x128xbf16>
    %cst_47 = arith.constant dense<0.000000e+00> : vector<256x128xf32>
    %37 = tpu.matmul %34, %36, %cst_47 {dimension_numbers = #tpu.dot_dimension_numbers<[1], [0], [0], [1], [0, 0, 1, 1], [], []>} : vector<256x128xbf16>, vector<128x128xbf16>, vector<256x128xf32> -> vector<256x128xf32>
    %38 = arith.addf %32, %37 : vector<256x128xf32>
    %c1_48 = arith.constant 1 : index
    %c0_49 = arith.constant 0 : index
    %c0_50 = arith.constant 0 : index
    %39 = vector.load %arg10[%c1_48, %c0_49, %c0_50] : memref<18x18x128xbf16, #tpu.memory_space<vmem>>, vector<16x16x128xbf16>
    %40 = vector.shape_cast %39 : vector<16x16x128xbf16> to vector<256x128xbf16>
    %c1_51 = arith.constant 1 : index
    %c0_52 = arith.constant 0 : index
    %c0_53 = arith.constant 0 : index
    %c0_54 = arith.constant 0 : index
    %41 = vector.load %arg5[%c1_51, %c0_52, %c0_53, %c0_54] : memref<3x3x128x128xbf16, #tpu.memory_space<vmem>>, vector<1x1x128x128xbf16>
    %42 = vector.shape_cast %41 : vector<1x1x128x128xbf16> to vector<128x128xbf16>
    %cst_55 = arith.constant dense<0.000000e+00> : vector<256x128xf32>
    %43 = tpu.matmul %40, %42, %cst_55 {dimension_numbers = #tpu.dot_dimension_numbers<[1], [0], [0], [1], [0, 0, 1, 1], [], []>} : vector<256x128xbf16>, vector<128x128xbf16>, vector<256x128xf32> -> vector<256x128xf32>
    %44 = arith.addf %38, %43 : vector<256x128xf32>
    %c1_56 = arith.constant 1 : index
    %c1_57 = arith.constant 1 : index
    %c0_58 = arith.constant 0 : index
    %45 = vector.load %arg10[%c1_56, %c1_57, %c0_58] : memref<18x18x128xbf16, #tpu.memory_space<vmem>>, vector<16x16x128xbf16>
    %46 = vector.shape_cast %45 : vector<16x16x128xbf16> to vector<256x128xbf16>
    %c1_59 = arith.constant 1 : index
    %c1_60 = arith.constant 1 : index
    %c0_61 = arith.constant 0 : index
    %c0_62 = arith.constant 0 : index
    %47 = vector.load %arg5[%c1_59, %c1_60, %c0_61, %c0_62] : memref<3x3x128x128xbf16, #tpu.memory_space<vmem>>, vector<1x1x128x128xbf16>
    %48 = vector.shape_cast %47 : vector<1x1x128x128xbf16> to vector<128x128xbf16>
    %cst_63 = arith.constant dense<0.000000e+00> : vector<256x128xf32>
    %49 = tpu.matmul %46, %48, %cst_63 {dimension_numbers = #tpu.dot_dimension_numbers<[1], [0], [0], [1], [0, 0, 1, 1], [], []>} : vector<256x128xbf16>, vector<128x128xbf16>, vector<256x128xf32> -> vector<256x128xf32>
    %50 = arith.addf %44, %49 : vector<256x128xf32>
    %c1_64 = arith.constant 1 : index
    %c2_65 = arith.constant 2 : index
    %c0_66 = arith.constant 0 : index
    %51 = vector.load %arg10[%c1_64, %c2_65, %c0_66] : memref<18x18x128xbf16, #tpu.memory_space<vmem>>, vector<16x16x128xbf16>
    %52 = vector.shape_cast %51 : vector<16x16x128xbf16> to vector<256x128xbf16>
    %c1_67 = arith.constant 1 : index
    %c2_68 = arith.constant 2 : index
    %c0_69 = arith.constant 0 : index
    %c0_70 = arith.constant 0 : index
    %53 = vector.load %arg5[%c1_67, %c2_68, %c0_69, %c0_70] : memref<3x3x128x128xbf16, #tpu.memory_space<vmem>>, vector<1x1x128x128xbf16>
    %54 = vector.shape_cast %53 : vector<1x1x128x128xbf16> to vector<128x128xbf16>
    %cst_71 = arith.constant dense<0.000000e+00> : vector<256x128xf32>
    %55 = tpu.matmul %52, %54, %cst_71 {dimension_numbers = #tpu.dot_dimension_numbers<[1], [0], [0], [1], [0, 0, 1, 1], [], []>} : vector<256x128xbf16>, vector<128x128xbf16>, vector<256x128xf32> -> vector<256x128xf32>
    %56 = arith.addf %50, %55 : vector<256x128xf32>
    %c2_72 = arith.constant 2 : index
    %c0_73 = arith.constant 0 : index
    %c0_74 = arith.constant 0 : index
    %57 = vector.load %arg10[%c2_72, %c0_73, %c0_74] : memref<18x18x128xbf16, #tpu.memory_space<vmem>>, vector<16x16x128xbf16>
    %58 = vector.shape_cast %57 : vector<16x16x128xbf16> to vector<256x128xbf16>
    %c2_75 = arith.constant 2 : index
    %c0_76 = arith.constant 0 : index
    %c0_77 = arith.constant 0 : index
    %c0_78 = arith.constant 0 : index
    %59 = vector.load %arg5[%c2_75, %c0_76, %c0_77, %c0_78] : memref<3x3x128x128xbf16, #tpu.memory_space<vmem>>, vector<1x1x128x128xbf16>
    %60 = vector.shape_cast %59 : vector<1x1x128x128xbf16> to vector<128x128xbf16>
    %cst_79 = arith.constant dense<0.000000e+00> : vector<256x128xf32>
    %61 = tpu.matmul %58, %60, %cst_79 {dimension_numbers = #tpu.dot_dimension_numbers<[1], [0], [0], [1], [0, 0, 1, 1], [], []>} : vector<256x128xbf16>, vector<128x128xbf16>, vector<256x128xf32> -> vector<256x128xf32>
    %62 = arith.addf %56, %61 : vector<256x128xf32>
    %c2_80 = arith.constant 2 : index
    %c1_81 = arith.constant 1 : index
    %c0_82 = arith.constant 0 : index
    %63 = vector.load %arg10[%c2_80, %c1_81, %c0_82] : memref<18x18x128xbf16, #tpu.memory_space<vmem>>, vector<16x16x128xbf16>
    %64 = vector.shape_cast %63 : vector<16x16x128xbf16> to vector<256x128xbf16>
    %c2_83 = arith.constant 2 : index
    %c1_84 = arith.constant 1 : index
    %c0_85 = arith.constant 0 : index
    %c0_86 = arith.constant 0 : index
    %65 = vector.load %arg5[%c2_83, %c1_84, %c0_85, %c0_86] : memref<3x3x128x128xbf16, #tpu.memory_space<vmem>>, vector<1x1x128x128xbf16>
    %66 = vector.shape_cast %65 : vector<1x1x128x128xbf16> to vector<128x128xbf16>
    %cst_87 = arith.constant dense<0.000000e+00> : vector<256x128xf32>
    %67 = tpu.matmul %64, %66, %cst_87 {dimension_numbers = #tpu.dot_dimension_numbers<[1], [0], [0], [1], [0, 0, 1, 1], [], []>} : vector<256x128xbf16>, vector<128x128xbf16>, vector<256x128xf32> -> vector<256x128xf32>
    %68 = arith.addf %62, %67 : vector<256x128xf32>
    %c2_88 = arith.constant 2 : index
    %c2_89 = arith.constant 2 : index
    %c0_90 = arith.constant 0 : index
    %69 = vector.load %arg10[%c2_88, %c2_89, %c0_90] : memref<18x18x128xbf16, #tpu.memory_space<vmem>>, vector<16x16x128xbf16>
    %70 = vector.shape_cast %69 : vector<16x16x128xbf16> to vector<256x128xbf16>
    %c2_91 = arith.constant 2 : index
    %c2_92 = arith.constant 2 : index
    %c0_93 = arith.constant 0 : index
    %c0_94 = arith.constant 0 : index
    %71 = vector.load %arg5[%c2_91, %c2_92, %c0_93, %c0_94] : memref<3x3x128x128xbf16, #tpu.memory_space<vmem>>, vector<1x1x128x128xbf16>
    %72 = vector.shape_cast %71 : vector<1x1x128x128xbf16> to vector<128x128xbf16>
    %cst_95 = arith.constant dense<0.000000e+00> : vector<256x128xf32>
    %73 = tpu.matmul %70, %72, %cst_95 {dimension_numbers = #tpu.dot_dimension_numbers<[1], [0], [0], [1], [0, 0, 1, 1], [], []>} : vector<256x128xbf16>, vector<128x128xbf16>, vector<256x128xf32> -> vector<256x128xf32>
    %74 = arith.addf %68, %73 : vector<256x128xf32>
    %c0_96 = arith.constant 0 : index
    %c0_97 = arith.constant 0 : index
    %c0_98 = arith.constant 0 : index
    %c0_99 = arith.constant 0 : index
    %75 = vector.load %arg8[%c0_96, %c0_97, %c0_98, %c0_99] : memref<1x16x16x128xf32, #tpu.memory_space<vmem>>, vector<1x16x16x128xf32>
    %76 = vector.shape_cast %75 : vector<1x16x16x128xf32> to vector<16x16x128xf32>
    %77 = vector.shape_cast %76 : vector<16x16x128xf32> to vector<256x128xf32>
    %c0_100 = arith.constant 0 : index
    %c0_101 = arith.constant 0 : index
    %78 = vector.load %arg6[%c0_100, %c0_101] : memref<1x128xf32, #tpu.memory_space<vmem>>, vector<1x128xf32>
    %79 = vector.broadcast %78 : vector<1x128xf32> to vector<256x128xf32>
    %80 = arith.mulf %74, %79 : vector<256x128xf32>
    %c0_102 = arith.constant 0 : index
    %c0_103 = arith.constant 0 : index
    %81 = vector.load %arg7[%c0_102, %c0_103] : memref<1x128xf32, #tpu.memory_space<vmem>>, vector<1x128xf32>
    %82 = vector.broadcast %81 : vector<1x128xf32> to vector<256x128xf32>
    %83 = arith.addf %80, %82 : vector<256x128xf32>
    %84 = arith.addf %83, %77 : vector<256x128xf32>
    %cst_104 = arith.constant 0.000000e+00 : f32
    %85 = vector.broadcast %cst_104 : f32 to vector<256x128xf32>
    %86 = arith.maximumf %84, %85 : vector<256x128xf32>
    %87 = vector.shape_cast %86 : vector<256x128xf32> to vector<16x16x128xf32>
    %c0_105 = arith.constant 0 : index
    %c0_106 = arith.constant 0 : index
    %c0_107 = arith.constant 0 : index
    %c0_108 = arith.constant 0 : index
    %88 = vector.load %arg9[%c0_105, %c0_106, %c0_107, %c0_108] : memref<1x16x16x128xf32, #tpu.memory_space<vmem>>, vector<1x16x16x128xf32>
    %89 = vector.shape_cast %88 : vector<1x16x16x128xf32> to vector<16x16x128xf32>
    %90 = vector.shape_cast %87 : vector<16x16x128xf32> to vector<1x16x16x128xf32>
    tpu.vector_store %arg9[%c0_105, %c0_106, %c0_107, %c0_108], %90 {strides = array<i32>} : memref<1x16x16x128xf32, #tpu.memory_space<vmem>>, vector<1x16x16x128xf32>,
    return
  }
  func.func @transform_0(%arg0: i32) -> (i32, i32, i32, i32) {
    %c0_i32 = arith.constant 0 : i32
    %c0_i32_0 = arith.constant 0 : i32
    %c0_i32_1 = arith.constant 0 : i32
    %c0_i32_2 = arith.constant 0 : i32
    return %arg0, %c0_i32, %c0_i32_0, %c0_i32_1 : i32, i32, i32, i32
  }
  func.func @transform_1(%arg0: i32) -> (i32, i32) {
    %c0_i32 = arith.constant 0 : i32
    %c0_i32_0 = arith.constant 0 : i32
    %c0_i32_1 = arith.constant 0 : i32
    return %c0_i32, %c0_i32_0 : i32, i32
  }
  func.func @transform_2(%arg0: i32) -> (i32, i32) {
    %c0_i32 = arith.constant 0 : i32
    %c0_i32_0 = arith.constant 0 : i32
    %c0_i32_1 = arith.constant 0 : i32
    return %c0_i32, %c0_i32_0 : i32, i32
  }
  func.func @transform_3(%arg0: i32) -> (i32, i32) {
    %c0_i32 = arith.constant 0 : i32
    %c0_i32_0 = arith.constant 0 : i32
    %c0_i32_1 = arith.constant 0 : i32
    return %c0_i32, %c0_i32_0 : i32, i32
  }
  func.func @transform_4(%arg0: i32) -> (i32, i32, i32, i32) {
    %c0_i32 = arith.constant 0 : i32
    %c0_i32_0 = arith.constant 0 : i32
    %c0_i32_1 = arith.constant 0 : i32
    %c0_i32_2 = arith.constant 0 : i32
    %c0_i32_3 = arith.constant 0 : i32
    return %c0_i32, %c0_i32_0, %c0_i32_1, %c0_i32_2 : i32, i32, i32, i32
  }
  func.func @transform_5(%arg0: i32) -> (i32, i32) {
    %c0_i32 = arith.constant 0 : i32
    %c0_i32_0 = arith.constant 0 : i32
    %c0_i32_1 = arith.constant 0 : i32
    return %c0_i32, %c0_i32_0 : i32, i32
  }
  func.func @transform_6(%arg0: i32) -> (i32, i32) {
    %c0_i32 = arith.constant 0 : i32
    %c0_i32_0 = arith.constant 0 : i32
    %c0_i32_1 = arith.constant 0 : i32
    return %c0_i32, %c0_i32_0 : i32, i32
  }
  func.func @transform_7(%arg0: i32) -> (i32, i32, i32, i32) {
    %c0_i32 = arith.constant 0 : i32
    %c0_i32_0 = arith.constant 0 : i32
    %c0_i32_1 = arith.constant 0 : i32
    %c0_i32_2 = arith.constant 0 : i32
    return %arg0, %c0_i32, %c0_i32_0, %c0_i32_1 : i32, i32, i32, i32
  }
  func.func @transform_8(%arg0: i32) -> (i32, i32, i32, i32) {
    %c0_i32 = arith.constant 0 : i32
    %c0_i32_0 = arith.constant 0 : i32
    %c0_i32_1 = arith.constant 0 : i32
    %c0_i32_2 = arith.constant 0 : i32
    return %arg0, %c0_i32, %c0_i32_0, %c0_i32_1 : i32, i32, i32, i32
  }
}

</mosaic_0001>

<bundles_post_ra>
// kernel: resblock_forward.1
= control target key start
LH: loop header
LB: loop body
LE: loop exit
PB: predicated region body
PF: predicated region fallthrough
CT: control target
= control target key end

     0   :  { %s8255_s27 = smov 0   ;;  %s10293_s0 = inlined_call_operand.vmem [shape: bf16[2,16,16,128], index: 0, kind: input, shape index: {}]   ;;  %s10294_s1 = inlined_call_operand.vmem [shape: bf16[128,128], index: 1, kind: input, shape index: {}]   ;;  %s10295_s2 = inlined_call_operand.vmem [shape: f32[1,128], index: 2, kind: input, shape index: {}]   ;;  %s10296_s3 = inlined_call_operand.vmem [shape: f32[1,128], index: 3, kind: input, shape index: {}]   ;;  %s10297_s4 = inlined_call_operand.vmem [shape: bf16[3,3,128,128], index: 4, kind: input, shape index: {}]   ;;  %s10298_s5 = inlined_call_operand.vmem [shape: f32[1,128], index: 5, kind: input, shape index: {}]   ;;  %s10299_s6 = inlined_call_operand.vmem [shape: f32[1,128], index: 6, kind: input, shape index: {}]   ;;  %s10300_s7 = inlined_call_operand.vmem [shape: f32[2,16,16,128], index: 7, kind: input, shape index: {}]   ;;  %s10301_s8 = inlined_call_operand.vmem [shape: f32[2,16,16,128], index: 8, kind: output, shape index: {}]  }
   0x1 LB: > { %s6512_s28 = sadd.s32 4294967295, %s8207_s27   ;;  %p6516_p0 = scmp.ge.s32.totalorder %s8207_s27, 1  ;;  %s8207_s27 = sphi %s8255_s27, %s18_s27  }
   0x2   : > { %p272_p1 = scmp.lt.s32.totalorder %s8207_s27, 3 }
   0x4   : > { %p273_p2 = pnand %p6516_p0, %p272_p1 }
   0x6   : > { %276 = sbr.rel (%p273_p2) target bundleno = 969 (0x3c9), region = 52 }
   0xd   : > { %v7997_v0 = vld [vmem:[%s10294_s1] sm:$0xff]   ;;  %p311_p3 = scmp.lt.s32.totalorder %s6512_s28, 1  ;;  %v7998_v1 = vld [vmem:[%s10294_s1 + $0x8] sm:$0xff]   ;;  %v7999_v2 = vld [vmem:[%s10294_s1 + $0x10] sm:$0xff]   ;;  %vm814_vm0 = vcmask 1040384   ;;  %v8209_v57 = vmov 0  }
   0xe   : > { %7252 = vmatprep.subr.bf16.mxu0 %v7997_v0  ;;  %v8000_v3 = vld [vmem:[%s10294_s1 + $0x18] sm:$0xff]   ;;  %v8001_v5 = vld [vmem:[%s10294_s1 + $0x20] sm:$0xff]   ;;  %v8002_v6 = vld [vmem:[%s10294_s1 + $0x28] sm:$0xff]   ;;  %vm815_vm1 = vsmask.f32 256  ;;  %vm1317_vm8 = vcmask 1043456  }
   0xf   : > { %s10396_s28 = smov (!%p311_p3, %s6512_s28), 1  ;;  %7253 = vmatpush3.bf16.msra.mxu0 %v7997_v0  ;;  %v8003_v7 = vld [vmem:[%s10294_s1 + $0x30] sm:$0xff]   ;;  %v8004_v8 = vld [vmem:[%s10294_s1 + $0x38] sm:$0xff]   ;;  %v8021_v24 = vld [vmem:[%s10297_s4 + $0x40] sm:$0xff]   ;;  %vm865_vm3 = vsmask.f32 7938 }
  0x10   : > { %7254 = vmatprep.subr.bf16.mxu0 %v7998_v1  ;;  %s6977_s13 = sshll.u32 %s10396_s28, 7  ;;  %vm8315_vm2 = vmand %vm814_vm0, %vm815_vm1  ;;  %v820_v26 = vld [vmem:[#allocation2 + $0x18] sm:$0x1]  ;;  %v8022_v27 = vld [vmem:[%s10297_s4 + $0x100] sm:$0xff]   ;;  %806 = vst [vmem:[#allocation2] sm:$0xf] %v8209_v57 }
  0x11   : > { %s8278_s16 = scalar_lea.vmem %s10293_s0, %s6977_s13  ;;  %v821_v28 = vsel %vm8315_vm2, 0, %v820_v26  ;;  %vm8325_vm4 = vmand %vm814_vm0, %vm865_vm3  ;;  %v817_v30 = vld [vmem:[#allocation2 + $0xc] sm:$0x1]  ;;  %v870_v32 = vld [vmem:[#allocation2 + $0x20] sm:$0x1]  ;;  %7492 = vmatprep.subr.bf16.mxu1 %v8022_v27  ;;  %vm2525_vm12 = vcmask 1042432  }
  0x12   : > { %v8005_v4 = vld [vmem:[%s8278_s16] sm:$0xff]   ;;  %v8006_v9 = vld [vmem:[%s8278_s16 + $0x8] sm:$0xff]   ;;  %v8007_v10 = vld [vmem:[%s8278_s16 + $0x10] sm:$0xff]   ;;  %822 = vst [vmem:[#allocation2 + $0x18] sm:$0x1] %v821_v28  ;;  %v818_v31 = vsel %vm8315_vm2, 0, %v817_v30  ;;  %7493 = vmatpush3.bf16.msra.mxu1 %v8022_v27 }
  0x13   : > { %7255 = vmatpush3.bf16.msra.mxu0 %v7998_v1  ;;  %7268 = vmatprep.mubr.bf16.mxu0 %v8005_v4  ;;  %v8008_v11 = vld [vmem:[%s8278_s16 + $0x18] sm:$0xff]   ;;  %v8009_v12 = vld [vmem:[%s8278_s16 + $0x20] sm:$0xff]   ;;  %v8010_v13 = vld [vmem:[%s8278_s16 + $0x28] sm:$0xff]   ;;  %819 = vst [vmem:[#allocation2 + $0xc] sm:$0x1] %v818_v31  ;;  %v871_v33 = vsel %vm8325_vm4, 0, %v870_v32 }
  0x14   : > { %7256 = vmatprep.subr.bf16.mxu0 %v7999_v2  ;;  %v8011_v14 = vld [vmem:[%s8278_s16 + $0x30] sm:$0xff]   ;;  %v8012_v15 = vld [vmem:[%s8278_s16 + $0x38] sm:$0xff]   ;;  %v8013_v16 = vld [vmem:[%s8278_s16 + $0x40] sm:$0xff]   ;;  %872 = vst [vmem:[#allocation2 + $0x20] sm:$0x1] %v871_v33  ;;  %v10324_v32 = vmov 0 }
  0x15   : > { %v8014_v17 = vld [vmem:[%s8278_s16 + $0x48] sm:$0xff]   ;;  %v8015_v18 = vld [vmem:[%s8278_s16 + $0x50] sm:$0xff]   ;;  %v8016_v19 = vld [vmem:[%s8278_s16 + $0x58] sm:$0xff]   ;;  %807 = vst [vmem:[#allocation2 + $0x4] sm:$0xf] %v8209_v57  ;;  %vm2526_vm13 = vcmask 1046532  }
  0x16   : > { %v8017_v20 = vld [vmem:[%s8278_s16 + $0x60] sm:$0xff]   ;;  %v8018_v21 = vld [vmem:[%s8278_s16 + $0x68] sm:$0xff]   ;;  %v8019_v22 = vld [vmem:[%s8278_s16 + $0x70] sm:$0xff]   ;;  %808 = vst [vmem:[#allocation2 + $0x8] sm:$0x1] %v8209_v57  ;;  %s6978_s21 = sshll.u32 %s10396_s28, 8 }
  0x17   : > { %7257 = vmatpush3.bf16.msra.mxu0 %v7999_v2  ;;  %v8020_v23 = vld [vmem:[%s8278_s16 + $0x78] sm:$0xff]   ;;  %v867_v34 = vld [vmem:[#allocation2 + $0x14] sm:$0x1]  ;;  %v826_v36 = vld [vmem:[#allocation2 + $0x30] sm:$0x1]  ;;  %s10124_s26 = scalar_lea.vmem %s10300_s7, %s6978_s21  ;;  %s10145_s10 = scalar_lea.vmem %s10301_s8, %s6978_s21 }
  0x18   : > { %7258 = vmatprep.subr.bf16.mxu0 %v8000_v3  ;;  %v868_v35 = vsel %vm8325_vm4, 0, %v867_v34  ;;  %v827_v37 = vsel %vm8315_vm2, 0, %v826_v36  ;;  %v823_v38 = vld [vmem:[#allocation2 + $0x24] sm:$0x1]  ;;  %v8023_v40 = vld [vmem:[%s10297_s4 + $0x48] sm:$0xff]   ;;  %v8025_v42 = vld [vmem:[%s10297_s4 + $0x50] sm:$0xff]  }
  0x19   : > { %869 = vst [vmem:[#allocation2 + $0x14] sm:$0x1] %v868_v35  ;;  %828 = vst [vmem:[#allocation2 + $0x30] sm:$0x1] %v827_v37  ;;  %v824_v39 = vsel %vm8315_vm2, 0, %v823_v38  ;;  %v8024_v41 = vld [vmem:[%s10297_s4 + $0x108] sm:$0xff]  }
  0x1a   : > { %825 = vst [vmem:[#allocation2 + $0x24] sm:$0x1] %v824_v39  ;;  %7494 = vmatprep.subr.bf16.mxu1 %v8024_v41  ;;  %v8026_v43 = vld [vmem:[%s10297_s4 + $0x110] sm:$0xff]   ;;  %v876_v44 = vld [vmem:[#allocation2 + $0x38] sm:$0x1]  ;;  %v8029_v50 = vld [vmem:[%s10297_s4 + $0x60] sm:$0xff]  }
  0x1b   : > { %7259 = vmatpush3.bf16.msra.mxu0 %v8000_v3  ;;  %7495 = vmatpush3.bf16.msra.mxu1 %v8024_v41  ;;  %v877_v45 = vsel %vm8325_vm4, 0, %v876_v44  ;;  %v873_v46 = vld [vmem:[#allocation2 + $0x2c] sm:$0x1]  ;;  %v8027_v47 = vld [vmem:[%s10297_s4 + $0x58] sm:$0xff]   ;;  %v832_v51 = vld [vmem:[#allocation2 + $0x48] sm:$0x1] }
  0x1c   : > { %7260 = vmatprep.subr.bf16.mxu0 %v8001_v5  ;;  %7496 = vmatprep.subr.bf16.mxu1 %v8026_v43  ;;  %878 = vst [vmem:[#allocation2 + $0x38] sm:$0x1] %v877_v45  ;;  %v874_v48 = vsel %vm8325_vm4, 0, %v873_v46  ;;  %v8028_v49 = vld [vmem:[%s10297_s4 + $0x118] sm:$0xff]   ;;  %v8030_v52 = vld [vmem:[%s10297_s4 + $0x120] sm:$0xff]   ;;  %v833_v53 = vsel %vm8315_vm2, 0, %v832_v51  ;;  %vm8463_vm10 = vmand %vm1317_vm8, %vm865_vm3 }
  0x1d   : > { %875 = vst [vmem:[#allocation2 + $0x2c] sm:$0x1] %v874_v48  ;;  %v829_v54 = vld [vmem:[#allocation2 + $0x3c] sm:$0x1]  ;;  %834 = vst [vmem:[#allocation2 + $0x48] sm:$0x1] %v833_v53 }
  0x1e   : > { %v830_v55 = vsel %vm8315_vm2, 0, %v829_v54  ;;  %v882_v56 = vld [vmem:[#allocation2 + $0x50] sm:$0x1]  ;;  %810 = vst [vmem:[#allocation2 + $0xcc] sm:$0xf] %v8209_v57  ;;  %v8031_v61 = vld [vmem:[%s10297_s4 + $0x68] sm:$0xff]   ;;  %vm9010_vm14 = vmor %vm2525_vm12, %vm2526_vm13 }
  0x1f   : > { %7261 = vmatpush3.bf16.msra.mxu0 %v8001_v5  ;;  %7497 = vmatpush3.bf16.msra.mxu1 %v8026_v43  ;;  %811 = vst [vmem:[#allocation2 + $0xd0] sm:$0xf] %v8209_v57  ;;  %812 = vst [vmem:[#allocation2 + $0xd4] sm:$0x1] %v8209_v57  ;;  %v883_v58 = vsel %vm8325_vm4, 0, %v882_v56  ;;  %v8032_v62 = vld [vmem:[%s10297_s4 + $0x128] sm:$0xff]  }
  0x20   : > { %7262 = vmatprep.subr.bf16.mxu0 %v8002_v6  ;;  %7498 = vmatprep.subr.bf16.mxu1 %v8028_v49  ;;  %831 = vst [vmem:[#allocation2 + $0x3c] sm:$0x1] %v830_v55  ;;  %v879_v59 = vld [vmem:[#allocation2 + $0x44] sm:$0x1]  ;;  %884 = vst [vmem:[#allocation2 + $0x50] sm:$0x1] %v883_v58 }
  0x21   : > { %v880_v60 = vsel %vm8325_vm4, 0, %v879_v59  ;;  %v838_v63 = vld [vmem:[#allocation2 + $0x60] sm:$0x1]  ;;  %v835_v1 = vld [vmem:[#allocation2 + $0x54] sm:$0x1] }
  0x22   : > { %881 = vst [vmem:[#allocation2 + $0x44] sm:$0x1] %v880_v60  ;;  %v839_v0 = vsel %vm8315_vm2, 0, %v838_v63  ;;  %v8033_v2 = vld [vmem:[%s10297_s4 + $0x70] sm:$0xff]   ;;  %v836_v3 = vsel %vm8315_vm2, 0, %v835_v1  ;;  %v8802_v29 = vld [vmem:[%s10297_s4 + $0x80] sm:$0xff]  }
  0x23   : > { %7263 = vmatpush3.bf16.msra.mxu0 %v8002_v6  ;;  %7499 = vmatpush3.bf16.msra.mxu1 %v8028_v49  ;;  %840 = vst [vmem:[#allocation2 + $0x60] sm:$0x1] %v839_v0  ;;  %v8034_v4 = vld [vmem:[%s10297_s4 + $0x130] sm:$0xff]   ;;  %v1431_v5 = vld [vmem:[#allocation2] sm:$0xf] }
  0x24   : > { %7264 = vmatprep.subr.bf16.mxu0 %v8003_v7  ;;  %7500 = vmatprep.subr.bf16.mxu1 %v8030_v52  ;;  %837 = vst [vmem:[#allocation2 + $0x54] sm:$0x1] %v836_v3  ;;  %v1432_v6 = vld [vmem:[#allocation2 + $0x4] sm:$0xf]  ;;  %vm1495_vm5 = vsmask.f32 3328 }
  0x25   : > { %vm1496_vm6 = vsmask.f32 7440  ;;  %v844_v27 = vld [vmem:[#allocation2 + $0x78] sm:$0x1]  ;;  %v841_v31 = vld [vmem:[#allocation2 + $0x6c] sm:$0x1] }
  0x26   : > { %v845_v30 = vsel %vm8315_vm2, 0, %v844_v27  ;;  %vm8404_vm7 = vmor %vm1495_vm5, %vm1496_vm6  ;;  %v842_v34 = vsel %vm8315_vm2, 0, %v841_v31  ;;  %v894_v36 = vld [vmem:[#allocation2 + $0x80] sm:$0x1]  ;;  %v850_v43 = vld [vmem:[#allocation2 + $0x90] sm:$0x1] }
  0x27   : > { %7265 = vmatpush3.bf16.msra.mxu0 %v8003_v7  ;;  %7501 = vmatpush3.bf16.msra.mxu1 %v8030_v52  ;;  %v1499_v7 = vshrl.u32 %v1431_v5, 16  ;;  %v10325_v32 = vsel %vm8404_vm7, 4294967295, %v10324_v32  ;;  %846 = vst [vmem:[#allocation2 + $0x78] sm:$0x1] %v845_v30  ;;  %843 = vst [vmem:[#allocation2 + $0x6c] sm:$0x1] %v842_v34 }
  0x28   : > { %7266 = vmatprep.subr.bf16.mxu0 %v8004_v8  ;;  %7502 = vmatprep.subr.bf16.mxu1 %v8032_v62  ;;  %10326 = vst [vmem:[#allocation3_spill] sm:$0xff] %v10325_v32  ;;  %v895_v38 = vsel %vm8325_vm4, 0, %v894_v36  ;;  %v851_v44 = vsel %vm8315_vm2, 0, %v850_v43  ;;  %v847_v45 = vld [vmem:[#allocation2 + $0x84] sm:$0x1] }
  0x29   : > { %896 = vst [vmem:[#allocation2 + $0x80] sm:$0x1] %v895_v38  ;;  %852 = vst [vmem:[#allocation2 + $0x90] sm:$0x1] %v851_v44  ;;  %v848_v46 = vsel %vm8315_vm2, 0, %v847_v45 }
  0x2a   : > { %v897_v48 = vld [vmem:[#allocation2 + $0x8c] sm:$0x1]  ;;  %849 = vst [vmem:[#allocation2 + $0x84] sm:$0x1] %v848_v46  ;;  %v856_v51 = vld [vmem:[#allocation2 + $0xa8] sm:$0x1] }
  0x2b   : > { %7267 = vmatpush3.bf16.msra.mxu0 %v8004_v8  ;;  %7503 = vmatpush3.bf16.msra.mxu1 %v8032_v62  ;;  %v1502_v8 = vshll.u32 %v1431_v5, 16  ;;  %v857_v52 = vsel %vm8315_vm2, 0, %v856_v51  ;;  %v853_v53 = vld [vmem:[#allocation2 + $0x9c] sm:$0x1]  ;;  %v906_v54 = vld [vmem:[#allocation2 + $0xb0] sm:$0x1] }
  0x2c   : > { %7300 = vmatprep.subr.bf16.mxu0 %v8021_v24  ;;  %7504 = vmatprep.subr.bf16.mxu1 %v8034_v4  ;;  %858 = vst [vmem:[#allocation2 + $0xa8] sm:$0x1] %v857_v52  ;;  %v854_v55 = vsel %vm8315_vm2, 0, %v853_v53  ;;  %v907_v56 = vsel %vm8325_vm4, 0, %v906_v54  ;;  %v903_v57 = vld [vmem:[#allocation2 + $0xa4] sm:$0x1] }
  0x2d   : > { %855 = vst [vmem:[#allocation2 + $0x9c] sm:$0x1] %v854_v55  ;;  %908 = vst [vmem:[#allocation2 + $0xb0] sm:$0x1] %v907_v56  ;;  %v904_v58 = vsel %vm8325_vm4, 0, %v903_v57 }
  0x2e   : > { %7269 = vmatmul.mubr.bf16.vlgmr.msra.gmra.mrb[0].mxu0 %v8006_v9  ;;  %v888_v9 = vld [vmem:[#allocation2 + $0x68] sm:$0x1]  ;;  %905 = vst [vmem:[#allocation2 + $0xa4] sm:$0x1] %v904_v58  ;;  %v8443_v59 = vld [vmem:[%s10295_s2] ss:$0 sm:$0xff] }
  0x2f   : > { %7272 = vmatprep.mubr.bf16.mxu0 %v8007_v10  ;;  %7301 = vmatpush3.bf16.msra.mxu0 %v8021_v24  ;;  %v1508_v10 = vshll.u32 %v1432_v6, 16  ;;  %vm995_vm9 = vsmask.f32 4368  ;;  %v1319_v43 = vld [vmem:[#allocation2 + $0xc] sm:$0xf] }
  0x30   : > { %7302 = vmatprep.subr.bf16.mxu0 %v8023_v40  ;;  %7505 = vmatpush3.bf16.msra.mxu1 %v8034_v4  ;;  %vm8470_vm11 = vmor %vm815_vm1, %vm995_vm9  ;;  %v1323_v55 = vld [vmem:[#allocation2 + $0x14] sm:$0x1] }
  0x33   : > { %7303 = vmatpush3.bf16.msra.mxu0 %v8023_v40  ;;  %v891_v40 = vld [vmem:[#allocation2 + $0x74] sm:$0x1] }
  0x34   : > { %7304 = vmatprep.subr.bf16.mxu0 %v8025_v42  ;;  %v892_v41 = vsel %vm8325_vm4, 0, %v891_v40 }
  0x35   : > { %893 = vst [vmem:[#allocation2 + $0x74] sm:$0x1] %v892_v41 }
  0x36   : > { %7273 = vmatmul.mubr.bf16.gmra.mrb[4].mxu0 %v8008_v11  ;;  %v1512_v11 = vshrl.u32 %v1432_v6, 16 }
  0x37   : > { %7276 = vmatprep.mubr.bf16.mxu0 %v8009_v12  ;;  %7305 = vmatpush3.bf16.msra.mxu0 %v8025_v42  ;;  %v889_v12 = vsel %vm8325_vm4, 0, %v888_v9  ;;  %v8421_v42 = vld [vmem:[%s10297_s4 + $0x140] sm:$0xff]  }
  0x38   : > { %7306 = vmatprep.subr.bf16.mxu0 %v8027_v47  ;;  %890 = vst [vmem:[#allocation2 + $0x68] sm:$0x1] %v889_v12 }
  0x3b   : > { %7307 = vmatpush3.bf16.msra.mxu0 %v8027_v47  ;;  %v900_v47 = vld [vmem:[#allocation2 + $0x98] sm:$0x1] }
  0x3c   : > { %7308 = vmatprep.subr.bf16.mxu0 %v8029_v50  ;;  %v901_v49 = vsel %vm8325_vm4, 0, %v900_v47 }
  0x3d   : > { %902 = vst [vmem:[#allocation2 + $0x98] sm:$0x1] %v901_v49  ;;  %v1330_v49 = vld [vmem:[#allocation2 + $0x20] sm:$0x1] }
  0x3e   : > { %7277 = vmatmul.mubr.bf16.gmra.mrb[8].mxu0 %v8010_v13  ;;  %v885_v13 = vld [vmem:[#allocation2 + $0x5c] sm:$0x1] }
  0x3f   : > { %7280 = vmatprep.mubr.bf16.mxu0 %v8011_v14  ;;  %7309 = vmatpush3.bf16.msra.mxu0 %v8029_v50  ;;  %v1479_v14 = vld [vmem:[#allocation2 + $0x8] sm:$0x1]  ;;  %v898_v50 = vsel %vm8325_vm4, 0, %v897_v48 }
  0x40   : > { %7310 = vmatprep.subr.bf16.mxu0 %v8031_v61  ;;  %899 = vst [vmem:[#allocation2 + $0x8c] sm:$0x1] %v898_v50 }
  0x43   : > { %7311 = vmatpush3.bf16.msra.mxu0 %v8031_v61  ;;  %v8448_v61 = vld [vmem:[%s10296_s3] ss:$0 sm:$0xff] }
  0x44   : > { %7312 = vmatprep.subr.bf16.mxu0 %v8033_v2 }
  0x46   : > { %7281 = vmatmul.mubr.bf16.gmra.mrb[12].mxu0 %v8012_v15  ;;  %v1501_v15 = vrot.slane %v1499_v7, 4 }
  0x47   : > { %7284 = vmatprep.mubr.bf16.mxu0 %v8013_v16  ;;  %7313 = vmatpush3.bf16.msra.mxu0 %v8033_v2  ;;  %v886_v16 = vsel %vm8325_vm4, 0, %v885_v13 }
  0x48   : > { %887 = vst [vmem:[#allocation2 + $0x5c] sm:$0x1] %v886_v16 }
  0x4e   : > { %7285 = vmatmul.mubr.bf16.gmra.mrb[16].mxu0 %v8014_v17  ;;  %v1504_v17 = vrot.slane %v1502_v8, 5 }
  0x4f   : > { %7288 = vmatprep.mubr.bf16.mxu0 %v8015_v18  ;;  %v8035_v18 = vld [vmem:[%s10297_s4 + $0x78] sm:$0xff]  }
  0x50   : > { %7314 = vmatprep.subr.bf16.mxu0 %v8035_v18 }
  0x51   : > { %7315 = vmatpush3.bf16.msra.mxu0 %v8035_v18 }
  0x56   : > { %7289 = vmatmul.mubr.bf16.gmra.mrb[20].mxu0 %v8016_v19  ;;  %v1510_v19 = vrot.slane %v1508_v10, 5 }
  0x57   : > { %7292 = vmatprep.mubr.bf16.mxu0 %v8017_v20  ;;  %v1514_v20 = vrot.slane %v1512_v11, 4 }
  0x59   : > { %v1515_v24 = vor.u32 %v1514_v20, %v1510_v19 }
  0x5b   : > { %v1516_v33 = vrot.slane %v1515_v24, 4 }
  0x5e   : > { %7293 = vmatmul.mubr.bf16.gmra.mrb[24].mxu0 %v8018_v21  ;;  %v1518_v21 = vshll.u32 %v1479_v14, 16 }
  0x5f   : > { %7296 = vmatprep.mubr.bf16.mxu0 %v8019_v22  ;;  %v8036_v22 = vld [vmem:[%s10297_s4 + $0x138] sm:$0xff]  }
  0x60   : > { %v1520_v26 = vrot.slane %v1518_v21, 5  ;;  %7506 = vmatprep.subr.bf16.mxu1 %v8036_v22 }
  0x61   : > { %7507 = vmatpush3.bf16.msra.mxu1 %v8036_v22 }
  0x62   : > { %v1521_v37 = vsel %vm8404_vm7, %v1516_v33, %v1520_v26  ;;  %7540 = vmatprep.subr.bf16.mxu1 %v8421_v42 }
  0x66   : > { %7297 = vmatmul.mubr.bf16.gmra.mrb[28].mxu0 %v8020_v23  ;;  %v1505_v23 = vor.u32 %v1504_v17, %v1501_v15 }
  0x68   : > { %v1506_v28 = vrot.slane %v1505_v23, 4 }
  0x6a   : > { %v1511_v35 = vsel %vm8404_vm7, %v1506_v28, %v1510_v19 }
  0x6b   : > { %v6597_v39 = vcombine.low %v1511_v35, %v1521_v37  ;;  %v1326_v35 = vld [vmem:[#allocation2 + $0x18] sm:$0xf] }
  0x6d   : > { %7316 = vmatprep.mubr.bf16.mxu0 %v6597_v39 }
 0x101   : > { %v7270_v60 = vpop.f32.mrb[0].mxu0 }
 0x102   : > { %v689_v62 = vmul.f32 %v7270_v60, %v8443_v59  ;;  %v553_v63 = vpop.f32.mrb[1].mxu0 }
 0x103   : > { %v687_v0 = vmul.f32 %v8443_v59, %v553_v63  ;;  %v7271_v1 = vpop.f32.mrb[2].mxu0 }
 0x104   : > { %v728_v2 = vadd.f32 %v8448_v61, %v689_v62  ;;  %v690_v3 = vmul.f32 %v7271_v1, %v8443_v59  ;;  %v556_v4 = vpop.f32.mrb[3].mxu0 }
 0x105   : > { %v726_v5 = vadd.f32 %v8448_v61, %v687_v0  ;;  %v688_v6 = vmul.f32 %v8443_v59, %v556_v4 }
 0x106   : > { %v760_v7 = vmax.f32 %v728_v2, 0.0  ;;  %v729_v8 = vadd.f32 %v8448_v61, %v690_v3 }
 0x107   : > { %v758_v9 = vmax.f32 %v726_v5, 0.0  ;;  %v727_v10 = vadd.f32 %v8448_v61, %v688_v6 }
 0x108   : > { %v6982_v11 = vpack.c.bf16 %v760_v7, %v760_v7  ;;  %v761_v12 = vmax.f32 %v729_v8, 0.0 }
 0x109   : > { %v6980_v13 = vpack.c.bf16 %v758_v9, %v758_v9  ;;  %v759_v14 = vmax.f32 %v727_v10, 0.0  ;;  %v7274_v15 = vpop.f32.mrb[4].mxu0 }
 0x10a   : > { %v1015_v16 = vshrl.u32 %v6982_v11, 16  ;;  %v1018_v17 = vshll.u32 %v6982_v11, 16  ;;  %v6983_v18 = vpack.c.bf16 %v761_v12, %v761_v12  ;;  %v693_v19 = vmul.f32 %v7274_v15, %v8443_v59  ;;  %v569_v20 = vpop.f32.mrb[5].mxu0  ;;  %v1340_v15 = vld [vmem:[#allocation2 + $0x30] sm:$0xf] }
 0x10b   : > { %v998_v21 = vshrl.u32 %v6980_v13, 16  ;;  %v1001_v22 = vshll.u32 %v6980_v13, 16  ;;  %v6981_v23 = vpack.c.bf16 %v759_v14, %v759_v14  ;;  %v691_v24 = vmul.f32 %v8443_v59, %v569_v20  ;;  %v7275_v26 = vpop.f32.mrb[6].mxu0 }
 0x10c   : > { %v1017_v27 = vrot.slane %v1015_v16, 7  ;;  %v1023_v28 = vshrl.u32 %v6983_v18, 16  ;;  %v1026_v30 = vshll.u32 %v6983_v18, 16  ;;  %v732_v31 = vadd.f32 %v8448_v61, %v693_v19  ;;  %v572_v33 = vpop.f32.mrb[7].mxu0 }
 0x10d   : > { %v1000_v36 = vrot.slane %v998_v21, 7  ;;  %v1006_v37 = vshrl.u32 %v6981_v23, 16  ;;  %v1009_v38 = vshll.u32 %v6981_v23, 16  ;;  %v730_v39 = vadd.f32 %v8448_v61, %v691_v24 }
 0x10e   : > { %v1020_v40 = vor.u32 %v1018_v17, %v1017_v27  ;;  %v1021_v41 = vrot.slane %v1017_v27, 4  ;;  %v1025_v44 = vrot.slane %v1023_v28, 7  ;;  %v764_v45 = vmax.f32 %v732_v31, 0.0 }
 0x10f   : > { %v1003_v46 = vor.u32 %v1001_v22, %v1000_v36  ;;  %v1004_v47 = vrot.slane %v1000_v36, 4  ;;  %v1008_v50 = vrot.slane %v1006_v37, 7  ;;  %v762_v51 = vmax.f32 %v730_v39, 0.0  ;;  %v1333_v22 = vld [vmem:[#allocation2 + $0x24] sm:$0xf] }
 0x110   : > { %v1327_v52 = vsel %vm8463_vm10, %v1020_v40, %v1326_v35  ;;  %v1028_v53 = vor.u32 %v1026_v30, %v1025_v44  ;;  %v1030_v54 = vrot.slane %v1025_v44, 4  ;;  %v6986_v56 = vpack.c.bf16 %v764_v45, %v764_v45 }
 0x111   : > { %1328 = vst [vmem:[#allocation2 + $0x18] sm:$0xf] %v1327_v52  ;;  %v1320_v57 = vsel %vm8463_vm10, %v1003_v46, %v1319_v43  ;;  %v1011_v58 = vor.u32 %v1009_v38, %v1008_v50  ;;  %v1013_v60 = vrot.slane %v1008_v50, 4  ;;  %v6984_v62 = vpack.c.bf16 %v762_v51, %v762_v51  ;;  %v7278_v63 = vpop.f32.mrb[8].mxu0 }
 0x112   : > { %1321 = vst [vmem:[#allocation2 + $0xc] sm:$0xf] %v1320_v57  ;;  %v1029_v0 = vsel %vm8470_vm11, %v1021_v41, %v1028_v53  ;;  %v1331_v1 = vsel %vm8315_vm2, %v1030_v54, %v1330_v49  ;;  %v1049_v2 = vshrl.u32 %v6986_v56, 16  ;;  %v1052_v3 = vshll.u32 %v6986_v56, 16  ;;  %v585_v4 = vpop.f32.mrb[9].mxu0 }
 0x113   : > { %1329 = vst [vmem:[#allocation2 + $0x1c] sm:$0xf] %v1029_v0  ;;  %1332 = vst [vmem:[#allocation2 + $0x20] sm:$0x1] %v1331_v1  ;;  %v1012_v5 = vsel %vm8470_vm11, %v1004_v47, %v1011_v58  ;;  %v1324_v6 = vsel %vm8315_vm2, %v1013_v60, %v1323_v55  ;;  %v1032_v7 = vshrl.u32 %v6984_v62, 16  ;;  %v1035_v8 = vshll.u32 %v6984_v62, 16 }
 0x114   : > { %v7279_v9 = vpop.f32.mrb[10].mxu0  ;;  %1322 = vst [vmem:[#allocation2 + $0x10] sm:$0xf] %v1012_v5  ;;  %1325 = vst [vmem:[#allocation2 + $0x14] sm:$0x1] %v1324_v6  ;;  %v8486_v10 = vrot.slane %v1049_v2, 7  ;;  %v694_v11 = vmul.f32 %v7275_v26, %v8443_v59  ;;  %v692_v12 = vmul.f32 %v8443_v59, %v572_v33  ;;  %v697_v13 = vmul.f32 %v7278_v63, %v8443_v59 }
 0x115   : > { %v588_v14 = vpop.f32.mrb[11].mxu0  ;;  %v8491_v16 = vrot.slane %v1032_v7, 7  ;;  %v695_v17 = vmul.f32 %v8443_v59, %v585_v4  ;;  %v698_v18 = vmul.f32 %v7279_v9, %v8443_v59  ;;  %v1344_v5 = vld [vmem:[#allocation2 + $0x38] sm:$0x1]  ;;  %v1337_v6 = vld [vmem:[#allocation2 + $0x2c] sm:$0x1] }
 0x116   : > { %v696_v19 = vmul.f32 %v8443_v59, %v588_v14  ;;  %v1054_v20 = vor.u32 %v1052_v3, %v8486_v10  ;;  %v1055_v21 = vrot.slane %v8486_v10, 4  ;;  %v733_v23 = vadd.f32 %v8448_v61, %v694_v11 }
 0x117   : > { %v731_v24 = vadd.f32 %v8448_v61, %v692_v12  ;;  %v1037_v26 = vor.u32 %v1035_v8, %v8491_v16  ;;  %v1038_v27 = vrot.slane %v8491_v16, 4  ;;  %v736_v28 = vadd.f32 %v8448_v61, %v697_v13  ;;  %v1347_v16 = vld [vmem:[#allocation2 + $0x3c] sm:$0xf] }
 0x118   : > { %v734_v30 = vadd.f32 %v8448_v61, %v695_v17  ;;  %v1341_v31 = vsel %vm8463_vm10, %v1054_v20, %v1340_v15  ;;  %v765_v33 = vmax.f32 %v733_v23, 0.0  ;;  %v737_v36 = vadd.f32 %v8448_v61, %v698_v18  ;;  %v1354_v15 = vld [vmem:[#allocation2 + $0x48] sm:$0xf] }
 0x119   : > { %v763_v35 = vmax.f32 %v731_v24, 0.0  ;;  %1342 = vst [vmem:[#allocation2 + $0x30] sm:$0xf] %v1341_v31  ;;  %v1334_v37 = vsel %vm8463_vm10, %v1037_v26, %v1333_v22  ;;  %v768_v38 = vmax.f32 %v736_v28, 0.0  ;;  %v735_v40 = vadd.f32 %v8448_v61, %v696_v19  ;;  %v7282_v41 = vpop.f32.mrb[12].mxu0 }
 0x11a   : > { %v766_v39 = vmax.f32 %v734_v30, 0.0  ;;  %1335 = vst [vmem:[#allocation2 + $0x24] sm:$0xf] %v1334_v37  ;;  %v6987_v43 = vpack.c.bf16 %v765_v33, %v765_v33  ;;  %v769_v45 = vmax.f32 %v737_v36, 0.0  ;;  %v701_v46 = vmul.f32 %v7282_v41, %v8443_v59  ;;  %v601_v47 = vpop.f32.mrb[13].mxu0 }
 0x11b   : > { %v6985_v44 = vpack.c.bf16 %v763_v35, %v763_v35  ;;  %v6990_v49 = vpack.c.bf16 %v768_v38, %v768_v38  ;;  %v767_v51 = vmax.f32 %v735_v40, 0.0  ;;  %v699_v52 = vmul.f32 %v8443_v59, %v601_v47  ;;  %v7283_v53 = vpop.f32.mrb[14].mxu0 }
 0x11c   : > { %v6988_v50 = vpack.c.bf16 %v766_v39, %v766_v39  ;;  %v1057_v54 = vshrl.u32 %v6987_v43, 16  ;;  %v1060_v55 = vshll.u32 %v6987_v43, 16  ;;  %v604_v58 = vpop.f32.mrb[15].mxu0  ;;  %v6991_v3 = vpack.c.bf16 %v769_v45, %v769_v45 }
 0x11d   : > { %v1040_v56 = vshrl.u32 %v6985_v44, 16  ;;  %v1043_v57 = vshll.u32 %v6985_v44, 16  ;;  %v1083_v60 = vshrl.u32 %v6990_v49, 16  ;;  %v1086_v62 = vshll.u32 %v6990_v49, 16  ;;  %v1351_v44 = vld [vmem:[#allocation2 + $0x44] sm:$0x1] }
 0x11e   : > { %v1066_v63 = vshrl.u32 %v6988_v50, 16  ;;  %v1069_v0 = vshll.u32 %v6988_v50, 16  ;;  %v1059_v1 = vrot.slane %v1057_v54, 7  ;;  %v6989_v4 = vpack.c.bf16 %v767_v51, %v767_v51 }
 0x11f   : > { %v1042_v2 = vrot.slane %v1040_v56, 7  ;;  %v1085_v7 = vrot.slane %v1083_v60, 7  ;;  %v740_v9 = vadd.f32 %v8448_v61, %v701_v46  ;;  %v738_v10 = vadd.f32 %v8448_v61, %v699_v52 }
 0x120   : > { %v1068_v8 = vrot.slane %v1066_v63, 7  ;;  %v1062_v11 = vor.u32 %v1060_v55, %v1059_v1  ;;  %v1064_v12 = vrot.slane %v1059_v1, 4  ;;  %v1091_v33 = vshrl.u32 %v6991_v3, 16 }
 0x121   : > { %v1045_v13 = vor.u32 %v1043_v57, %v1042_v2  ;;  %v1047_v14 = vrot.slane %v1042_v2, 4  ;;  %v1088_v17 = vor.u32 %v1086_v62, %v1085_v7  ;;  %v1089_v18 = vrot.slane %v1085_v7, 4  ;;  %v7286_v22 = vpop.f32.mrb[16].mxu0 }
 0x122   : > { %v1071_v19 = vor.u32 %v1069_v0, %v1068_v8  ;;  %v1072_v20 = vrot.slane %v1068_v8, 4  ;;  %v1063_v23 = vsel %vm8470_vm11, %v1055_v21, %v1062_v11  ;;  %v1345_v24 = vsel %vm8315_vm2, %v1064_v12, %v1344_v5  ;;  %v617_v30 = vpop.f32.mrb[17].mxu0 }
 0x123   : > { %v1046_v26 = vsel %vm8470_vm11, %v1038_v27, %v1045_v13  ;;  %v1338_v28 = vsel %vm8315_vm2, %v1047_v14, %v1337_v6  ;;  %1343 = vst [vmem:[#allocation2 + $0x34] sm:$0xf] %v1063_v23  ;;  %1346 = vst [vmem:[#allocation2 + $0x38] sm:$0x1] %v1345_v24  ;;  %v1355_v31 = vsel %vm8463_vm10, %v1088_v17, %v1354_v15  ;;  %v1094_v35 = vshll.u32 %v6991_v3, 16  ;;  %v7287_v36 = vpop.f32.mrb[18].mxu0 }
 0x124   : > { %1336 = vst [vmem:[#allocation2 + $0x28] sm:$0xf] %v1046_v26  ;;  %1339 = vst [vmem:[#allocation2 + $0x2c] sm:$0x1] %v1338_v28  ;;  %v1348_v21 = vsel %vm8463_vm10, %v1071_v19, %v1347_v16  ;;  %v1358_v27 = vld [vmem:[#allocation2 + $0x50] sm:$0x1]  ;;  %v702_v45 = vmul.f32 %v7283_v53, %v8443_v59  ;;  %v700_v46 = vmul.f32 %v8443_v59, %v604_v58 }
 0x125   : > { %1356 = vst [vmem:[#allocation2 + $0x48] sm:$0xf] %v1355_v31  ;;  %1349 = vst [vmem:[#allocation2 + $0x3c] sm:$0xf] %v1348_v21  ;;  %v1074_v37 = vshrl.u32 %v6989_v4, 16  ;;  %v1077_v38 = vshll.u32 %v6989_v4, 16  ;;  %v705_v47 = vmul.f32 %v7286_v22, %v8443_v59  ;;  %v703_v52 = vmul.f32 %v8443_v59, %v617_v30 }
 0x126   : > { %v772_v39 = vmax.f32 %v740_v9, 0.0  ;;  %v770_v40 = vmax.f32 %v738_v10, 0.0  ;;  %v8526_v41 = vpop.f32.mrb[19].mxu0  ;;  %v1093_v43 = vrot.slane %v1091_v33, 7  ;;  %v741_v56 = vadd.f32 %v8448_v61, %v702_v45  ;;  %v1368_v9 = vld [vmem:[#allocation2 + $0x60] sm:$0xf] }
 0x127   : > { %v1076_v49 = vrot.slane %v1074_v37, 7  ;;  %v739_v57 = vadd.f32 %v8448_v61, %v700_v46  ;;  %v744_v12 = vadd.f32 %v8448_v61, %v705_v47  ;;  %v742_v13 = vadd.f32 %v8448_v61, %v703_v52  ;;  %v8553_v15 = vld [vmem:[%s10297_s4] sm:$0xff]  }
 0x128   : > { %v6994_v50 = vpack.c.bf16 %v772_v39, %v772_v39  ;;  %v6992_v51 = vpack.c.bf16 %v770_v40, %v770_v40  ;;  %v1096_v54 = vor.u32 %v1094_v35, %v1093_v43  ;;  %v1098_v55 = vrot.slane %v1093_v43, 4  ;;  %7348 = vmatprep.subr.bf16.mxu0 %v8553_v15  ;;  %v1433_v35 = vld [vmem:[#allocation2 + $0xc] sm:$0xf]  ;;  %v1372_v40 = vld [vmem:[#allocation2 + $0x68] sm:$0x1] }
 0x129   : > { %v1079_v60 = vor.u32 %v1077_v38, %v1076_v49  ;;  %v1081_v62 = vrot.slane %v1076_v49, 4  ;;  %v8538_v3 = vpop.f32.mrb[20].mxu0  ;;  %v773_v7 = vmax.f32 %v741_v56, 0.0  ;;  %v771_v11 = vmax.f32 %v739_v57, 0.0 }
 0x12a   : > { %v1117_v63 = vshrl.u32 %v6994_v50, 16  ;;  %v1120_v0 = vshll.u32 %v6994_v50, 16  ;;  %v1097_v53 = vsel %vm8470_vm11, %v1089_v18, %v1096_v54  ;;  %v1359_v58 = vsel %vm8315_vm2, %v1098_v55, %v1358_v27  ;;  %v8544_v8 = vpop.f32.mrb[21].mxu0  ;;  %v1361_v18 = vld [vmem:[#allocation2 + $0x54] sm:$0xf] }
 0x12b   : > { %v1100_v1 = vshrl.u32 %v6992_v51, 16  ;;  %v1103_v2 = vshll.u32 %v6992_v51, 16  ;;  %1357 = vst [vmem:[#allocation2 + $0x4c] sm:$0xf] %v1097_v53  ;;  %1360 = vst [vmem:[#allocation2 + $0x50] sm:$0x1] %v1359_v58  ;;  %v1080_v4 = vsel %vm8470_vm11, %v1072_v20, %v1079_v60  ;;  %v1352_v5 = vsel %vm8315_vm2, %v1081_v62, %v1351_v44 }
 0x12c   : > { %v1119_v6 = vrot.slane %v1117_v63, 7  ;;  %1350 = vst [vmem:[#allocation2 + $0x40] sm:$0xf] %v1080_v4  ;;  %1353 = vst [vmem:[#allocation2 + $0x44] sm:$0x1] %v1352_v5  ;;  %v8548_v14 = vpop.f32.mrb[22].mxu0  ;;  %v6995_v19 = vpack.c.bf16 %v773_v7, %v773_v7  ;;  %v706_v20 = vmul.f32 %v7287_v36, %v8443_v59  ;;  %v6993_v26 = vpack.c.bf16 %v771_v11, %v771_v11 }
 0x12d   : > { %v1102_v10 = vrot.slane %v1100_v1, 7  ;;  %v8556_v22 = vpop.f32.mrb[23].mxu0  ;;  %v776_v28 = vmax.f32 %v744_v12, 0.0  ;;  %v774_v33 = vmax.f32 %v742_v13, 0.0  ;;  %v704_v45 = vmul.f32 %v8443_v59, %v8526_v41  ;;  %v1365_v55 = vld [vmem:[#allocation2 + $0x5c] sm:$0x1] }
 0x12e   : > { %v1122_v16 = vor.u32 %v1120_v0, %v1119_v6  ;;  %v1123_v17 = vrot.slane %v1119_v6, 4  ;;  %v1125_v31 = vshrl.u32 %v6995_v19, 16  ;;  %v1128_v21 = vshll.u32 %v6995_v19, 16  ;;  %v1434_v6 = vld [vmem:[#allocation2 + $0x10] sm:$0xf] }
 0x12f   : > { %v1105_v23 = vor.u32 %v1103_v2, %v1102_v10  ;;  %v1106_v24 = vrot.slane %v1102_v10, 4  ;;  %v1108_v36 = vshrl.u32 %v6993_v26, 16  ;;  %v1111_v37 = vshll.u32 %v6993_v26, 16  ;;  %v1382_v2 = vld [vmem:[#allocation2 + $0x78] sm:$0xf] }
 0x130   : > { %v1369_v30 = vsel %vm8463_vm10, %v1122_v16, %v1368_v9  ;;  %v6998_v38 = vpack.c.bf16 %v776_v28, %v776_v28  ;;  %v1127_v39 = vrot.slane %v1125_v31, 7  ;;  %v6996_v43 = vpack.c.bf16 %v774_v33, %v774_v33  ;;  %v1375_v12 = vld [vmem:[#allocation2 + $0x6c] sm:$0xf] }
 0x131   : > { %1370 = vst [vmem:[#allocation2 + $0x60] sm:$0xf] %v1369_v30  ;;  %v1362_v27 = vsel %vm8463_vm10, %v1105_v23, %v1361_v18  ;;  %v745_v44 = vadd.f32 %v8448_v61, %v706_v20  ;;  %v1110_v46 = vrot.slane %v1108_v36, 7  ;;  %v1523_v50 = vshrl.u32 %v1433_v35, 16  ;;  %v8566_v51 = vpop.f32.mrb[24].mxu0 }
 0x132   : > { %1363 = vst [vmem:[#allocation2 + $0x54] sm:$0xf] %v1362_v27  ;;  %v1151_v47 = vshrl.u32 %v6998_v38, 16  ;;  %v1154_v49 = vshll.u32 %v6998_v38, 16  ;;  %v1130_v52 = vor.u32 %v1128_v21, %v1127_v39  ;;  %v1132_v54 = vrot.slane %v1127_v39, 4  ;;  %v8568_v60 = vpop.f32.mrb[25].mxu0 }
 0x133   : > { %v1134_v56 = vshrl.u32 %v6996_v43, 16  ;;  %v1137_v57 = vshll.u32 %v6996_v43, 16  ;;  %v1113_v62 = vor.u32 %v1111_v37, %v1110_v46  ;;  %v1115_v63 = vrot.slane %v1110_v46, 4  ;;  %v8572_v58 = vpop.f32.mrb[26].mxu0  ;;  %v3348_v19 = vld [vmem:[#allocation2 + $0xc] sm:$0xf] }
 0x134   : > { %v8570_v0 = vrot.slane %v1151_v47, 7  ;;  %v777_v53 = vmax.f32 %v745_v44, 0.0  ;;  %v1131_v41 = vsel %vm8470_vm11, %v1123_v17, %v1130_v52  ;;  %v1373_v1 = vsel %vm8315_vm2, %v1132_v54, %v1372_v40  ;;  %v8581_v7 = vpop.f32.mrb[27].mxu0  ;;  %v1480_v23 = vld [vmem:[#allocation2 + $0x14] sm:$0x1] }
 0x135   : > { %v8578_v4 = vrot.slane %v1134_v56, 7  ;;  %v743_v5 = vadd.f32 %v8448_v61, %v704_v45  ;;  %1371 = vst [vmem:[#allocation2 + $0x64] sm:$0xf] %v1131_v41  ;;  %1374 = vst [vmem:[#allocation2 + $0x68] sm:$0x1] %v1373_v1  ;;  %v1114_v9 = vsel %vm8470_vm11, %v1106_v24, %v1113_v62  ;;  %v1366_v10 = vsel %vm8315_vm2, %v1115_v63, %v1365_v55 }
 0x136   : > { %v1156_v11 = vor.u32 %v1154_v49, %v8570_v0  ;;  %1364 = vst [vmem:[#allocation2 + $0x58] sm:$0xf] %v1114_v9  ;;  %1367 = vst [vmem:[#allocation2 + $0x5c] sm:$0x1] %v1366_v10  ;;  %v1157_v13 = vrot.slane %v8570_v0, 4  ;;  %v6999_v17 = vpack.c.bf16 %v777_v53, %v777_v53  ;;  %v1525_v24 = vrot.slane %v1523_v50, 4 }
 0x137   : > { %v1139_v16 = vor.u32 %v1137_v57, %v8578_v4  ;;  %v775_v18 = vmax.f32 %v743_v5, 0.0  ;;  %v1526_v26 = vshll.u32 %v1433_v35, 16  ;;  %v1532_v28 = vshll.u32 %v1434_v6, 16  ;;  %v3349_v27 = vld [vmem:[#allocation2 + $0x10] sm:$0xf] }
 0x138   : > { %v1383_v20 = vsel %vm8463_vm10, %v1156_v11, %v1382_v2  ;;  %v1140_v30 = vrot.slane %v8578_v4, 4  ;;  %v1159_v21 = vshrl.u32 %v6999_v17, 16  ;;  %v1162_v36 = vshll.u32 %v6999_v17, 16  ;;  %v1386_v47 = vld [vmem:[#allocation2 + $0x80] sm:$0x1] }
 0x139   : > { %1384 = vst [vmem:[#allocation2 + $0x78] sm:$0xf] %v1383_v20  ;;  %v1376_v31 = vsel %vm8463_vm10, %v1139_v16, %v1375_v12  ;;  %v6997_v33 = vpack.c.bf16 %v775_v18, %v775_v18  ;;  %v1528_v37 = vrot.slane %v1526_v26, 5  ;;  %v1534_v38 = vrot.slane %v1532_v28, 5  ;;  %v8595_v40 = vpop.f32.mrb[28].mxu0 }
 0x13a   : > { %1377 = vst [vmem:[#allocation2 + $0x6c] sm:$0xf] %v1376_v31  ;;  %v1536_v39 = vshrl.u32 %v1434_v6, 16  ;;  %v1161_v43 = vrot.slane %v1159_v21, 7  ;;  %v1542_v35 = vshll.u32 %v1480_v23, 16  ;;  %v3397_v45 = vshrl.u32 %v3348_v19, 16 }
 0x13b   : > { %v1142_v44 = vshrl.u32 %v6997_v33, 16  ;;  %v8597_v46 = vpop.f32.mrb[29].mxu0  ;;  %v1145_v49 = vshll.u32 %v6997_v33, 16  ;;  %v1529_v50 = vor.u32 %v1528_v37, %v1525_v24  ;;  %v3400_v54 = vshll.u32 %v3348_v19, 16  ;;  %v1379_v63 = vld [vmem:[#allocation2 + $0x74] sm:$0x1] }
 0x13c   : > { %v1538_v52 = vrot.slane %v1536_v39, 4  ;;  %v8599_v55 = vpop.f32.mrb[30].mxu0  ;;  %v1164_v56 = vor.u32 %v1162_v36, %v1161_v43  ;;  %v1166_v57 = vrot.slane %v1161_v43, 4  ;;  %v3399_v0 = vrot.slane %v3397_v45, 4  ;;  %v3350_v2 = vld [vmem:[#allocation2 + $0x14] sm:$0x1] }
 0x13d   : > { %v1144_v62 = vrot.slane %v1142_v44, 7  ;;  %v8601_v53 = vpop.f32.mrb[31].mxu0  ;;  %v1530_v41 = vrot.slane %v1529_v50, 4  ;;  %v3402_v4 = vrot.slane %v3400_v54, 5  ;;  %v3406_v5 = vshll.u32 %v3349_v27, 16 }
 0x13e   : > { %v1539_v1 = vor.u32 %v1538_v52, %v1534_v38  ;;  %v1165_v6 = vsel %vm8470_vm11, %v1157_v13, %v1164_v56  ;;  %v1387_v9 = vsel %vm8315_vm2, %v1166_v57, %v1386_v47  ;;  %v1435_v12 = vld [vmem:[#allocation2 + $0x18] sm:$0xf]  ;;  %v1544_v17 = vrot.slane %v1542_v35, 5  ;;  %v1436_v26 = vld [vmem:[#allocation2 + $0x1c] sm:$0xf] }
 0x13f   : > { %v1147_v10 = vor.u32 %v1145_v49, %v1144_v62  ;;  %v1149_v11 = vrot.slane %v1144_v62, 4  ;;  %1385 = vst [vmem:[#allocation2 + $0x7c] sm:$0xf] %v1165_v6  ;;  %1388 = vst [vmem:[#allocation2 + $0x80] sm:$0x1] %v1387_v9  ;;  %v3403_v18 = vor.u32 %v3402_v4, %v3399_v0  ;;  %v3408_v19 = vrot.slane %v3406_v5, 5 }
 0x140   : > { %v1540_v16 = vrot.slane %v1539_v1, 4  ;;  %v3410_v24 = vshrl.u32 %v3349_v27, 16  ;;  %v3416_v13 = vshll.u32 %v3350_v2, 16  ;;  %v1535_v28 = vsel %vm8404_vm7, %v1530_v41, %v1534_v38  ;;  %v1481_v21 = vld [vmem:[#allocation2 + $0x20] sm:$0x1]  ;;  %v8043_v27 = vld [vmem:[%s10297_s4 + $0x8] sm:$0xff]  }
 0x141   : > { %v1148_v20 = vsel %vm8470_vm11, %v1140_v30, %v1147_v10  ;;  %v1380_v23 = vsel %vm8315_vm2, %v1149_v11, %v1379_v63  ;;  %v1547_v33 = vshrl.u32 %v1435_v12, 16  ;;  %v3351_v36 = vld [vmem:[#allocation2 + $0x18] sm:$0xf]  ;;  %v3404_v39 = vrot.slane %v3403_v18, 4  ;;  %v3352_v44 = vld [vmem:[#allocation2 + $0x1c] sm:$0xf] }
 0x142   : > { %1378 = vst [vmem:[#allocation2 + $0x70] sm:$0xf] %v1148_v20  ;;  %1381 = vst [vmem:[#allocation2 + $0x74] sm:$0x1] %v1380_v23  ;;  %v1545_v31 = vsel %vm8404_vm7, %v1540_v16, %v1544_v17  ;;  %v3412_v30 = vrot.slane %v3410_v24, 4  ;;  %v1550_v43 = vshll.u32 %v1435_v12, 16 }
 0x143   : > { %v6598_v37 = vcombine.low %v1535_v28, %v1545_v31  ;;  %v3418_v35 = vrot.slane %v3416_v13, 5  ;;  %v1549_v45 = vrot.slane %v1547_v33, 4  ;;  %v1556_v47 = vshll.u32 %v1436_v26, 16  ;;  %v3353_v62 = vld [vmem:[#allocation2 + $0x20] sm:$0x1]  ;;  %v8044_v5 = vld [vmem:[%s10297_s4 + $0x10] sm:$0xff]  }
 0x144   : > { %v1560_v49 = vshrl.u32 %v1436_v26, 16  ;;  %v3413_v38 = vor.u32 %v3412_v30, %v3408_v19  ;;  %v1552_v50 = vrot.slane %v1550_v43, 5  ;;  %v1566_v52 = vshll.u32 %v1481_v21, 16  ;;  %v1437_v26 = vld [vmem:[#allocation2 + $0x24] sm:$0xf]  ;;  %v8046_v28 = vld [vmem:[%s10297_s4 + $0x18] sm:$0xff]  }
 0x145   : > { %7317 = vmatmul.mubr.bf16.vlgmr.msra.gmra.mrb[32].mxu0 %v6598_v37  ;;  %v3421_v54 = vshrl.u32 %v3351_v36, 16  ;;  %v1558_v56 = vrot.slane %v1556_v47, 5  ;;  %v3424_v63 = vshll.u32 %v3351_v36, 16  ;;  %v3430_v0 = vshll.u32 %v3352_v44, 16  ;;  %v1438_v37 = vld [vmem:[#allocation2 + $0x28] sm:$0xf] }
 0x146   : > { %v1562_v57 = vrot.slane %v1560_v49, 4  ;;  %7349 = vmatpush3.bf16.msra.mxu0 %v8553_v15  ;;  %v3409_v41 = vsel %vm8404_vm7, %v3404_v39, %v3408_v19  ;;  %v3414_v1 = vrot.slane %v3413_v38, 4  ;;  %v1553_v2 = vor.u32 %v1552_v50, %v1549_v45  ;;  %v1482_v47 = vld [vmem:[#allocation2 + $0x2c] sm:$0x1] }
 0x147   : > { %v3423_v4 = vrot.slane %v3421_v54, 4  ;;  %7350 = vmatprep.subr.bf16.mxu0 %v8043_v27  ;;  %v3426_v9 = vrot.slane %v3424_v63, 5  ;;  %v3432_v10 = vrot.slane %v3430_v0, 5  ;;  %v3434_v11 = vshrl.u32 %v3352_v44, 16 }
 0x148   : > { %v1563_v6 = vor.u32 %v1562_v57, %v1558_v56  ;;  %v3419_v12 = vsel %vm8404_vm7, %v3414_v1, %v3418_v35  ;;  %v1554_v16 = vrot.slane %v1553_v2, 4  ;;  %v1568_v15 = vrot.slane %v1566_v52, 5 }
 0x149   : > { %v3440_v17 = vshll.u32 %v3353_v62, 16  ;;  %v6757_v18 = vcombine.low %v3409_v41, %v3419_v12  ;;  %v3427_v20 = vor.u32 %v3426_v9, %v3423_v4  ;;  %v3436_v23 = vrot.slane %v3434_v11, 4 }
 0x14a   : > { %v1564_v19 = vrot.slane %v1563_v6, 4  ;;  %7351 = vmatpush3.bf16.msra.mxu0 %v8043_v27  ;;  %v1559_v24 = vsel %vm8404_vm7, %v1554_v16, %v1558_v56  ;;  %v709_v36 = vmul.f32 %v8538_v3, %v8443_v59  ;;  %v707_v30 = vmul.f32 %v8443_v59, %v8544_v8 }
 0x14b   : > { %v3442_v13 = vrot.slane %v3440_v17, 5  ;;  %7352 = vmatprep.subr.bf16.mxu0 %v8044_v5  ;;  %7508 = vmatprep.mubr.bf16.mxu1 %v6757_v18  ;;  %v3428_v21 = vrot.slane %v3427_v20, 4  ;;  %v3437_v33 = vor.u32 %v3436_v23, %v3432_v10  ;;  %v710_v43 = vmul.f32 %v8548_v14, %v8443_v59  ;;  %v1396_v17 = vld [vmem:[#allocation2 + $0x90] sm:$0xf] }
 0x14c   : > { %v1569_v31 = vsel %vm8404_vm7, %v1564_v19, %v1568_v15  ;;  %v708_v44 = vmul.f32 %v8443_v59, %v8556_v22  ;;  %v748_v45 = vadd.f32 %v8448_v61, %v709_v36  ;;  %v1571_v49 = vshrl.u32 %v1437_v26, 16  ;;  %v8047_v59 = vld [vmem:[%s10297_s4 + $0x20] sm:$0xff]   ;;  %v8039_v15 = vld [vmem:[%s10297_s4 + $0x150] sm:$0xff]  }
 0x14d   : > { %v6599_v39 = vcombine.low %v1559_v24, %v1569_v31  ;;  %v3433_v27 = vsel %vm8404_vm7, %v3428_v21, %v3432_v10  ;;  %v3438_v35 = vrot.slane %v3437_v33, 4  ;;  %v746_v3 = vadd.f32 %v8448_v61, %v707_v30  ;;  %v3354_v21 = vld [vmem:[#allocation2 + $0x24] sm:$0xf] }
 0x14e   : > { %7353 = vmatpush3.bf16.msra.mxu0 %v8044_v5  ;;  %v749_v8 = vadd.f32 %v8448_v61, %v710_v43  ;;  %v747_v38 = vadd.f32 %v8448_v61, %v708_v44  ;;  %v1574_v14 = vshll.u32 %v1437_v26, 16  ;;  %v780_v50 = vmax.f32 %v748_v45, 0.0  ;;  %v8038_v61 = vld [vmem:[%s10297_s4 + $0x148] sm:$0xff]   ;;  %v1400_v26 = vld [vmem:[#allocation2 + $0x98] sm:$0x1] }
 0x14f   : > { %7320 = vmatprep.mubr.bf16.mxu0 %v6599_v39  ;;  %7354 = vmatprep.subr.bf16.mxu0 %v8046_v28  ;;  %v3443_v22 = vsel %vm8404_vm7, %v3438_v35, %v3442_v13  ;;  %v1573_v52 = vrot.slane %v1571_v49, 4  ;;  %v1580_v54 = vshll.u32 %v1438_v37, 16  ;;  %v778_v57 = vmax.f32 %v746_v3, 0.0  ;;  %v1389_v13 = vld [vmem:[#allocation2 + $0x84] sm:$0xf]  ;;  %v8040_v43 = vld [vmem:[%s10297_s4 + $0x158] sm:$0xff]  }
 0x150   : > { %v6758_v56 = vcombine.low %v3433_v27, %v3443_v22  ;;  %v781_v62 = vmax.f32 %v749_v8, 0.0  ;;  %v779_v63 = vmax.f32 %v747_v38, 0.0  ;;  %v7002_v0 = vpack.c.bf16 %v780_v50, %v780_v50 }
 0x151   : > { %v1576_v41 = vrot.slane %v1574_v14, 5  ;;  %v8655_v1 = vrot.slane %v1580_v54, 5  ;;  %v1584_v2 = vshrl.u32 %v1438_v37, 16  ;;  %v7000_v4 = vpack.c.bf16 %v778_v57, %v778_v57  ;;  %v1393_v37 = vld [vmem:[#allocation2 + $0x8c] sm:$0x1] }
 0x152   : > { %7355 = vmatpush3.bf16.msra.mxu0 %v8046_v28  ;;  %7509 = vmatmul.mubr.bf16.vlgmr.msra.gmra.mrb[0].mxu1 %v6758_v56  ;;  %v7003_v5 = vpack.c.bf16 %v781_v62, %v781_v62  ;;  %v7001_v6 = vpack.c.bf16 %v779_v63, %v779_v63  ;;  %v1590_v9 = vshll.u32 %v1482_v47, 16  ;;  %v1185_v10 = vshrl.u32 %v7002_v0, 16  ;;  %v3355_v47 = vld [vmem:[#allocation2 + $0x28] sm:$0xf]  ;;  %v3356_v14 = vld [vmem:[#allocation2 + $0x2c] sm:$0x1] }
 0x153   : > { %7356 = vmatprep.subr.bf16.mxu0 %v8047_v59  ;;  %7541 = vmatpush3.bf16.msra.mxu1 %v8421_v42  ;;  %v1188_v11 = vshll.u32 %v7002_v0, 16  ;;  %v1577_v12 = vor.u32 %v1576_v41, %v1573_v52  ;;  %v1586_v16 = vrot.slane %v1584_v2, 4  ;;  %v1168_v18 = vshrl.u32 %v7000_v4, 16  ;;  %v1440_v56 = vld [vmem:[#allocation2 + $0x34] sm:$0xf]  ;;  %v8049_v57 = vld [vmem:[%s10297_s4 + $0x28] sm:$0xff]  }
 0x154   : > { %v1171_v19 = vshll.u32 %v7000_v4, 16  ;;  %v1193_v20 = vshrl.u32 %v7003_v5, 16  ;;  %v1196_v23 = vshll.u32 %v7003_v5, 16  ;;  %7542 = vmatprep.subr.bf16.mxu1 %v8038_v61  ;;  %v1187_v24 = vrot.slane %v1185_v10, 7  ;;  %v1483_v5 = vld [vmem:[#allocation2 + $0x38] sm:$0x1] }
 0x155   : > { %v1176_v28 = vshrl.u32 %v7001_v6, 16  ;;  %v1179_v31 = vshll.u32 %v7001_v6, 16  ;;  %v1578_v42 = vrot.slane %v1577_v12, 4  ;;  %v1170_v33 = vrot.slane %v1168_v18, 7  ;;  %v3357_v12 = vld [vmem:[#allocation2 + $0x30] sm:$0xf] }
 0x156   : > { %7357 = vmatpush3.bf16.msra.mxu0 %v8047_v59  ;;  %v1195_v36 = vrot.slane %v1193_v20, 7  ;;  %v1587_v39 = vor.u32 %v1586_v16, %v8655_v1  ;;  %v1592_v30 = vrot.slane %v1590_v9, 5  ;;  %v1190_v44 = vor.u32 %v1188_v11, %v1187_v24  ;;  %v1439_v59 = vld [vmem:[#allocation2 + $0x30] sm:$0xf]  ;;  %v8042_v16 = vld [vmem:[%s10297_s4 + $0x160] sm:$0xff]  }
 0x157   : > { %v1191_v27 = vrot.slane %v1187_v24, 4  ;;  %v1178_v35 = vrot.slane %v1176_v28, 7  ;;  %v1583_v45 = vsel %vm8404_vm7, %v1578_v42, %v8655_v1  ;;  %7543 = vmatpush3.bf16.msra.mxu1 %v8038_v61  ;;  %v1173_v49 = vor.u32 %v1171_v19, %v1170_v33  ;;  %7358 = vmatprep.subr.bf16.mxu0 %v8049_v57  ;;  %v3358_v28 = vld [vmem:[#allocation2 + $0x34] sm:$0xf] }
 0x158   : > { %v1174_v3 = vrot.slane %v1170_v33, 4  ;;  %v1198_v8 = vor.u32 %v1196_v23, %v1195_v36  ;;  %v1200_v38 = vrot.slane %v1195_v36, 4  ;;  %7544 = vmatprep.subr.bf16.mxu1 %v8039_v15  ;;  %v1397_v22 = vsel %vm8463_vm10, %v1190_v44, %v1396_v17  ;;  %v8045_v44 = vld [vmem:[%s10297_s4 + $0x168] sm:$0xff]  }
 0x159   : > { %v1181_v50 = vor.u32 %v1179_v31, %v1178_v35  ;;  %v1183_v52 = vrot.slane %v1178_v35, 4  ;;  %v1588_v54 = vrot.slane %v1587_v39, 4  ;;  %1398 = vst [vmem:[#allocation2 + $0x90] sm:$0xf] %v1397_v22  ;;  %v1390_v62 = vsel %vm8463_vm10, %v1173_v49, %v1389_v13 }
 0x15a   : > { %v1199_v63 = vsel %vm8470_vm11, %v1191_v27, %v1198_v8  ;;  %v1401_v61 = vsel %vm8315_vm2, %v1200_v38, %v1400_v26  ;;  %v3445_v0 = vshrl.u32 %v3354_v21, 16  ;;  %1391 = vst [vmem:[#allocation2 + $0x84] sm:$0xf] %v1390_v62  ;;  %v3448_v4 = vshll.u32 %v3354_v21, 16  ;;  %7359 = vmatpush3.bf16.msra.mxu0 %v8049_v57  ;;  %v3359_v38 = vld [vmem:[#allocation2 + $0x38] sm:$0x1] }
 0x15b   : > { %1399 = vst [vmem:[#allocation2 + $0x94] sm:$0xf] %v1199_v63  ;;  %1402 = vst [vmem:[#allocation2 + $0x98] sm:$0x1] %v1401_v61  ;;  %v1182_v41 = vsel %vm8470_vm11, %v1174_v3, %v1181_v50  ;;  %v1394_v1 = vsel %vm8315_vm2, %v1183_v52, %v1393_v37  ;;  %v1593_v2 = vsel %vm8404_vm7, %v1588_v54, %v1592_v30  ;;  %7545 = vmatpush3.bf16.msra.mxu1 %v8039_v15  ;;  %v8050_v15 = vld [vmem:[%s10297_s4 + $0x30] sm:$0xff]  }
 0x15c   : > { %1392 = vst [vmem:[#allocation2 + $0x88] sm:$0xf] %v1182_v41  ;;  %1395 = vst [vmem:[#allocation2 + $0x8c] sm:$0x1] %v1394_v1  ;;  %v6600_v6 = vcombine.low %v1583_v45, %v1593_v2  ;;  %v3447_v9 = vrot.slane %v3445_v0, 4  ;;  %v3454_v10 = vshll.u32 %v3355_v47, 16  ;;  %7546 = vmatprep.subr.bf16.mxu1 %v8040_v43  ;;  %7360 = vmatprep.subr.bf16.mxu0 %v8050_v15 }
 0x15d   : > { %v3458_v11 = vshrl.u32 %v3355_v47, 16  ;;  %v3450_v17 = vrot.slane %v3448_v4, 5  ;;  %v3464_v18 = vshll.u32 %v3356_v14, 16  ;;  %v1595_v19 = vshrl.u32 %v1439_v59, 16  ;;  %v8048_v62 = vld [vmem:[%s10297_s4 + $0x170] sm:$0xff]  }
 0x15e   : > { %v1598_v20 = vshll.u32 %v1439_v59, 16  ;;  %7321 = vmatmul.mubr.bf16.gmra.mrb[36].mxu0 %v6600_v6  ;;  %v3456_v23 = vrot.slane %v3454_v10, 5  ;;  %v1604_v13 = vshll.u32 %v1440_v56, 16  ;;  %v1608_v26 = vshrl.u32 %v1440_v56, 16  ;;  %v8708_v4 = vld [vmem:[%s10295_s2] ss:$0 sm:$0xff] }
 0x15f   : > { %v3460_v24 = vrot.slane %v3458_v11, 4  ;;  %v3451_v31 = vor.u32 %v3450_v17, %v3447_v9  ;;  %v3466_v42 = vrot.slane %v3464_v18, 5  ;;  %v1597_v21 = vrot.slane %v1595_v19, 4  ;;  %7547 = vmatpush3.bf16.msra.mxu1 %v8040_v43  ;;  %7361 = vmatpush3.bf16.msra.mxu0 %v8050_v15  ;;  %v1441_v9 = vld [vmem:[#allocation2 + $0x3c] sm:$0xf] }
 0x160   : > { %v1600_v33 = vrot.slane %v1598_v20, 5  ;;  %v1606_v37 = vrot.slane %v1604_v13, 5  ;;  %v1610_v39 = vrot.slane %v1608_v26, 4  ;;  %v1614_v30 = vshll.u32 %v1483_v5, 16  ;;  %7548 = vmatprep.subr.bf16.mxu1 %v8042_v16  ;;  %v8719_v18 = vld [vmem:[%s10296_s3] ss:$0 sm:$0xff] }
 0x161   : > { %v3461_v36 = vor.u32 %v3460_v24, %v3456_v23  ;;  %v3452_v27 = vrot.slane %v3451_v31, 4  ;;  %v3469_v45 = vshrl.u32 %v3357_v12, 16  ;;  %v3472_v47 = vshll.u32 %v3357_v12, 16  ;;  %v8725_v20 = vld [vmem:[#allocation2 + $0x40] sm:$0xf]  ;;  %v8052_v15 = vld [vmem:[%s10297_s4 + $0x38] sm:$0xff]  }
 0x162   : > { %v1601_v35 = vor.u32 %v1600_v33, %v1597_v21  ;;  %v1611_v3 = vor.u32 %v1610_v39, %v1606_v37  ;;  %v1616_v8 = vrot.slane %v1614_v30, 5  ;;  %v3478_v43 = vshll.u32 %v3358_v28, 16  ;;  %7362 = vmatprep.subr.bf16.mxu0 %v8052_v15  ;;  %v1484_v33 = vld [vmem:[#allocation2 + $0x44] sm:$0x1]  ;;  %v4113_v32 = vld [vmem:[#allocation2 + $0x90] sm:$0xe] }
 0x163   : > { %v3462_v49 = vrot.slane %v3461_v36, 4  ;;  %v3457_v14 = vsel %vm8404_vm7, %v3452_v27, %v3456_v23  ;;  %v3471_v22 = vrot.slane %v3469_v45, 4  ;;  %v3474_v50 = vrot.slane %v3472_v47, 5  ;;  %7549 = vmatpush3.bf16.msra.mxu1 %v8042_v16  ;;  %7363 = vmatpush3.bf16.msra.mxu0 %v8052_v15 }
 0x164   : > { %v1602_v59 = vrot.slane %v1601_v35, 4  ;;  %v1612_v54 = vrot.slane %v1611_v3, 4  ;;  %v3480_v56 = vrot.slane %v3478_v43, 5  ;;  %v3482_v57 = vshrl.u32 %v3358_v28, 16  ;;  %7550 = vmatprep.subr.bf16.mxu1 %v8045_v44  ;;  %7396 = vmatprep.subr.bf16.mxu0 %v8802_v29 }
 0x165   : > { %v3467_v52 = vsel %vm8404_vm7, %v3462_v49, %v3466_v42  ;;  %v3475_v0 = vor.u32 %v3474_v50, %v3471_v22  ;;  %v3488_v41 = vshll.u32 %v3359_v38, 16  ;;  %v713_v5 = vmul.f32 %v8708_v4, %v8566_v51  ;;  %v1410_v22 = vld [vmem:[#allocation2 + $0xa8] sm:$0xf]  ;;  %v1403_v50 = vld [vmem:[#allocation2 + $0x9c] sm:$0xf] }
 0x166   : > { %v6759_v63 = vcombine.low %v3457_v14, %v3467_v52  ;;  %v1607_v61 = vsel %vm8404_vm7, %v1602_v59, %v1606_v37  ;;  %v1617_v1 = vsel %vm8404_vm7, %v1612_v54, %v1616_v8  ;;  %v3484_v2 = vrot.slane %v3482_v57, 4  ;;  %v8055_v8 = vld [vmem:[%s10297_s4 + $0x180] sm:$0xff]  }
 0x167   : > { %v711_v6 = vmul.f32 %v8708_v4, %v8568_v60  ;;  %v6601_v10 = vcombine.low %v1607_v61, %v1617_v1  ;;  %v3476_v11 = vrot.slane %v3475_v0, 4  ;;  %v3490_v12 = vrot.slane %v3488_v41, 5  ;;  %7551 = vmatpush3.bf16.msra.mxu1 %v8045_v44  ;;  %v1414_v61 = vld [vmem:[#allocation2 + $0xb0] sm:$0x1]  ;;  %v3360_v1 = vld [vmem:[#allocation2 + $0x3c] sm:$0xf] }
 0x168   : > { %7512 = vmatprep.mubr.bf16.mxu1 %v6759_v63  ;;  %v714_v16 = vmul.f32 %v8708_v4, %v8572_v58  ;;  %v3485_v17 = vor.u32 %v3484_v2, %v3480_v56  ;;  %v752_v51 = vadd.f32 %v8719_v18, %v713_v5  ;;  %v712_v60 = vmul.f32 %v8708_v4, %v8581_v7  ;;  %v8051_v58 = vld [vmem:[%s10297_s4 + $0x178] sm:$0xff]  }
 0x169   : > { %v750_v19 = vadd.f32 %v8719_v18, %v711_v6  ;;  %7552 = vmatprep.subr.bf16.mxu1 %v8048_v62  ;;  %7324 = vmatprep.mubr.bf16.mxu0 %v6601_v10  ;;  %v3481_v23 = vsel %vm8404_vm7, %v3476_v11, %v3480_v56  ;;  %v1619_v13 = vshrl.u32 %v1441_v9, 16  ;;  %v1622_v26 = vshll.u32 %v1441_v9, 16  ;;  %v3361_v10 = vld [vmem:[#allocation2 + $0x40] sm:$0xf] }
 0x16a   : > { %v753_v24 = vadd.f32 %v8719_v18, %v714_v16  ;;  %v3486_v7 = vrot.slane %v3485_v17, 4  ;;  %v784_v28 = vmax.f32 %v752_v51, 0.0  ;;  %v751_v42 = vadd.f32 %v8719_v18, %v712_v60  ;;  %v1407_v51 = vld [vmem:[#allocation2 + $0xa4] sm:$0x1] }
 0x16b   : > { %v782_v31 = vmax.f32 %v750_v19, 0.0  ;;  %v1621_v36 = vrot.slane %v1619_v13, 4  ;;  %v1624_v37 = vrot.slane %v1622_v26, 5  ;;  %v1628_v39 = vshll.u32 %v8725_v20, 16  ;;  %7553 = vmatpush3.bf16.msra.mxu1 %v8048_v62  ;;  %v3362_v19 = vld [vmem:[#allocation2 + $0x44] sm:$0x1] }
 0x16c   : > { %v785_v21 = vmax.f32 %v753_v24, 0.0  ;;  %v3491_v30 = vsel %vm8404_vm7, %v3486_v7, %v3490_v12  ;;  %v7006_v44 = vpack.c.bf16 %v784_v28, %v784_v28  ;;  %v783_v35 = vmax.f32 %v751_v42, 0.0  ;;  %7554 = vmatprep.subr.bf16.mxu1 %v8051_v58 }
 0x16d   : > { %v7004_v27 = vpack.c.bf16 %v782_v31, %v782_v31  ;;  %v6760_v45 = vcombine.low %v3481_v23, %v3491_v30  ;;  %v1625_v49 = vor.u32 %v1624_v37, %v1621_v36  ;;  %v8740_v3 = vrot.slane %v1628_v39, 5  ;;  %v1444_v30 = vld [vmem:[#allocation2 + $0x4c] sm:$0xf] }
 0x16e   : > { %v7007_v47 = vpack.c.bf16 %v785_v21, %v785_v21  ;;  %v1219_v38 = vshrl.u32 %v7006_v44, 16  ;;  %v1222_v43 = vshll.u32 %v7006_v44, 16  ;;  %v7005_v56 = vpack.c.bf16 %v783_v35, %v783_v35  ;;  %v1443_v21 = vld [vmem:[#allocation2 + $0x48] sm:$0xf] }
 0x16f   : > { %v1202_v14 = vshrl.u32 %v7004_v27, 16  ;;  %v1205_v59 = vshll.u32 %v7004_v27, 16  ;;  %7513 = vmatmul.mubr.bf16.gmra.mrb[4].mxu1 %v6760_v45  ;;  %v8745_v57 = vrot.slane %v1625_v49, 4  ;;  %v1632_v0 = vshrl.u32 %v8725_v20, 16 }
 0x170   : > { %v1227_v52 = vshrl.u32 %v7007_v47, 16  ;;  %v1230_v54 = vshll.u32 %v7007_v47, 16  ;;  %v1221_v62 = vrot.slane %v1219_v38, 7  ;;  %v1638_v41 = vshll.u32 %v1484_v33, 16  ;;  %7555 = vmatpush3.bf16.msra.mxu1 %v8051_v58  ;;  %v1485_v38 = vld [vmem:[#allocation2 + $0x50] sm:$0x1] }
 0x171   : > { %v1204_v63 = vrot.slane %v1202_v14, 7  ;;  %v1210_v5 = vshrl.u32 %v7005_v56, 16  ;;  %v1213_v6 = vshll.u32 %v7005_v56, 16  ;;  %v1631_v9 = vsel %vm8404_vm7, %v8745_v57, %v8740_v3  ;;  %7588 = vmatprep.subr.bf16.mxu1 %v8055_v8 }
 0x172   : > { %v1229_v2 = vrot.slane %v1227_v52, 7  ;;  %v1224_v11 = vor.u32 %v1222_v43, %v1221_v62  ;;  %v1225_v12 = vrot.slane %v1221_v62, 4  ;;  %v1634_v58 = vrot.slane %v1632_v0, 4  ;;  %v3364_v62 = vld [vmem:[#allocation2 + $0x4c] sm:$0xf] }
 0x173   : > { %v1207_v16 = vor.u32 %v1205_v59, %v1204_v63  ;;  %v1208_v17 = vrot.slane %v1204_v63, 4  ;;  %v1212_v15 = vrot.slane %v1210_v5, 7  ;;  %v1640_v13 = vrot.slane %v1638_v41, 5 }
 0x174   : > { %v1232_v60 = vor.u32 %v1230_v54, %v1229_v2  ;;  %v1234_v20 = vrot.slane %v1229_v2, 4  ;;  %v1411_v23 = vsel %vm8463_vm10, %v1224_v11, %v1410_v22  ;;  %v3493_v26 = vshrl.u32 %v3360_v1, 16 }
 0x175   : > { %v1404_v24 = vsel %vm8463_vm10, %v1207_v16, %v1403_v50  ;;  %1412 = vst [vmem:[#allocation2 + $0xa8] sm:$0xf] %v1411_v23  ;;  %v1215_v31 = vor.u32 %v1213_v6, %v1212_v15  ;;  %v1217_v42 = vrot.slane %v1212_v15, 4  ;;  %v1635_v33 = vor.u32 %v1634_v58, %v8740_v3  ;;  %v3363_v50 = vld [vmem:[#allocation2 + $0x48] sm:$0xf] }
 0x176   : > { %1405 = vst [vmem:[#allocation2 + $0x9c] sm:$0xf] %v1404_v24  ;;  %v1233_v7 = vsel %vm8470_vm11, %v1225_v12, %v1232_v60  ;;  %v1415_v28 = vsel %vm8315_vm2, %v1234_v20, %v1414_v61  ;;  %v3495_v36 = vrot.slane %v3493_v26, 4  ;;  %v3496_v37 = vshll.u32 %v3360_v1, 16  ;;  %v3365_v12 = vld [vmem:[#allocation2 + $0x50] sm:$0x1] }
 0x177   : > { %1413 = vst [vmem:[#allocation2 + $0xac] sm:$0xf] %v1233_v7  ;;  %1416 = vst [vmem:[#allocation2 + $0xb0] sm:$0x1] %v1415_v28  ;;  %v3502_v39 = vshll.u32 %v3361_v10, 16  ;;  %v1216_v44 = vsel %vm8470_vm11, %v1208_v17, %v1215_v31  ;;  %v1408_v27 = vsel %vm8315_vm2, %v1217_v42, %v1407_v51  ;;  %v3506_v35 = vshrl.u32 %v3361_v10, 16 }
 0x178   : > { %v3512_v45 = vshll.u32 %v3362_v19, 16  ;;  %1406 = vst [vmem:[#allocation2 + $0xa0] sm:$0xf] %v1216_v44  ;;  %1409 = vst [vmem:[#allocation2 + $0xa4] sm:$0x1] %v1408_v27  ;;  %v1636_v47 = vrot.slane %v1635_v33, 4  ;;  %v717_v33 = vmul.f32 %v8708_v4, %v8595_v40  ;;  %v715_v27 = vmul.f32 %v8708_v4, %v8597_v46 }
 0x179   : > { %v3498_v49 = vrot.slane %v3496_v37, 5  ;;  %v3504_v8 = vrot.slane %v3502_v39, 5  ;;  %v1643_v43 = vshrl.u32 %v1443_v21, 16  ;;  %v3508_v3 = vrot.slane %v3506_v35, 4  ;;  %v859_v31 = vld [vmem:[#allocation2 + $0xb4] sm:$0x1] }
 0x17a   : > { %v3514_v14 = vrot.slane %v3512_v45, 5  ;;  %v1646_v59 = vshll.u32 %v1443_v21, 16  ;;  %v1652_v22 = vshll.u32 %v1444_v30, 16  ;;  %v1641_v52 = vsel %vm8404_vm7, %v1636_v47, %v1640_v13  ;;  %v912_v37 = vld [vmem:[#allocation2 + $0xc8] sm:$0x1] }
 0x17b   : > { %v3499_v54 = vor.u32 %v3498_v49, %v3495_v36  ;;  %v1645_v56 = vrot.slane %v1643_v43, 4  ;;  %v1656_v57 = vshrl.u32 %v1444_v30, 16  ;;  %v6602_v63 = vcombine.low %v1631_v9, %v1641_v52  ;;  %v862_v9 = vld [vmem:[#allocation2 + $0xc0] sm:$0x1]  ;;  %v909_v35 = vld [vmem:[#allocation2 + $0xbc] sm:$0x1] }
 0x17c   : > { %v3509_v61 = vor.u32 %v3508_v3, %v3504_v8  ;;  %v1648_v0 = vrot.slane %v1646_v59, 5  ;;  %v1654_v41 = vrot.slane %v1652_v22, 5  ;;  %v1662_v5 = vshll.u32 %v1485_v38, 16  ;;  %v1446_v46 = vld [vmem:[#allocation2 + $0x58] sm:$0xf] }
 0x17d   : > { %v3500_v1 = vrot.slane %v3499_v54, 4  ;;  %v1658_v2 = vrot.slane %v1656_v57, 4  ;;  %v3517_v6 = vshrl.u32 %v3363_v50, 16  ;;  %7325 = vmatmul.mubr.bf16.gmra.mrb[40].mxu0 %v6602_v63  ;;  %v3520_v16 = vshll.u32 %v3363_v50, 16 }
 0x17e   : > { %v3510_v10 = vrot.slane %v3509_v61, 4  ;;  %v1649_v11 = vor.u32 %v1648_v0, %v1645_v56  ;;  %v3526_v17 = vshll.u32 %v3364_v62, 16  ;;  %v1664_v60 = vrot.slane %v1662_v5, 5 }
 0x17f   : > { %v3505_v51 = vsel %vm8404_vm7, %v3500_v1, %v3504_v8  ;;  %v1659_v19 = vor.u32 %v1658_v2, %v1654_v41  ;;  %v3519_v20 = vrot.slane %v3517_v6, 4  ;;  %v3522_v23 = vrot.slane %v3520_v16, 5  ;;  %v1445_v8 = vld [vmem:[#allocation2 + $0x54] sm:$0xf] }
 0x180   : > { %v3515_v15 = vsel %vm8404_vm7, %v3510_v10, %v3514_v14  ;;  %v1650_v58 = vrot.slane %v1649_v11, 4  ;;  %v3528_v24 = vrot.slane %v3526_v17, 5  ;;  %v3530_v7 = vshrl.u32 %v3364_v62, 16 }
 0x181   : > { %v6761_v13 = vcombine.low %v3505_v51, %v3515_v15  ;;  %v1660_v26 = vrot.slane %v1659_v19, 4  ;;  %v3536_v28 = vshll.u32 %v3365_v12, 16  ;;  %v3523_v21 = vor.u32 %v3522_v23, %v3519_v20  ;;  %v1486_v19 = vld [vmem:[#allocation2 + $0x5c] sm:$0x1] }
 0x182   : > { %v1655_v42 = vsel %vm8404_vm7, %v1650_v58, %v1654_v41  ;;  %v863_v36 = vsel %vm8315_vm2, 0, %v862_v9  ;;  %v3532_v30 = vrot.slane %v3530_v7, 4  ;;  %v756_v49 = vadd.f32 %v8719_v18, %v717_v33 }
 0x183   : > { %7516 = vmatprep.mubr.bf16.mxu1 %v6761_v13  ;;  %v1665_v39 = vsel %vm8404_vm7, %v1660_v26, %v1664_v60  ;;  %v3538_v44 = vrot.slane %v3536_v28, 5  ;;  %864 = vst [vmem:[#allocation2 + $0xc0] sm:$0x1] %v863_v36  ;;  %v3524_v47 = vrot.slane %v3523_v21, 4  ;;  %v860_v40 = vsel %vm8315_vm2, 0, %v859_v31 }
 0x184   : > { %v6603_v45 = vcombine.low %v1655_v42, %v1665_v39  ;;  %v3533_v38 = vor.u32 %v3532_v30, %v3528_v24  ;;  %v754_v43 = vadd.f32 %v8719_v18, %v715_v27  ;;  %861 = vst [vmem:[#allocation2 + $0xb4] sm:$0x1] %v860_v40  ;;  %v718_v3 = vmul.f32 %v8708_v4, %v8599_v55 }
 0x185   : > { %v913_v14 = vsel %vm8325_vm4, 0, %v912_v37  ;;  %v3529_v59 = vsel %vm8404_vm7, %v3524_v47, %v3528_v24  ;;  %v788_v22 = vmax.f32 %v756_v49, 0.0  ;;  %v716_v50 = vmul.f32 %v8708_v4, %v8601_v53  ;;  %v3366_v37 = vld [vmem:[#allocation2 + $0x54] sm:$0xf] }
 0x186   : > { %7328 = vmatprep.mubr.bf16.mxu0 %v6603_v45  ;;  %914 = vst [vmem:[#allocation2 + $0xc8] sm:$0x1] %v913_v14  ;;  %v910_v52 = vsel %vm8325_vm4, 0, %v909_v35  ;;  %v3534_v54 = vrot.slane %v3533_v38, 4  ;;  %v786_v56 = vmax.f32 %v754_v43, 0.0  ;;  %v757_v55 = vadd.f32 %v8719_v18, %v718_v3 }
 0x187   : > { %911 = vst [vmem:[#allocation2 + $0xbc] sm:$0x1] %v910_v52  ;;  %v1667_v57 = vshrl.u32 %v1445_v8, 16  ;;  %v7010_v62 = vpack.c.bf16 %v788_v22, %v788_v22  ;;  %v755_v63 = vadd.f32 %v8719_v18, %v716_v50  ;;  %v1670_v61 = vshll.u32 %v1445_v8, 16  ;;  %v8811_v38 = vld [vmem:[#allocation2 + $0x58] sm:$0xf] }
 0x188   : > { %v1676_v0 = vshll.u32 %v1446_v46, 16  ;;  %v3539_v41 = vsel %vm8404_vm7, %v3534_v54, %v3538_v44  ;;  %v7008_v1 = vpack.c.bf16 %v786_v56, %v786_v56  ;;  %v789_v2 = vmax.f32 %v757_v55, 0.0  ;;  %v1447_v54 = vld [vmem:[#allocation2 + $0x60] sm:$0xf] }
 0x189   : > { %v1669_v53 = vrot.slane %v1667_v57, 4  ;;  %v6762_v4 = vcombine.low %v3529_v59, %v3539_v41  ;;  %v1253_v5 = vshrl.u32 %v7010_v62, 16  ;;  %v1256_v6 = vshll.u32 %v7010_v62, 16  ;;  %v8813_v59 = vld [vmem:[#allocation2 + $0x5c] sm:$0x1] }
 0x18a   : > { %v787_v10 = vmax.f32 %v755_v63, 0.0  ;;  %v1236_v11 = vshrl.u32 %v7008_v1, 16  ;;  %v1239_v12 = vshll.u32 %v7008_v1, 16  ;;  %v7011_v18 = vpack.c.bf16 %v789_v2, %v789_v2  ;;  %v1424_v9 = vld [vmem:[#allocation2 + $0xc0] sm:$0xf] }
 0x18b   : > { %v1672_v16 = vrot.slane %v1670_v61, 5  ;;  %7517 = vmatmul.mubr.bf16.gmra.mrb[8].mxu1 %v6762_v4  ;;  %v1255_v17 = vrot.slane %v1253_v5, 7  ;;  %v1678_v60 = vrot.slane %v1676_v0, 5  ;;  %v1680_v20 = vshrl.u32 %v1446_v46, 16  ;;  %v1417_v7 = vld [vmem:[#allocation2 + $0xb4] sm:$0xf] }
 0x18c   : > { %v7009_v51 = vpack.c.bf16 %v787_v10, %v787_v10  ;;  %v1238_v15 = vrot.slane %v1236_v11, 7  ;;  %v1261_v58 = vshrl.u32 %v7011_v18, 16  ;;  %v1264_v23 = vshll.u32 %v7011_v18, 16  ;;  %v1448_v63 = vld [vmem:[#allocation2 + $0x64] sm:$0xf] }
 0x18d   : > { %v1673_v24 = vor.u32 %v1672_v16, %v1669_v53  ;;  %v1258_v13 = vor.u32 %v1256_v6, %v1255_v17  ;;  %v1259_v26 = vrot.slane %v1255_v17, 4  ;;  %v1428_v30 = vld [vmem:[#allocation2 + $0xc8] sm:$0x1]  ;;  %v1682_v27 = vrot.slane %v1680_v20, 4  ;;  %v3369_v5 = vld [vmem:[#allocation2 + $0x60] sm:$0xf] }
 0x18e   : > { %v1244_v28 = vshrl.u32 %v7009_v51, 16  ;;  %v1247_v31 = vshll.u32 %v7009_v51, 16  ;;  %v1241_v42 = vor.u32 %v1239_v12, %v1238_v15  ;;  %v1242_v21 = vrot.slane %v1238_v15, 4  ;;  %v1421_v40 = vld [vmem:[#allocation2 + $0xbc] sm:$0x1] }
 0x18f   : > { %v1263_v33 = vrot.slane %v1261_v58, 7  ;;  %v1674_v36 = vrot.slane %v1673_v24, 4  ;;  %v1425_v39 = vsel %vm8463_vm10, %v1258_v13, %v1424_v9  ;;  %v1686_v35 = vshll.u32 %v1486_v19, 16  ;;  %v1487_v2 = vld [vmem:[#allocation2 + $0x68] sm:$0x1] }
 0x190   : > { %v1246_v44 = vrot.slane %v1244_v28, 7  ;;  %1426 = vst [vmem:[#allocation2 + $0xc0] sm:$0xf] %v1425_v39  ;;  %v1418_v45 = vsel %vm8463_vm10, %v1241_v42, %v1417_v7  ;;  %v1683_v14 = vor.u32 %v1682_v27, %v1678_v60  ;;  %v3541_v50 = vshrl.u32 %v3366_v37, 16  ;;  %v8828_v19 = vld [vmem:[#allocation2 + $0x64] sm:$0xf] }
 0x191   : > { %v1266_v47 = vor.u32 %v1264_v23, %v1263_v33  ;;  %v1268_v49 = vrot.slane %v1263_v33, 4  ;;  %v1679_v8 = vsel %vm8404_vm7, %v1674_v36, %v1678_v60  ;;  %1419 = vst [vmem:[#allocation2 + $0xb4] sm:$0xf] %v1418_v45  ;;  %v1688_v46 = vrot.slane %v1686_v35, 5  ;;  %v3371_v15 = vld [vmem:[#allocation2 + $0x68] sm:$0x1] }
 0x192   : > { %v1249_v43 = vor.u32 %v1247_v31, %v1246_v44  ;;  %v1251_v3 = vrot.slane %v1246_v44, 4  ;;  %v3544_v52 = vshll.u32 %v3366_v37, 16  ;;  %v1684_v57 = vrot.slane %v1683_v14, 4  ;;  %v1449_v7 = vld [vmem:[#allocation2 + $0x6c] sm:$0xf] }
 0x193   : > { %v1267_v22 = vsel %vm8470_vm11, %v1259_v26, %v1266_v47  ;;  %v1429_v34 = vsel %vm8315_vm2, %v1268_v49, %v1428_v30  ;;  %v3550_v62 = vshll.u32 %v8811_v38, 16  ;;  %v3543_v61 = vrot.slane %v3541_v50, 4  ;;  %v1450_v35 = vld [vmem:[#allocation2 + $0x70] sm:$0xf] }
 0x194   : > { %1427 = vst [vmem:[#allocation2 + $0xc4] sm:$0xf] %v1267_v22  ;;  %1430 = vst [vmem:[#allocation2 + $0xc8] sm:$0x1] %v1429_v34  ;;  %v1250_v56 = vsel %vm8470_vm11, %v1242_v21, %v1249_v43  ;;  %v1422_v55 = vsel %vm8315_vm2, %v1251_v3, %v1421_v40  ;;  %v3546_v0 = vrot.slane %v3544_v52, 5  ;;  %v3554_v41 = vshrl.u32 %v8811_v38, 16 }
 0x195   : > { %1420 = vst [vmem:[#allocation2 + $0xb8] sm:$0xf] %v1250_v56  ;;  %1423 = vst [vmem:[#allocation2 + $0xbc] sm:$0x1] %v1422_v55  ;;  %v3560_v1 = vshll.u32 %v8813_v59, 16  ;;  %v1689_v48 = vsel %vm8404_vm7, %v1684_v57, %v1688_v46  ;;  %v3552_v53 = vrot.slane %v3550_v62, 5 }
 0x196   : > { %v1691_v4 = vshrl.u32 %v1447_v54, 16  ;;  %v1694_v25 = vshll.u32 %v1447_v54, 16  ;;  %v6604_v6 = vcombine.low %v1679_v8, %v1689_v48  ;;  %v3547_v10 = vor.u32 %v3546_v0, %v3543_v61  ;;  %v1488_v43 = vld [vmem:[#allocation2 + $0x74] sm:$0x1]  ;;  %v3372_v34 = vld [vmem:[#allocation2 + $0x6c] sm:$0xf] }
 0x197   : > { %v3556_v11 = vrot.slane %v3554_v41, 4  ;;  %v3562_v12 = vrot.slane %v3560_v1, 5  ;;  %v1700_v17 = vshll.u32 %v1448_v63, 16  ;;  %v1704_v51 = vshrl.u32 %v1448_v63, 16  ;;  %v8840_v61 = vld [vmem:[#allocation2 + $0x70] sm:$0xf] }
 0x198   : > { %v1693_v18 = vrot.slane %v1691_v4, 4  ;;  %v1696_v16 = vrot.slane %v1694_v25, 5  ;;  %7329 = vmatmul.mubr.bf16.gmra.mrb[44].mxu0 %v6604_v6  ;;  %v3548_v60 = vrot.slane %v3547_v10, 4  ;;  %v1710_v9 = vshll.u32 %v1487_v2, 16  ;;  %v8844_v2 = vld [vmem:[#allocation2 + $0x74] sm:$0x1] }
 0x199   : > { %v3557_v20 = vor.u32 %v3556_v11, %v3552_v53  ;;  %v3565_v58 = vshrl.u32 %v3369_v5, 16  ;;  %v1702_v24 = vrot.slane %v1700_v17, 5  ;;  %v1706_v13 = vrot.slane %v1704_v51, 4 }
 0x19a   : > { %v1697_v23 = vor.u32 %v1696_v16, %v1693_v18  ;;  %v3568_v26 = vshll.u32 %v3369_v5, 16  ;;  %v3553_v28 = vsel %vm8404_vm7, %v3548_v60, %v3552_v53  ;;  %v1712_v42 = vrot.slane %v1710_v9, 5  ;;  %v8848_v18 = vld [vmem:[#allocation2 + $0x78] sm:$0xf] }
 0x19b   : > { %v3558_v31 = vrot.slane %v3557_v20, 4  ;;  %v3567_v21 = vrot.slane %v3565_v58, 4  ;;  %v1707_v36 = vor.u32 %v1706_v13, %v1702_v24  ;;  %v3574_v39 = vshll.u32 %v8828_v19, 16  ;;  %v8853_v20 = vld [vmem:[#allocation2 + $0x7c] sm:$0xf] }
 0x19c   : > { %v1698_v33 = vrot.slane %v1697_v23, 4  ;;  %v3570_v37 = vrot.slane %v3568_v26, 5  ;;  %v3578_v44 = vshrl.u32 %v8828_v19, 16  ;;  %v3584_v27 = vshll.u32 %v3371_v15, 16  ;;  %v3375_v13 = vld [vmem:[#allocation2 + $0x78] sm:$0xf] }
 0x19d   : > { %v3563_v30 = vsel %vm8404_vm7, %v3558_v31, %v3562_v12  ;;  %v1715_v45 = vshrl.u32 %v1449_v7, 16  ;;  %v1708_v40 = vrot.slane %v1707_v36, 4  ;;  %v3576_v3 = vrot.slane %v3574_v39, 5 }
 0x19e   : > { %v6763_v47 = vcombine.low %v3553_v28, %v3563_v30  ;;  %v1703_v49 = vsel %vm8404_vm7, %v1698_v33, %v1702_v24  ;;  %v3571_v8 = vor.u32 %v3570_v37, %v3567_v21  ;;  %v3580_v14 = vrot.slane %v3578_v44, 4  ;;  %v1489_v24 = vld [vmem:[#allocation2 + $0x80] sm:$0x1] }
 0x19f   : > { %v3586_v46 = vrot.slane %v3584_v27, 5  ;;  %v1717_v22 = vrot.slane %v1715_v45, 4  ;;  %v1713_v50 = vsel %vm8404_vm7, %v1708_v40, %v1712_v42  ;;  %v1718_v54 = vshll.u32 %v1449_v7, 16  ;;  %v8863_v27 = vld [vmem:[#allocation2 + $0x7c] sm:$0xf] }
 0x1a0   : > { %7520 = vmatprep.mubr.bf16.mxu1 %v6763_v47  ;;  %v3572_v52 = vrot.slane %v3571_v8, 4  ;;  %v1724_v56 = vshll.u32 %v1450_v35, 16  ;;  %v6605_v55 = vcombine.low %v1703_v49, %v1713_v50  ;;  %v3581_v57 = vor.u32 %v3580_v14, %v3576_v3 }
 0x1a1   : > { %v1728_v62 = vshrl.u32 %v1450_v35, 16  ;;  %v1734_v63 = vshll.u32 %v1488_v43, 16  ;;  %v1720_v41 = vrot.slane %v1718_v54, 5  ;;  %v3589_v48 = vshrl.u32 %v3372_v34, 16 }
 0x1a2   : > { %v3577_v0 = vsel %vm8404_vm7, %v3572_v52, %v3576_v3  ;;  %v1726_v1 = vrot.slane %v1724_v56, 5  ;;  %7332 = vmatprep.mubr.bf16.mxu0 %v6605_v55  ;;  %v3582_v53 = vrot.slane %v3581_v57, 4  ;;  %v3592_v5 = vshll.u32 %v3372_v34, 16  ;;  %v8867_v3 = vld [vmem:[#allocation2 + $0x80] sm:$0x1] }
 0x1a3   : > { %v1730_v4 = vrot.slane %v1728_v62, 4  ;;  %v1736_v25 = vrot.slane %v1734_v63, 5  ;;  %v1721_v6 = vor.u32 %v1720_v41, %v1717_v22  ;;  %v3591_v10 = vrot.slane %v3589_v48, 4  ;;  %v8872_v52 = vld [vmem:[#allocation2 + $0x84] sm:$0xf] }
 0x1a4   : > { %v3598_v11 = vshll.u32 %v8840_v61, 16  ;;  %v3602_v12 = vshrl.u32 %v8840_v61, 16  ;;  %v3587_v16 = vsel %vm8404_vm7, %v3582_v53, %v3586_v46  ;;  %v3594_v51 = vrot.slane %v3592_v5, 5  ;;  %v8874_v62 = vld [vmem:[#allocation2 + $0x88] sm:$0xf] }
 0x1a5   : > { %v1731_v17 = vor.u32 %v1730_v4, %v1726_v1  ;;  %v3608_v60 = vshll.u32 %v8844_v2, 16  ;;  %v6764_v9 = vcombine.low %v3577_v0, %v3587_v16  ;;  %v1722_v15 = vrot.slane %v1721_v6, 4  ;;  %v3378_v16 = vld [vmem:[#allocation2 + $0x84] sm:$0xf] }
 0x1a6   : > { %v3600_v58 = vrot.slane %v3598_v11, 5  ;;  %v3604_v23 = vrot.slane %v3602_v12, 4  ;;  %v3595_v7 = vor.u32 %v3594_v51, %v3591_v10  ;;  %v1739_v31 = vshrl.u32 %v8848_v18, 16  ;;  %v1490_v11 = vld [vmem:[#allocation2 + $0x8c] sm:$0x1] }
 0x1a7   : > { %v1732_v26 = vrot.slane %v1731_v17, 4  ;;  %v3610_v28 = vrot.slane %v3608_v60, 5  ;;  %7521 = vmatmul.mubr.bf16.gmra.mrb[12].mxu1 %v6764_v9  ;;  %v1727_v42 = vsel %vm8404_vm7, %v1722_v15, %v1726_v1  ;;  %v1742_v33 = vshll.u32 %v8848_v18, 16  ;;  %v8885_v15 = vld [vmem:[#allocation2 + $0x88] sm:$0xf] }
 0x1a8   : > { %v3605_v21 = vor.u32 %v3604_v23, %v3600_v58  ;;  %v1748_v36 = vshll.u32 %v8853_v20, 16  ;;  %v3596_v39 = vrot.slane %v3595_v7, 4  ;;  %v1741_v30 = vrot.slane %v1739_v31, 4 }
 0x1a9   : > { %v1737_v37 = vsel %vm8404_vm7, %v1732_v26, %v1736_v25  ;;  %v1752_v44 = vshrl.u32 %v8853_v20, 16  ;;  %v1744_v47 = vrot.slane %v1742_v33, 5  ;;  %v1758_v43 = vshll.u32 %v1489_v24, 16  ;;  %v8890_v33 = vld [vmem:[#allocation2 + $0x8c] sm:$0x1] }
 0x1aa   : > { %v6606_v35 = vcombine.low %v1727_v42, %v1737_v37  ;;  %v3606_v45 = vrot.slane %v3605_v21, 4  ;;  %v1750_v49 = vrot.slane %v1748_v36, 5  ;;  %v3601_v40 = vsel %vm8404_vm7, %v3596_v39, %v3600_v58 }
 0x1ab   : > { %v1754_v8 = vrot.slane %v1752_v44, 4  ;;  %v3613_v14 = vshrl.u32 %v3375_v13, 16  ;;  %v1745_v22 = vor.u32 %v1744_v47, %v1741_v30  ;;  %v3616_v34 = vshll.u32 %v3375_v13, 16 }
 0x1ac   : > { %7333 = vmatmul.mubr.bf16.gmra.mrb[48].mxu0 %v6606_v35  ;;  %v3611_v46 = vsel %vm8404_vm7, %v3606_v45, %v3610_v28  ;;  %v3622_v50 = vshll.u32 %v8863_v27, 16  ;;  %v1760_v55 = vrot.slane %v1758_v43, 5  ;;  %v3626_v1 = vshrl.u32 %v8863_v27, 16  ;;  %v8893_v45 = vld [vmem:[#allocation2 + $0x90] sm:$0xf] }
 0x1ad   : > { %v6765_v54 = vcombine.low %v3601_v40, %v3611_v46  ;;  %v1755_v56 = vor.u32 %v1754_v8, %v1750_v49  ;;  %v3615_v57 = vrot.slane %v3613_v14, 4  ;;  %v1746_v63 = vrot.slane %v1745_v22, 4  ;;  %v8898_v43 = vld [vmem:[#allocation2 + $0x94] sm:$0xf] }
 0x1ae   : > { %v3618_v0 = vrot.slane %v3616_v34, 5  ;;  %v3624_v41 = vrot.slane %v3622_v50, 5  ;;  %v3632_v53 = vshll.u32 %v8867_v3, 16  ;;  %v1763_v4 = vshrl.u32 %v8872_v52, 16 }
 0x1af   : > { %7524 = vmatprep.mubr.bf16.mxu1 %v6765_v54  ;;  %v1756_v48 = vrot.slane %v1755_v56, 4  ;;  %v1766_v25 = vshll.u32 %v8872_v52, 16  ;;  %v1751_v5 = vsel %vm8404_vm7, %v1746_v63, %v1750_v49  ;;  %v3628_v10 = vrot.slane %v3626_v1, 4  ;;  %v1491_v56 = vld [vmem:[#allocation2 + $0x98] sm:$0x1] }
 0x1b0   : > { %v3619_v6 = vor.u32 %v3618_v0, %v3615_v57  ;;  %v1772_v12 = vshll.u32 %v8874_v62, 16  ;;  %v3634_v51 = vrot.slane %v3632_v53, 5  ;;  %v1765_v60 = vrot.slane %v1763_v4, 4 }
 0x1b1   : > { %v1761_v17 = vsel %vm8404_vm7, %v1756_v48, %v1760_v55  ;;  %v1768_v9 = vrot.slane %v1766_v25, 5  ;;  %v3629_v24 = vor.u32 %v3628_v10, %v3624_v41  ;;  %v1776_v7 = vshrl.u32 %v8874_v62, 16 }
 0x1b2   : > { %v6607_v58 = vcombine.low %v1751_v5, %v1761_v17  ;;  %v3620_v23 = vrot.slane %v3619_v6, 4  ;;  %v1774_v13 = vrot.slane %v1772_v12, 5  ;;  %v1782_v28 = vshll.u32 %v1490_v11, 16  ;;  %v3381_v5 = vld [vmem:[#allocation2 + $0x90] sm:$0xf] }
 0x1b3   : > { %v1769_v26 = vor.u32 %v1768_v9, %v1765_v60  ;;  %v3637_v31 = vshrl.u32 %v3378_v16, 16  ;;  %v3630_v21 = vrot.slane %v3629_v24, 4  ;;  %v3640_v36 = vshll.u32 %v3378_v16, 16  ;;  %v8909_v16 = vld [vmem:[#allocation2 + $0x94] sm:$0xf] }
 0x1b4   : > { %7336 = vmatprep.mubr.bf16.mxu0 %v6607_v58  ;;  %v3625_v42 = vsel %vm8404_vm7, %v3620_v23, %v3624_v41  ;;  %v3646_v37 = vshll.u32 %v8885_v15, 16  ;;  %v1778_v30 = vrot.slane %v1776_v7, 4  ;;  %v1784_v44 = vrot.slane %v1782_v28, 5  ;;  %v8913_v24 = vld [vmem:[#allocation2 + $0x98] sm:$0x1] }
 0x1b5   : > { %v1770_v39 = vrot.slane %v1769_v26, 4  ;;  %v3639_v35 = vrot.slane %v3637_v31, 4  ;;  %v3635_v47 = vsel %vm8404_vm7, %v3630_v21, %v3634_v51  ;;  %v3642_v49 = vrot.slane %v3640_v36, 5  ;;  %v8919_v21 = vld [vmem:[#allocation2 + $0x9c] sm:$0xf] }
 0x1b6   : > { %v3648_v40 = vrot.slane %v3646_v37, 5  ;;  %v3650_v8 = vshrl.u32 %v8885_v15, 16  ;;  %v6766_v14 = vcombine.low %v3625_v42, %v3635_v47  ;;  %v1779_v22 = vor.u32 %v1778_v30, %v1774_v13 }
 0x1b7   : > { %v1775_v46 = vsel %vm8404_vm7, %v1770_v39, %v1774_v13  ;;  %v3656_v34 = vshll.u32 %v8890_v33, 16  ;;  %v3643_v50 = vor.u32 %v3642_v49, %v3639_v35  ;;  %v1787_v55 = vshrl.u32 %v8893_v45, 16 }
 0x1b8   : > { %v3652_v54 = vrot.slane %v3650_v8, 4  ;;  %v1790_v57 = vshll.u32 %v8893_v45, 16  ;;  %7525 = vmatmul.mubr.bf16.gmra.mrb[16].mxu1 %v6766_v14  ;;  %v1780_v63 = vrot.slane %v1779_v22, 4  ;;  %v1796_v41 = vshll.u32 %v8898_v43, 16 }
 0x1b9   : > { %v3658_v0 = vrot.slane %v3656_v34, 5  ;;  %v1800_v1 = vshrl.u32 %v8898_v43, 16  ;;  %v3644_v48 = vrot.slane %v3643_v50, 4  ;;  %v1789_v4 = vrot.slane %v1787_v55, 4  ;;  %v3384_v50 = vld [vmem:[#allocation2 + $0x9c] sm:$0xf] }
 0x1ba   : > { %v3653_v53 = vor.u32 %v3652_v54, %v3648_v40  ;;  %v1792_v25 = vrot.slane %v1790_v57, 5  ;;  %v1785_v6 = vsel %vm8404_vm7, %v1780_v63, %v1784_v44  ;;  %v1798_v10 = vrot.slane %v1796_v41, 5  ;;  %v8921_v44 = vld [vmem:[#allocation2 + $0xa0] sm:$0xf] }
 0x1bb   : > { %v1802_v11 = vrot.slane %v1800_v1, 4  ;;  %v1806_v12 = vshll.u32 %v1491_v56, 16  ;;  %v6608_v17 = vcombine.low %v1775_v46, %v1785_v6  ;;  %v3649_v51 = vsel %vm8404_vm7, %v3644_v48, %v3648_v40  ;;  %v1492_v46 = vld [vmem:[#allocation2 + $0xa4] sm:$0x1]  ;;  %v8932_v48 = vld [vmem:[#allocation2 + $0xa0] sm:$0xf] }
 0x1bc   : > { %v3654_v60 = vrot.slane %v3653_v53, 4  ;;  %v1793_v9 = vor.u32 %v1792_v25, %v1789_v4  ;;  %v3661_v13 = vshrl.u32 %v3381_v5, 16  ;;  %v3664_v26 = vshll.u32 %v3381_v5, 16  ;;  %v8934_v6 = vld [vmem:[#allocation2 + $0xa8] sm:$0xf] }
 0x1bd   : > { %v1803_v58 = vor.u32 %v1802_v11, %v1798_v10  ;;  %v1808_v23 = vrot.slane %v1806_v12, 5  ;;  %7337 = vmatmul.mubr.bf16.gmra.mrb[52].mxu0 %v6608_v17  ;;  %v3670_v31 = vshll.u32 %v8909_v16, 16  ;;  %v3674_v42 = vshrl.u32 %v8909_v16, 16  ;;  %v8938_v17 = vld [vmem:[#allocation2 + $0xa4] sm:$0x1] }
 0x1be   : > { %v3659_v7 = vsel %vm8404_vm7, %v3654_v60, %v3658_v0  ;;  %v1794_v28 = vrot.slane %v1793_v9, 4  ;;  %v3663_v39 = vrot.slane %v3661_v13, 4  ;;  %v3666_v30 = vrot.slane %v3664_v26, 5 }
 0x1bf   : > { %v6767_v36 = vcombine.low %v3649_v51, %v3659_v7  ;;  %v1804_v37 = vrot.slane %v1803_v58, 4  ;;  %v3672_v47 = vrot.slane %v3670_v31, 5  ;;  %v3676_v49 = vrot.slane %v3674_v42, 4  ;;  %v8943_v31 = vld [vmem:[#allocation2 + $0xac] sm:$0xf] }
 0x1c0   : > { %v1799_v35 = vsel %vm8404_vm7, %v1794_v28, %v1798_v10  ;;  %v3680_v40 = vshll.u32 %v8913_v24, 16  ;;  %v3667_v14 = vor.u32 %v3666_v30, %v3663_v39  ;;  %v1811_v22 = vshrl.u32 %v8919_v21, 16  ;;  %v1493_v39 = vld [vmem:[#allocation2 + $0xb0] sm:$0x1] }
 0x1c1   : > { %7528 = vmatprep.mubr.bf16.mxu1 %v6767_v36  ;;  %v1809_v8 = vsel %vm8404_vm7, %v1804_v37, %v1808_v23  ;;  %v1814_v34 = vshll.u32 %v8919_v21, 16  ;;  %v3677_v56 = vor.u32 %v3676_v49, %v3672_v47  ;;  %v1820_v57 = vshll.u32 %v8921_v44, 16 }
 0x1c2   : > { %v6609_v54 = vcombine.low %v1799_v35, %v1809_v8  ;;  %v3682_v55 = vrot.slane %v3680_v40, 5  ;;  %v3668_v63 = vrot.slane %v3667_v14, 4  ;;  %v1813_v0 = vrot.slane %v1811_v22, 4  ;;  %v3387_v8 = vld [vmem:[#allocation2 + $0xa8] sm:$0xf] }
 0x1c3   : > { %v1816_v41 = vrot.slane %v1814_v34, 5  ;;  %v1824_v1 = vshrl.u32 %v8921_v44, 16  ;;  %v3678_v53 = vrot.slane %v3677_v56, 4  ;;  %v1822_v4 = vrot.slane %v1820_v57, 5  ;;  %v8951_v14 = vld [vmem:[#allocation2 + $0xac] sm:$0xf] }
 0x1c4   : > { %7340 = vmatprep.mubr.bf16.mxu0 %v6609_v54  ;;  %v1830_v25 = vshll.u32 %v1492_v46, 16  ;;  %v3685_v5 = vshrl.u32 %v3384_v50, 16  ;;  %v3673_v10 = vsel %vm8404_vm7, %v3668_v63, %v3672_v47  ;;  %v3688_v51 = vshll.u32 %v3384_v50, 16 }
 0x1c5   : > { %v1817_v11 = vor.u32 %v1816_v41, %v1813_v0  ;;  %v1826_v12 = vrot.slane %v1824_v1, 4  ;;  %v3683_v60 = vsel %vm8404_vm7, %v3678_v53, %v3682_v55  ;;  %v3694_v23 = vshll.u32 %v8932_v48, 16 }
 0x1c6   : > { %v1832_v9 = vrot.slane %v1830_v25, 5  ;;  %v3687_v58 = vrot.slane %v3685_v5, 4  ;;  %v6768_v13 = vcombine.low %v3673_v10, %v3683_v60  ;;  %v3690_v28 = vrot.slane %v3688_v51, 5  ;;  %v8959_v5 = vld [vmem:[#allocation2 + $0xb0] sm:$0x1] }
 0x1c7   : > { %v1818_v26 = vrot.slane %v1817_v11, 4  ;;  %v1827_v7 = vor.u32 %v1826_v12, %v1822_v4  ;;  %v3696_v42 = vrot.slane %v3694_v23, 5  ;;  %v3698_v36 = vshrl.u32 %v8932_v48, 16 }
 0x1c8   : > { %v3704_v37 = vshll.u32 %v8938_v17, 16  ;;  %v1835_v30 = vshrl.u32 %v8934_v6, 16  ;;  %7529 = vmatmul.mubr.bf16.gmra.mrb[20].mxu1 %v6768_v13  ;;  %v3691_v49 = vor.u32 %v3690_v28, %v3687_v58  ;;  %v1838_v40 = vshll.u32 %v8934_v6, 16 }
 0x1c9   : > { %v1823_v35 = vsel %vm8404_vm7, %v1818_v26, %v1822_v4  ;;  %v1828_v47 = vrot.slane %v1827_v7, 4  ;;  %v3700_v46 = vrot.slane %v3698_v36, 4  ;;  %v1844_v50 = vshll.u32 %v8943_v31, 16  ;;  %v8963_v26 = vld [vmem:[#allocation2 + $0xb4] sm:$0xf] }
 0x1ca   : > { %v3706_v22 = vrot.slane %v3704_v37, 5  ;;  %v1837_v34 = vrot.slane %v1835_v30, 4  ;;  %v3692_v56 = vrot.slane %v3691_v49, 4  ;;  %v1840_v55 = vrot.slane %v1838_v40, 5  ;;  %v8968_v37 = vld [vmem:[#allocation2 + $0xb8] sm:$0xf] }
 0x1cb   : > { %v1833_v54 = vsel %vm8404_vm7, %v1828_v47, %v1832_v9  ;;  %v1848_v57 = vshrl.u32 %v8943_v31, 16  ;;  %v3701_v0 = vor.u32 %v3700_v46, %v3696_v42  ;;  %v1846_v41 = vrot.slane %v1844_v50, 5 }
 0x1cc   : > { %v6610_v63 = vcombine.low %v1823_v35, %v1833_v54  ;;  %v1854_v1 = vshll.u32 %v1493_v39, 16  ;;  %v3697_v53 = vsel %vm8404_vm7, %v3692_v56, %v3696_v42  ;;  %v1841_v4 = vor.u32 %v1840_v55, %v1837_v34  ;;  %v3390_v55 = vld [vmem:[#allocation2 + $0xb4] sm:$0xf] }
 0x1cd   : > { %v1850_v25 = vrot.slane %v1848_v57, 4  ;;  %v3709_v10 = vshrl.u32 %v3387_v8, 16  ;;  %v3702_v11 = vrot.slane %v3701_v0, 4  ;;  %v3712_v51 = vshll.u32 %v3387_v8, 16  ;;  %v8972_v8 = vld [vmem:[#allocation2 + $0xbc] sm:$0x1] }
 0x1ce   : > { %7341 = vmatmul.mubr.bf16.gmra.mrb[56].mxu0 %v6610_v63  ;;  %v1856_v12 = vrot.slane %v1854_v1, 5  ;;  %v3718_v60 = vshll.u32 %v8951_v14, 16  ;;  %v1842_v9 = vrot.slane %v1841_v4, 4  ;;  %v3722_v13 = vshrl.u32 %v8951_v14, 16  ;;  %10331 = vst [vmem:[#allocation4_spill] sm:$0xff] %v8972_v8 }
 0x1cf   : > { %v1851_v58 = vor.u32 %v1850_v25, %v1846_v41  ;;  %v3711_v23 = vrot.slane %v3709_v10, 4  ;;  %v3707_v7 = vsel %vm8404_vm7, %v3702_v11, %v3706_v22  ;;  %v3714_v28 = vrot.slane %v3712_v51, 5  ;;  %v8980_v1 = vld [vmem:[#allocation2 + $0xb8] sm:$0xf]  ;;  %v8983_v11 = vld [vmem:[#allocation2 + $0x1c] sm:$0xf] }
 0x1d0   : > { %v3720_v42 = vrot.slane %v3718_v60, 5  ;;  %v3728_v36 = vshll.u32 %v8959_v5, 16  ;;  %v6769_v39 = vcombine.low %v3697_v53, %v3707_v7  ;;  %v1847_v30 = vsel %vm8404_vm7, %v1842_v9, %v1846_v41  ;;  %v8990_v7 = vld [vmem:[#allocation2 + $0xbc] sm:$0x1] }
 0x1d1   : > { %v1852_v35 = vrot.slane %v1851_v58, 4  ;;  %v3724_v47 = vrot.slane %v3722_v13, 4  ;;  %v3715_v49 = vor.u32 %v3714_v28, %v3711_v23  ;;  %v1859_v46 = vshrl.u32 %v8963_v26, 16 }
 0x1d2   : > { %v3730_v40 = vrot.slane %v3728_v36, 5  ;;  %v1862_v22 = vshll.u32 %v8963_v26, 16  ;;  %7532 = vmatprep.mubr.bf16.mxu1 %v6769_v39  ;;  %v1868_v54 = vshll.u32 %v8968_v37, 16  ;;  %v1872_v56 = vshrl.u32 %v8968_v37, 16  ;;  %v3393_v36 = vld [vmem:[#allocation2 + $0xc0] sm:$0xf] }
 0x1d3   : > { %v1857_v34 = vsel %vm8404_vm7, %v1852_v35, %v1856_v12  ;;  %v3725_v50 = vor.u32 %v3724_v47, %v3720_v42  ;;  %v3716_v63 = vrot.slane %v3715_v49, 4  ;;  %v1861_v0 = vrot.slane %v1859_v46, 4  ;;  %v8993_v49 = vld [vmem:[#allocation2 + $0xc4] sm:$0xf] }
 0x1d4   : > { %v6611_v57 = vcombine.low %v1847_v30, %v1857_v34  ;;  %v1864_v41 = vrot.slane %v1862_v22, 5  ;;  %v1870_v4 = vrot.slane %v1868_v54, 5  ;;  %v1874_v25 = vrot.slane %v1872_v56, 4 }
 0x1d5   : > { %v3726_v53 = vrot.slane %v3725_v50, 4  ;;  %v1878_v10 = vshll.u32 %v8972_v8, 16  ;;  %v4175_v12 = vrot.slane %v8983_v11, 5  ;;  %v3733_v60 = vshrl.u32 %v3390_v55, 16  ;;  %v8070_v11 = vld [vmem:[%s10297_s4 + $0x88] sm:$0xff]  }
 0x1d6   : > { %7344 = vmatprep.mubr.bf16.mxu0 %v6611_v57  ;;  %v1865_v51 = vor.u32 %v1864_v41, %v1861_v0  ;;  %v3736_v9 = vshll.u32 %v3390_v55, 16  ;;  %v3721_v58 = vsel %vm8404_vm7, %v3716_v63, %v3720_v42  ;;  %v1875_v13 = vor.u32 %v1874_v25, %v1870_v4  ;;  %v9001_v0 = vld [vmem:[#allocation2 + $0xc8] sm:$0x1] }
 0x1d7   : > { %v3731_v23 = vsel %vm8404_vm7, %v3726_v53, %v3730_v40  ;;  %v3742_v28 = vshll.u32 %v8980_v1, 16  ;;  %v3735_v35 = vrot.slane %v3733_v60, 4  ;;  %v1880_v22 = vrot.slane %v1878_v10, 5 }
 0x1d8   : > { %v6770_v39 = vcombine.low %v3721_v58, %v3731_v23  ;;  %v1866_v30 = vrot.slane %v1865_v51, 4  ;;  %v3738_v47 = vrot.slane %v3736_v9, 5  ;;  %v1876_v46 = vrot.slane %v1875_v13, 4  ;;  %v4103_v13 = vld [vmem:[#allocation2 + $0x18] sm:$0xe] }
 0x1d9   : > { %v3744_v34 = vrot.slane %v3742_v28, 5  ;;  %v3746_v42 = vshrl.u32 %v8980_v1, 16  ;;  %v3752_v40 = vshll.u32 %v8990_v7, 16  ;;  %v3757_v54 = vshrl.u32 %v3393_v36, 16 }
 0x1da   : > { %7533 = vmatmul.mubr.bf16.gmra.mrb[24].mxu1 %v6770_v39  ;;  %v3739_v50 = vor.u32 %v3738_v47, %v3735_v35  ;;  %v3760_v56 = vshll.u32 %v3393_v36, 16  ;;  %v1871_v55 = vsel %vm8404_vm7, %v1866_v30, %v1870_v4  ;;  %v1881_v57 = vsel %vm8404_vm7, %v1876_v46, %v1880_v22  ;;  %v8144_v35 = vld [vmem:[#allocation2 + $0x20] sm:$0x1] }
 0x1db   : > { %v3748_v63 = vrot.slane %v3746_v42, 4  ;;  %v3766_v41 = vshll.u32 %v8993_v49, 16  ;;  %v6612_v53 = vcombine.low %v1871_v55, %v1881_v57  ;;  %v3759_v10 = vrot.slane %v3757_v54, 4  ;;  %v4102_v42 = vld [vmem:[#allocation2 + $0xc] sm:$0xe] }
 0x1dc   : > { %v3740_v25 = vrot.slane %v3739_v50, 4  ;;  %v3762_v51 = vrot.slane %v3760_v56, 5  ;;  %v3770_v58 = vshrl.u32 %v8993_v49, 16  ;;  %v3776_v4 = vshll.u32 %v9001_v0, 16  ;;  %v8145_v50 = vld [vmem:[#allocation2 + $0x10] sm:$0xf] }
 0x1dd   : > { %v3749_v60 = vor.u32 %v3748_v63, %v3744_v34  ;;  %v3768_v9 = vrot.slane %v3766_v41, 5  ;;  %7345 = vmatmul.mubr.bf16.gmra.mrb[60].mxu0 %v6612_v53  ;;  %v4177_v28 = vrot.slane %v4175_v12, 4  ;;  %v3754_v39 = vrot.slane %v3752_v40, 5  ;;  %v8146_v56 = vld [vmem:[#allocation2] sm:$0xf] }
 0x1de   : > { %v3763_v23 = vor.u32 %v3762_v51, %v3759_v10  ;;  %v3772_v30 = vrot.slane %v3770_v58, 4  ;;  %v4178_v47 = vrot.slane %v8144_v35, 5  ;;  %v3745_v46 = vsel %vm8404_vm7, %v3740_v25, %v3744_v34  ;;  %v9014_v55 = vld [vmem:[#allocation2 + $0x4] sm:$0xf]  ;;  %v8148_v10 = vld [vmem:[#allocation2 + $0x14] sm:$0x1] }
 0x1df   : > { %v3750_v36 = vrot.slane %v3749_v60, 4  ;;  %v4168_v54 = vrot.slane %v8145_v50, 5  ;;  %v6621_v57 = vcombine.low %v8146_v56, %v9014_v55  ;;  %v6782_v53 = vrot.slane %v4103_v13, 9  ;;  %v8149_v13 = vld [vmem:[#allocation2 + $0xc] sm:$0xf] }
 0x1e0   : > { %v3764_v63 = vrot.slane %v3763_v23, 4  ;;  %v3773_v41 = vor.u32 %v3772_v30, %v3768_v9  ;;  %v4171_v34 = vrot.slane %v8148_v10, 5  ;;  %v3778_v51 = vrot.slane %v3776_v4, 5  ;;  %v8151_v30 = vld [vmem:[#allocation2 + $0x28] sm:$0xf] }
 0x1e1   : > { %v3755_v40 = vsel %vm8404_vm7, %v3750_v36, %v3754_v39  ;;  %v4170_v60 = vrot.slane %v4168_v54, 4  ;;  %7364 = vmatprep.mubr.bf16.mxu0 %v6621_v57  ;;  %v6781_v35 = vrot.slane %v4102_v42, 9  ;;  %v4176_v50 = vsel %vm9010_vm14, %v6782_v53, %v4175_v12  ;;  %v9027_v36 = vld [vmem:[#allocation2 + $0x10] sm:$0xf]  ;;  %v9037_v42 = vld [vmem:[#allocation2 + $0x1c] sm:$0xf] }
 0x1e2   : > { %v6771_v25 = vcombine.low %v3745_v46, %v3755_v40  ;;  %v3774_v58 = vrot.slane %v3773_v41, 4  ;;  %v4179_v56 = vsel %vm9010_vm14, %v4177_v28, %v4178_v47  ;;  %v6622_v4 = vcombine.low %v8149_v13, %v9027_v36  ;;  %v8152_v47 = vld [vmem:[#allocation2 + $0x18] sm:$0xf] }
 0x1e3   : > { %v4172_v23 = vsel %vm9010_vm14, %v4170_v60, %v4171_v34  ;;  %v6814_v39 = vcombine.low %v4176_v50, %v4179_v56  ;;  %v4182_v46 = vrot.slane %v8151_v30, 5  ;;  %v3769_v12 = vsel %vm8404_vm7, %v3764_v63, %v3768_v9  ;;  %v8072_v9 = vld [vmem:[%s10297_s4 + $0x90] sm:$0xff]   ;;  %v4104_v63 = vld [vmem:[#allocation2 + $0x24] sm:$0xe]  ;;  %v8154_v34 = vld [vmem:[#allocation2 + $0x2c] sm:$0x1] }
 0x1e4   : > { %7536 = vmatprep.mubr.bf16.mxu1 %v6771_v25  ;;  %v3779_v28 = vsel %vm8404_vm7, %v3774_v58, %v3778_v51  ;;  %v6623_v57 = vcombine.low %v8152_v47, %v9037_v42  ;;  %v4169_v41 = vsel %vm9010_vm14, %v6781_v35, %v4168_v54  ;;  %v4185_v25 = vrot.slane %v8154_v34, 5  ;;  %v8155_v51 = vld [vmem:[#allocation2 + $0x34] sm:$0xf]  ;;  %v8156_v58 = vld [vmem:[#allocation2 + $0x40] sm:$0xf]  ;;  %v8075_v13 = vld [vmem:[%s10297_s4 + $0x98] sm:$0xff]  }
 0x1e5   : > { %v6772_v40 = vcombine.low %v3769_v12, %v3779_v28  ;;  %7365 = vmatmul.mubr.bf16.vlgmr.msra.gmra.mrb[32].mxu0 %v6622_v4  ;;  %v6813_v53 = vcombine.low %v4169_v41, %v4172_v23  ;;  %v4184_v10 = vrot.slane %v4182_v46, 4  ;;  %v4189_v60 = vrot.slane %v8155_v51, 5  ;;  %v8157_v50 = vld [vmem:[#allocation2 + $0x24] sm:$0xf]  ;;  %v9048_v56 = vld [vmem:[#allocation2 + $0x28] sm:$0xf] }
 0x1e6   : > { %7368 = vmatprep.mubr.bf16.mxu0 %v6623_v57  ;;  %7397 = vmatpush3.bf16.msra.mxu0 %v8802_v29  ;;  %v4196_v54 = vrot.slane %v8156_v58, 5  ;;  %v6783_v35 = vrot.slane %v4104_v63, 9  ;;  %v6624_v23 = vcombine.low %v8157_v50, %v9048_v56  ;;  %v8159_v4 = vld [vmem:[#allocation2 + $0x30] sm:$0xf]  ;;  %v9054_v30 = vld [vmem:[#allocation2 + $0x34] sm:$0xf] }
 0x1e7   : > { %7537 = vmatmul.mubr.bf16.gmra.mrb[28].mxu1 %v6772_v40  ;;  %7398 = vmatprep.subr.bf16.mxu0 %v8070_v11  ;;  %v4186_v29 = vsel %vm9010_vm14, %v4184_v10, %v4185_v25  ;;  %v6625_v12 = vcombine.low %v8159_v4, %v9054_v30  ;;  %v8058_v47 = vld [vmem:[%s10297_s4 + $0x188] sm:$0xff]   ;;  %v4106_v57 = vld [vmem:[#allocation2 + $0x3c] sm:$0xe]  ;;  %v4191_v41 = vrot.slane %v4189_v60, 4  ;;  %v8161_v34 = vld [vmem:[%s10297_s4 + $0x180] sm:$0xff]  }
 0x1e8   : > { %7556 = vmatprep.mubr.bf16.mxu1 %v6813_v53  ;;  %v4183_v28 = vsel %vm9010_vm14, %v6783_v35, %v4182_v46  ;;  %v4198_v53 = vrot.slane %v4196_v54, 4  ;;  %v9062_v63 = vld [vmem:[#allocation2 + $0x48] sm:$0xe]  ;;  %v8077_v46 = vld [vmem:[%s10297_s4 + $0xa0] sm:$0xff]   ;;  %v8162_v25 = vld [vmem:[#allocation2 + $0x38] sm:$0x1] }
 0x1e9   : > { %v6815_v40 = vcombine.low %v4183_v28, %v4186_v29  ;;  %v4192_v51 = vrot.slane %v8162_v25, 5  ;;  %v6785_v58 = vrot.slane %v4106_v57, 9  ;;  %v8163_v35 = vld [vmem:[#allocation2 + $0x44] sm:$0x1]  ;;  %v9073_v50 = vld [vmem:[#allocation2 + $0x54] sm:$0xe] }
 0x1ea   : > { %7399 = vmatpush3.bf16.msra.mxu0 %v8070_v11  ;;  %v4105_v11 = vld [vmem:[#allocation2 + $0x30] sm:$0xe]  ;;  %v8165_v4 = vld [vmem:[#allocation2 + $0x3c] sm:$0xf]  ;;  %v8167_v57 = vld [vmem:[#allocation2 + $0x48] sm:$0xf] }
 0x1eb   : > { %7400 = vmatprep.subr.bf16.mxu0 %v8072_v9  ;;  %v6784_v10 = vrot.slane %v4105_v11, 9  ;;  %v8061_v28 = vld [vmem:[%s10297_s4 + $0x190] sm:$0xff]   ;;  %v4238_v29 = vrot.slane %v8885_v15, 5  ;;  %v6786_v8 = vrot.slane %v9062_v63, 9  ;;  %v6787_v25 = vrot.slane %v9073_v50, 9  ;;  %v8064_v50 = vld [vmem:[%s10297_s4 + $0x198] sm:$0xff]  }
 0x1ed   : > { %7369 = vmatmul.mubr.bf16.gmra.mrb[36].mxu0 %v6624_v23  ;;  %v4190_v23 = vsel %vm9010_vm14, %v6784_v10, %v4189_v60  ;;  %v4193_v60 = vsel %vm9010_vm14, %v4191_v41, %v4192_v51  ;;  %v4197_v10 = vsel %vm9010_vm14, %v6785_v58, %v4196_v54  ;;  %v8080_v54 = vld [vmem:[%s10297_s4 + $0xa8] sm:$0xff]   ;;  %v4240_v51 = vrot.slane %v4238_v29, 4 }
 0x1ee   : > { %7372 = vmatprep.mubr.bf16.mxu0 %v6625_v12  ;;  %7401 = vmatpush3.bf16.msra.mxu0 %v8072_v9  ;;  %v4199_v9 = vrot.slane %v8163_v35, 5  ;;  %v9077_v12 = vld [vmem:[#allocation2 + $0x40] sm:$0xf]  ;;  %v4112_v35 = vld [vmem:[#allocation2 + $0x84] sm:$0xe]  ;;  %v6816_v63 = vcombine.low %v4190_v23, %v4193_v60  ;;  %v6792_v60 = vrot.slane %v4113_v32, 9 }
 0x1ef   : > { %7557 = vmatmul.mubr.bf16.vlgmr.msra.gmra.mrb[0].mxu1 %v6814_v39  ;;  %7402 = vmatprep.subr.bf16.mxu0 %v8075_v13  ;;  %v9070_v39 = vld [vmem:[#allocation2 + $0x4c] sm:$0xf]  ;;  %10334 = vst [vmem:[#allocation5_spill] sm:$0xff] %v9077_v12  ;;  %v6626_v11 = vcombine.low %v8165_v4, %v9077_v12  ;;  %v8169_v12 = vld [vmem:[#allocation2 + $0x50] sm:$0x1]  ;;  %v6791_v15 = vrot.slane %v4112_v35, 9 }
 0x1f0   : > { %7589 = vmatpush3.bf16.msra.mxu1 %v8161_v34  ;;  %7560 = vmatprep.mubr.bf16.mxu1 %v6815_v40  ;;  %v9083_v40 = vld [vmem:[#allocation2 + $0x4c] sm:$0xf]  ;;  %v4200_v4 = vsel %vm9010_vm14, %v4198_v53, %v4199_v9  ;;  %v10336_v41 = vrot.slane %v9070_v39, 5  ;;  %v10337_v9 = vrot.slane %v8811_v38, 5  ;;  %v9109_v35 = vld [vmem:[#allocation2 + $0x58] sm:$0xf] }
 0x1f1   : > { %7590 = vmatprep.subr.bf16.mxu1 %v8058_v47  ;;  %10335 = vst [vmem:[#allocation6_spill] sm:$0xff] %v9083_v40  ;;  %v6627_v34 = vcombine.low %v8167_v57, %v9083_v40  ;;  %v4206_v57 = vrot.slane %v8169_v12, 5  ;;  %v4213_v40 = vrot.slane %v8813_v59, 5  ;;  %v6817_v58 = vcombine.low %v4197_v10, %v4200_v4  ;;  %v4114_v12 = vld [vmem:[#allocation2 + $0x9c] sm:$0xe] }
 0x1f2   : > { %7403 = vmatpush3.bf16.msra.mxu0 %v8075_v13  ;;  %v4205_v53 = vrot.slane %v10336_v41, 4  ;;  %v4241_v13 = vrot.slane %v8890_v33, 5  ;;  %v4212_v59 = vrot.slane %v10337_v9, 4  ;;  %v8170_v41 = vld [vmem:[#allocation2 + $0x54] sm:$0xf]  ;;  %v9114_v23 = vsel %vm9010_vm14, %v6791_v15, %v4238_v29 }
 0x1f3   : > { %7404 = vmatprep.subr.bf16.mxu0 %v8077_v46  ;;  %v6628_v33 = vcombine.low %v8170_v41, %v9109_v35  ;;  %v4248_v10 = vrot.slane %v8913_v24, 5  ;;  %v4252_v4 = vrot.slane %v8932_v48, 5  ;;  %v4115_v9 = vld [vmem:[#allocation2 + $0xa8] sm:$0xe]  ;;  %v8082_v29 = vld [vmem:[%s10297_s4 + $0xb0] sm:$0xff]   ;;  %v6793_v24 = vrot.slane %v4114_v12, 9 }
 0x1f4   : > { %7591 = vmatpush3.bf16.msra.mxu1 %v8058_v47  ;;  %v4245_v47 = vrot.slane %v8909_v16, 5  ;;  %v4207_v32 = vsel %vm9010_vm14, %v4205_v53, %v4206_v57  ;;  %v8068_v48 = vld [vmem:[%s10297_s4 + $0x1a0] sm:$0xff]   ;;  %v4255_v57 = vrot.slane %v8938_v17, 5  ;;  %v4214_v53 = vsel %vm9010_vm14, %v4212_v59, %v4213_v40  ;;  %v8085_v40 = vld [vmem:[%s10297_s4 + $0xb8] sm:$0xff]  }
 0x1f5   : > { %7373 = vmatmul.mubr.bf16.gmra.mrb[40].mxu0 %v6626_v11  ;;  %7592 = vmatprep.subr.bf16.mxu1 %v8061_v28  ;;  %v9118_v11 = vsel %vm9010_vm14, %v4240_v51, %v4241_v13  ;;  %v4254_v13 = vrot.slane %v4252_v4, 4  ;;  %v9150_v12 = vsel %vm9010_vm14, %v6793_v24, %v4252_v4  ;;  %v10338_v59 = vrot.slane %v9070_v39, 5  ;;  %v9168_v4 = vld [vmem:[#allocation2 + $0x64] sm:$0xf]  ;;  %v4117_v24 = vld [vmem:[#allocation2 + $0xc0] sm:$0xe] }
 0x1f6   : > { %7376 = vmatprep.mubr.bf16.mxu0 %v6627_v34  ;;  %7405 = vmatpush3.bf16.msra.mxu0 %v8077_v46  ;;  %v6823_v16 = vcombine.low %v9114_v23, %v9118_v11  ;;  %v4247_v34 = vrot.slane %v4245_v47, 4  ;;  %v4217_v46 = vrot.slane %v8828_v19, 5  ;;  %v9132_v15 = vsel %vm9010_vm14, %v6792_v60, %v4245_v47 }
 0x1f7   : > { %7561 = vmatmul.mubr.bf16.gmra.mrb[4].mxu1 %v6816_v63  ;;  %7406 = vmatprep.subr.bf16.mxu0 %v8080_v54  ;;  %v4224_v63 = vrot.slane %v8840_v61, 5  ;;  %v6794_v47 = vrot.slane %v4115_v9, 9  ;;  %v9154_v41 = vsel %vm9010_vm14, %v4254_v13, %v4255_v57  ;;  %v10339_v60 = vrot.slane %v8811_v38, 5  ;;  %v8073_v38 = vld [vmem:[%s10297_s4 + $0x1a8] sm:$0xff]   ;;  %v4109_v57 = vld [vmem:[#allocation2 + $0x60] sm:$0xe] }
 0x1f8   : > { %7564 = vmatprep.mubr.bf16.mxu1 %v6817_v58  ;;  %7593 = vmatpush3.bf16.msra.mxu1 %v8061_v28  ;;  %v9139_v51 = vsel %vm9010_vm14, %v4247_v34, %v4248_v10  ;;  %v4259_v28 = vrot.slane %v8951_v14, 5  ;;  %v4262_v14 = vrot.slane %v8959_v5, 5  ;;  %v8172_v10 = vld [vmem:[#allocation2 + $0x60] sm:$0xf]  ;;  %v6825_v9 = vcombine.low %v9150_v12, %v9154_v41  ;;  %v2478_v41 = vld [vmem:[#allocation2 + $0xc] sm:$0xe] }
 0x1f9   : > { %7594 = vmatprep.subr.bf16.mxu1 %v8064_v50  ;;  %v6824_v58 = vcombine.low %v9132_v15, %v9139_v51  ;;  %v4211_v34 = vsel %vm9010_vm14, %v6787_v25, %v10339_v60  ;;  %v6629_v5 = vcombine.low %v8172_v10, %v9168_v4  ;;  %v4273_v25 = vrot.slane %v8993_v49, 5  ;;  %v9195_v49 = vld [vmem:[%s10297_s4 + $0xc0] sm:$0xff]   ;;  %v8078_v60 = vld [vmem:[%s10297_s4 + $0x1b0] sm:$0xff]  }
 0x1fa   : > { %7407 = vmatpush3.bf16.msra.mxu0 %v8080_v54  ;;  %v4261_v17 = vrot.slane %v4259_v28, 4  ;;  %v4204_v54 = vsel %vm9010_vm14, %v6786_v8, %v10338_v59  ;;  %v9178_v8 = vsel %vm9010_vm14, %v6794_v47, %v4259_v28  ;;  %v4226_v28 = vrot.slane %v4224_v63, 4  ;;  %v9237_v61 = vld [vmem:[%s10297_s4 + $0x1c0] sm:$0xff]  }
 0x1fb   : > { %7408 = vmatprep.subr.bf16.mxu0 %v8082_v29  ;;  %v6818_v13 = vcombine.low %v4204_v54, %v4207_v32  ;;  %v6796_v47 = vrot.slane %v4117_v24, 9  ;;  %v4275_v59 = vrot.slane %v4273_v25, 4  ;;  %v4110_v54 = vld [vmem:[#allocation2 + $0x6c] sm:$0xe]  ;;  %v6788_v10 = vrot.slane %v4109_v57, 9 }
 0x1fc   : > { %7595 = vmatpush3.bf16.msra.mxu1 %v8064_v50  ;;  %v9182_v39 = vsel %vm9010_vm14, %v4261_v17, %v4262_v14  ;;  %v6819_v50 = vcombine.low %v4211_v34, %v4214_v53  ;;  %v4276_v17 = vrot.slane %v9001_v0, 5  ;;  %v8174_v53 = vld [vmem:[#allocation2 + $0x68] sm:$0x1]  ;;  %v6789_v24 = vrot.slane %v4110_v54, 9 }
 0x1fd   : > { %7377 = vmatmul.mubr.bf16.gmra.mrb[44].mxu0 %v6628_v33  ;;  %7596 = vmatprep.subr.bf16.mxu1 %v8068_v48  ;;  %v4219_v33 = vrot.slane %v4217_v46, 4  ;;  %v6826_v32 = vcombine.low %v9178_v8, %v9182_v39  ;;  %v4220_v14 = vrot.slane %v8174_v53, 5  ;;  %v9203_v0 = vsel %vm9010_vm14, %v6796_v47, %v4273_v25  ;;  %v8175_v25 = vld [vmem:[#allocation2 + $0x6c] sm:$0xf] }
 0x1fe   : > { %7380 = vmatprep.mubr.bf16.mxu0 %v6629_v5  ;;  %7409 = vmatpush3.bf16.msra.mxu0 %v8082_v29  ;;  %v4227_v29 = vrot.slane %v8844_v2, 5  ;;  %v9207_v34 = vsel %vm9010_vm14, %v4275_v59, %v4276_v17  ;;  %v6631_v57 = vcombine.low %v8848_v18, %v8853_v20  ;;  %v4234_v18 = vrot.slane %v8867_v3, 5 }
 0x1ff   : > { %7565 = vmatmul.mubr.bf16.gmra.mrb[8].mxu1 %v6818_v13  ;;  %7410 = vmatprep.subr.bf16.mxu0 %v8085_v40  ;;  %v4221_v5 = vsel %vm9010_vm14, %v4219_v33, %v4220_v14  ;;  %v6828_v2 = vcombine.low %v9203_v0, %v9207_v34  ;;  %v4225_v33 = vsel %vm9010_vm14, %v6789_v24, %v4224_v63  ;;  %v2530_v14 = vrot.slane %v9014_v55, 5  ;;  %v2482_v34 = vld [vmem:[#allocation2 + $0x3c] sm:$0xe] }
 0x200   : > { %7568 = vmatprep.mubr.bf16.mxu1 %v6819_v50  ;;  %7597 = vmatpush3.bf16.msra.mxu1 %v8068_v48  ;;  %v4231_v48 = vrot.slane %v8863_v27, 5  ;;  %v4228_v13 = vsel %vm9010_vm14, %v4226_v28, %v4227_v29  ;;  %v9216_v50 = vld [vmem:[#allocation2 + $0x70] sm:$0xf]  ;;  %v4218_v27 = vsel %vm9010_vm14, %v6788_v10, %v4217_v46  ;;  %v8083_v28 = vld [vmem:[%s10297_s4 + $0x1b8] sm:$0xff]   ;;  %v6633_v3 = vcombine.low %v8893_v45, %v8898_v43  ;;  %v8177_v29 = vld [vmem:[#allocation2 + $0x8] sm:$0x1] }
 0x201   : > { %7598 = vmatprep.subr.bf16.mxu1 %v8073_v38  ;;  %v6630_v47 = vcombine.low %v8175_v25, %v9216_v50  ;;  %v6821_v19 = vcombine.low %v4225_v33, %v4228_v13  ;;  %v4111_v46 = vld [vmem:[#allocation2 + $0x78] sm:$0xe]  ;;  %v4266_v54 = vrot.slane %v8980_v1, 5  ;;  %v2532_v43 = vrot.slane %v2530_v14, 4 }
 0x202   : > { %7411 = vmatpush3.bf16.msra.mxu0 %v8085_v40  ;;  %v6820_v40 = vcombine.low %v4218_v27, %v4221_v5  ;;  %v4233_v59 = vrot.slane %v4231_v48, 4  ;;  %v6790_v20 = vrot.slane %v4111_v46, 9  ;;  %v6635_v10 = vcombine.low %v8934_v6, %v8943_v31  ;;  %v10340_v46 = vld [vmem:[#allocation5_spill] sm:$0xff] }
 0x203   : > { %7444 = vmatprep.subr.bf16.mxu0 %v9195_v49  ;;  %v4268_v55 = vrot.slane %v4266_v54, 4  ;;  %v2537_v6 = vrot.slane %v9027_v36, 5  ;;  %v4269_v31 = vrot.slane %v8990_v7, 5  ;;  %v2544_v1 = vrot.slane %v9037_v42, 5  ;;  %v8178_v7 = vld [vmem:[#allocation2 + $0x14] sm:$0x1] }
 0x204   : > { %7599 = vmatpush3.bf16.msra.mxu1 %v8073_v38  ;;  %v4235_v63 = vsel %vm9010_vm14, %v4233_v59, %v4234_v18  ;;  %v6632_v38 = vcombine.low %v8872_v52, %v8874_v62  ;;  %v4232_v17 = vsel %vm9010_vm14, %v6790_v20, %v4231_v48  ;;  %v2477_v52 = vld [vmem:[#allocation2] sm:$0xe]  ;;  %v6634_v62 = vcombine.low %v8919_v21, %v8921_v44  ;;  %v4116_v44 = vld [vmem:[#allocation2 + $0xb4] sm:$0xe]  ;;  %v2479_v42 = vld [vmem:[#allocation2 + $0x18] sm:$0xe] }
 0x205   : > { %7381 = vmatmul.mubr.bf16.gmra.mrb[48].mxu0 %v6630_v47  ;;  %7600 = vmatprep.subr.bf16.mxu1 %v8078_v60  ;;  %v6822_v53 = vcombine.low %v4232_v17, %v4235_v63  ;;  %v6645_v45 = vrot.slane %v2477_v52, 9  ;;  %v4270_v15 = vsel %vm9010_vm14, %v4268_v55, %v4269_v31  ;;  %v6636_v51 = vcombine.low %v8963_v26, %v8968_v37  ;;  %v8179_v48 = vld [vmem:[#allocation2 + $0x20] sm:$0x1]  ;;  %v8180_v20 = vld [vmem:[#allocation2 + $0x2c] sm:$0x1] }
 0x206   : > { %7384 = vmatprep.mubr.bf16.mxu0 %v6631_v57  ;;  %v2540_v5 = vrot.slane %v8178_v7, 5  ;;  %v2547_v24 = vrot.slane %v8179_v48, 5  ;;  %v6646_v26 = vrot.slane %v2478_v41, 9  ;;  %v2551_v25 = vrot.slane %v9048_v56, 5  ;;  %v2480_v56 = vld [vmem:[#allocation2 + $0x24] sm:$0xe] }
 0x207   : > { %7569 = vmatmul.mubr.bf16.gmra.mrb[12].mxu1 %v6820_v40  ;;  %v2531_v23 = vsel %vm9010_vm14, %v6645_v45, %v2530_v14  ;;  %v6647_v47 = vrot.slane %v2479_v42, 9  ;;  %v2558_v57 = vrot.slane %v9054_v30, 5  ;;  %v2565_v18 = vrot.slane %v10340_v46, 5  ;;  %v8084_v30 = vld [vmem:[#allocation2 + $0x18] sm:$0xff]   ;;  %v8103_v14 = vld [vmem:[%s10297_s4 + $0xd0] sm:$0xff]   ;;  %v8089_v41 = vld [vmem:[%s10297_s4 + $0x1c8] sm:$0xff]  }
 0x208   : > { %7572 = vmatprep.mubr.bf16.mxu1 %v6821_v19  ;;  %7601 = vmatpush3.bf16.msra.mxu1 %v8078_v60  ;;  %v2533_v60 = vrot.slane %v8177_v29, 5  ;;  %v2538_v40 = vsel %vm9010_vm14, %v6646_v26, %v2537_v6  ;;  %v2481_v19 = vld [vmem:[#allocation2 + $0x30] sm:$0xe]  ;;  %v2554_v63 = vrot.slane %v8180_v20, 5  ;;  %v6648_v52 = vrot.slane %v2480_v56, 9 }
 0x209   : > { %7602 = vmatprep.subr.bf16.mxu1 %v8083_v28  ;;  %v2545_v39 = vsel %vm9010_vm14, %v6647_v47, %v2544_v1  ;;  %v2560_v59 = vrot.slane %v2558_v57, 4  ;;  %v2483_v45 = vld [vmem:[#allocation2 + $0x48] sm:$0xe]  ;;  %v8088_v48 = vld [vmem:[#allocation2 + $0x30] sm:$0xff]   ;;  %v2486_v47 = vld [vmem:[#allocation2 + $0x6c] sm:$0xe] }
 0x20a   : > { %v2534_v21 = vsel %vm9010_vm14, %v2532_v43, %v2533_v60  ;;  %v2586_v43 = vrot.slane %v9168_v4, 5  ;;  %v2552_v29 = vsel %vm9010_vm14, %v6648_v52, %v2551_v25  ;;  %v8092_v46 = vld [vmem:[%s10297_s4 + $0x1d0] sm:$0xff]   ;;  %v4988_v4 = vld [vmem:[#allocation2 + $0x1c] sm:$0xf] }
 0x20b   : > { %v6677_v11 = vcombine.low %v2531_v23, %v2534_v21 }
 0x20c   : > { %7603 = vmatpush3.bf16.msra.mxu1 %v8083_v28  ;;  %v2553_v28 = vrot.slane %v2551_v25, 4  ;;  %v2588_v42 = vrot.slane %v2586_v43, 4 }
 0x20d   : > { %7385 = vmatmul.mubr.bf16.gmra.mrb[52].mxu0 %v6632_v38  ;;  %7636 = vmatprep.subr.bf16.mxu1 %v9237_v61  ;;  %v8181_v38 = vld [vmem:[#allocation2 + $0x38] sm:$0x1] }
 0x20e   : > { %7388 = vmatprep.mubr.bf16.mxu0 %v6633_v3  ;;  %v2561_v17 = vrot.slane %v8181_v38, 5  ;;  %v10341_v3 = vld [vmem:[#allocation6_spill] sm:$0xff]  ;;  %v8189_v38 = vld [vmem:[#allocation2 + $0x88] sm:$0xf] }
 0x20f   : > { %7573 = vmatmul.mubr.bf16.gmra.mrb[16].mxu1 %v6822_v53  ;;  %v2572_v53 = vrot.slane %v10341_v3, 5 }
 0x210   : > { %7576 = vmatprep.mubr.bf16.mxu1 %v6823_v16  ;;  %v6795_v16 = vrot.slane %v4116_v44, 9  ;;  %v2562_v0 = vsel %vm9010_vm14, %v2560_v59, %v2561_v17  ;;  %v2593_v44 = vrot.slane %v9216_v50, 5  ;;  %v2607_v17 = vrot.slane %v8189_v38, 5 }
 0x211   : > { %v2574_v21 = vrot.slane %v2572_v53, 4 }
 0x212   : > { %v4267_v12 = vsel %vm9010_vm14, %v6795_v16, %v4266_v54  ;;  %v6649_v54 = vrot.slane %v2481_v19, 9  ;;  %v6650_v16 = vrot.slane %v2482_v34, 9 }
 0x213   : > { %v6827_v36 = vcombine.low %v4267_v12, %v4270_v15  ;;  %v6651_v15 = vrot.slane %v2483_v45, 9  ;;  %v8087_v12 = vld [vmem:[#allocation2 + $0x24] sm:$0xff]  }
 0x214   : > { %v2559_v60 = vsel %vm9010_vm14, %v6649_v54, %v2558_v57  ;;  %v8186_v57 = vld [vmem:[#allocation2 + $0x68] sm:$0x1]  ;;  %v2489_v54 = vld [vmem:[#allocation2 + $0x90] sm:$0xe] }
 0x215   : > { %7389 = vmatmul.mubr.bf16.gmra.mrb[56].mxu0 %v6634_v62  ;;  %v2555_v62 = vsel %vm9010_vm14, %v2553_v28, %v2554_v63  ;;  %v2573_v26 = vsel %vm9010_vm14, %v6651_v15, %v2572_v53  ;;  %v8112_v45 = vld [vmem:[%s10297_s4 + $0xe8] sm:$0xff]   ;;  %v6657_v15 = vrot.slane %v2489_v54, 9 }
 0x216   : > { %7392 = vmatprep.mubr.bf16.mxu0 %v6635_v10  ;;  %v8182_v10 = vld [vmem:[#allocation2 + $0x44] sm:$0x1]  ;;  %v6680_v23 = vcombine.low %v2552_v29, %v2555_v62  ;;  %v2488_v62 = vld [vmem:[#allocation2 + $0x84] sm:$0xe] }
 0x217   : > { %7577 = vmatmul.mubr.bf16.gmra.mrb[20].mxu1 %v6824_v58  ;;  %v2539_v58 = vrot.slane %v2537_v6, 4  ;;  %v2568_v55 = vrot.slane %v8182_v10, 5  ;;  %v9312_v6 = vld [vmem:[#allocation2 + $0x7c] sm:$0xf]  ;;  %v6656_v50 = vrot.slane %v2488_v62, 9 }
 0x218   : > { %7580 = vmatprep.mubr.bf16.mxu1 %v6825_v9  ;;  %v2546_v9 = vrot.slane %v2544_v1, 4  ;;  %v2600_v31 = vrot.slane %v9312_v6, 5  ;;  %v8107_v1 = vld [vmem:[%s10297_s4 + $0xd8] sm:$0xff]  }
 0x219   : > { %v2541_v13 = vsel %vm9010_vm14, %v2539_v58, %v2540_v5  ;;  %v2485_v5 = vld [vmem:[#allocation2 + $0x60] sm:$0xe] }
 0x21a   : > { %v2548_v27 = vsel %vm9010_vm14, %v2546_v9, %v2547_v24  ;;  %v6678_v8 = vcombine.low %v2538_v40, %v2541_v13  ;;  %v2566_v24 = vsel %vm9010_vm14, %v6650_v16, %v2565_v18  ;;  %v8185_v13 = vld [vmem:[#allocation2 + $0x5c] sm:$0x1]  ;;  %v2589_v40 = vrot.slane %v8186_v57, 5  ;;  %v8191_v16 = vld [vmem:[#allocation2 + $0x8c] sm:$0x1]  ;;  %v8099_v57 = vld [vmem:[%s10297_s4 + $0x1e0] sm:$0xff]  }
 0x21b   : > { %v6679_v33 = vcombine.low %v2545_v39, %v2548_v27  ;;  %v2582_v25 = vrot.slane %v8185_v13, 5  ;;  %v2487_v39 = vld [vmem:[#allocation2 + $0x78] sm:$0xe]  ;;  %v6653_v59 = vrot.slane %v2485_v5, 9  ;;  %v8192_v5 = vld [vmem:[#allocation2 + $0x98] sm:$0x1] }
 0x21c   : > { %v6655_v52 = vrot.slane %v2487_v39, 9 }
 0x21d   : > { %7393 = vmatmul.mubr.bf16.gmra.mrb[60].mxu0 %v6636_v51  ;;  %v2484_v51 = vld [vmem:[#allocation2 + $0x54] sm:$0xe] }
 0x21e   : > { %7412 = vmatprep.mubr.bf16.mxu0 %v6677_v11  ;;  %v6681_v11 = vcombine.low %v2559_v60, %v2562_v0  ;;  %v6652_v56 = vrot.slane %v2484_v51, 9  ;;  %v9362_v0 = vsel %vm9010_vm14, %v6653_v59, %v2586_v43  ;;  %v9389_v10 = vsel %vm9010_vm14, %v6655_v52, %v2600_v31  ;;  %v8091_v51 = vld [vmem:[#allocation2 + $0x48] sm:$0xff]  }
 0x21f   : > { %7581 = vmatmul.mubr.bf16.gmra.mrb[24].mxu1 %v6826_v32  ;;  %v8102_v32 = vld [vmem:[%s10297_s4 + $0xc8] sm:$0xff]  }
 0x220   : > { %7584 = vmatprep.mubr.bf16.mxu1 %v6827_v36  ;;  %v8184_v36 = vld [vmem:[#allocation2 + $0x50] sm:$0x1] }
 0x221   : > { %v2575_v7 = vrot.slane %v8184_v36, 5 }
 0x223   : > { %v2576_v27 = vsel %vm9010_vm14, %v2574_v21, %v2575_v7  ;;  %v8090_v21 = vld [vmem:[#allocation2 + $0x3c] sm:$0xff]  }
 0x224   : > { %v6683_v3 = vcombine.low %v2573_v26, %v2576_v27  ;;  %v2490_v26 = vld [vmem:[#allocation2 + $0x9c] sm:$0xe] }
 0x225   : > { %7413 = vmatmul.mubr.bf16.vlgmr.msra.gmra.mrb[32].mxu0 %v6678_v8  ;;  %v2595_v8 = vrot.slane %v2593_v44, 4 }
 0x226   : > { %7416 = vmatprep.mubr.bf16.mxu0 %v6679_v33  ;;  %7445 = vmatpush3.bf16.msra.mxu0 %v9195_v49  ;;  %v2579_v49 = vrot.slane %v9109_v35, 5  ;;  %v8108_v33 = vld [vmem:[%s10297_s4 + $0xe0] sm:$0xff]  }
 0x227   : > { %7585 = vmatmul.mubr.bf16.gmra.mrb[28].mxu1 %v6828_v2  ;;  %7446 = vmatprep.subr.bf16.mxu0 %v8102_v32  ;;  %v2567_v2 = vrot.slane %v2565_v18, 4  ;;  %v9350_v18 = vsel %vm9010_vm14, %v2588_v42, %v2589_v40  ;;  %v2617_v42 = vrot.slane %v8192_v5, 5 }
 0x228   : > { %7604 = vmatprep.mubr.bf16.mxu1 %v8084_v30  ;;  %v2581_v58 = vrot.slane %v2579_v49, 4  ;;  %v8187_v30 = vld [vmem:[#allocation2 + $0x74] sm:$0x1]  ;;  %v9356_v53 = vsel %vm9010_vm14, %v6652_v56, %v2579_v49  ;;  %v6685_v29 = vcombine.low %v9362_v0, %v9350_v18  ;;  %v10342_v0 = vld [vmem:[#allocation4_spill] sm:$0xff] }
 0x229   : > { %v2569_v9 = vsel %vm9010_vm14, %v2567_v2, %v2568_v55  ;;  %v2596_v20 = vrot.slane %v8187_v30, 5  ;;  %v8190_v49 = vld [vmem:[#allocation2 + $0x94] sm:$0xf]  ;;  %v4987_v55 = vld [vmem:[#allocation2 + $0x18] sm:$0xf] }
 0x22a   : > { %7447 = vmatpush3.bf16.msra.mxu0 %v8102_v32  ;;  %v2602_v32 = vrot.slane %v2600_v31, 4  ;;  %v6682_v28 = vcombine.low %v2566_v24, %v2569_v9  ;;  %v9343_v19 = vsel %vm9010_vm14, %v2581_v58, %v2582_v25  ;;  %v2614_v2 = vrot.slane %v8190_v49, 5  ;;  %v8113_v24 = vld [vmem:[%s10297_s4 + $0xf0] sm:$0xff]  }
 0x22b   : > { %7448 = vmatprep.subr.bf16.mxu0 %v8103_v14  ;;  %v9366_v34 = vsel %vm9010_vm14, %v2595_v8, %v2596_v20  ;;  %v6684_v43 = vcombine.low %v9356_v53, %v9343_v19  ;;  %v5045_v58 = vshll.u32 %v4988_v4, 16  ;;  %v9400_v9 = vsel %vm9010_vm14, %v6656_v50, %v2607_v17  ;;  %v8193_v8 = vld [vmem:[#allocation2 + $0xa0] sm:$0xf]  ;;  %v4993_v49 = vld [vmem:[#allocation2 + $0x30] sm:$0xf] }
 0x22c   : > { %v9404_v36 = vsel %vm9010_vm14, %v6657_v15, %v2614_v2  ;;  %v2616_v7 = vrot.slane %v2614_v2, 4  ;;  %v5036_v13 = vshrl.u32 %v4987_v55, 16  ;;  %v5039_v25 = vshll.u32 %v4987_v55, 16  ;;  %v8093_v2 = vld [vmem:[#allocation2 + $0x54] sm:$0xff]   ;;  %v8094_v50 = vld [vmem:[#allocation2 + $0x60] sm:$0xff]  }
 0x22d   : > { %7417 = vmatmul.mubr.bf16.gmra.mrb[36].mxu0 %v6680_v23  ;;  %v4991_v23 = vld [vmem:[#allocation2 + $0x28] sm:$0xf]  ;;  %v2621_v39 = vrot.slane %v8193_v8, 5  ;;  %v9419_v56 = vrot.slane %v5045_v58, 5  ;;  %v2492_v19 = vld [vmem:[#allocation2 + $0xb4] sm:$0xe] }
 0x22e   : > { %7420 = vmatprep.mubr.bf16.mxu0 %v6681_v11  ;;  %7449 = vmatpush3.bf16.msra.mxu0 %v8103_v14  ;;  %v6654_v14 = vrot.slane %v2486_v47, 9  ;;  %v2609_v11 = vrot.slane %v2607_v17, 4  ;;  %v5069_v47 = vshll.u32 %v4991_v23, 16  ;;  %v5073_v27 = vshrl.u32 %v4991_v23, 16  ;;  %v8196_v15 = vld [vmem:[#allocation2 + $0xb0] sm:$0x1] }
 0x22f   : > { %7605 = vmatmul.mubr.bf16.vlgmr.msra.gmra.mrb[0].mxu1 %v8087_v12  ;;  %7450 = vmatprep.subr.bf16.mxu0 %v8107_v1  ;;  %v5049_v12 = vshrl.u32 %v4988_v4, 16  ;;  %v9423_v20 = vsel %vm9010_vm14, %v2616_v7, %v2617_v42  ;;  %v5041_v52 = vrot.slane %v5039_v25, 5  ;;  %v8104_v4 = vld [vmem:[%s10297_s4 + $0x1e8] sm:$0xff]   ;;  %v2623_v23 = vrot.slane %v2621_v39, 4  ;;  %v9453_v42 = vld [vmem:[#allocation2 + $0x34] sm:$0xf] }
 0x230   : > { %7637 = vmatpush3.bf16.msra.mxu1 %v9237_v61  ;;  %7608 = vmatprep.mubr.bf16.mxu1 %v8088_v48  ;;  %v8188_v61 = vld [vmem:[#allocation2 + $0x80] sm:$0x1]  ;;  %v9383_v60 = vsel %vm9010_vm14, %v6654_v14, %v2593_v44  ;;  %v2610_v44 = vrot.slane %v8191_v16, 5  ;;  %v9406_v48 = vld [vmem:[#allocation2 + $0xa8] sm:$0xe]  ;;  %v5038_v14 = vrot.slane %v5036_v13, 4 }
 0x231   : > { %7638 = vmatprep.subr.bf16.mxu1 %v8089_v41  ;;  %v2603_v63 = vrot.slane %v8188_v61, 5  ;;  %v6686_v6 = vcombine.low %v9383_v60, %v9366_v34  ;;  %v5051_v59 = vrot.slane %v5049_v12, 4  ;;  %v6658_v61 = vrot.slane %v2490_v26, 9  ;;  %v4992_v58 = vld [vmem:[#allocation2 + $0x2c] sm:$0x1] }
 0x232   : > { %7451 = vmatpush3.bf16.msra.mxu0 %v8107_v1  ;;  %v8095_v1 = vld [vmem:[%s10297_s4 + $0x1d8] sm:$0xff]   ;;  %v9416_v40 = vsel %vm9010_vm14, %v2609_v11, %v2610_v44  ;;  %v6659_v17 = vrot.slane %v9406_v48, 9  ;;  %v9429_v62 = vrot.slane %v5069_v47, 5  ;;  %v5075_v54 = vrot.slane %v5073_v27, 4  ;;  %v8200_v34 = vld [vmem:[#allocation2 + $0x2c] sm:$0x1] }
 0x233   : > { %v9370_v35 = vsel %vm9010_vm14, %v2602_v32, %v2603_v63  ;;  %7452 = vmatprep.subr.bf16.mxu0 %v8108_v33  ;;  %v8194_v32 = vld [vmem:[#allocation2 + $0xac] sm:$0xf]  ;;  %v8195_v63 = vld [vmem:[#allocation2 + $0xa4] sm:$0x1]  ;;  %v9441_v55 = vsel %vm9010_vm14, %v6658_v61, %v2621_v39  ;;  %v6689_v44 = vcombine.low %v9404_v36, %v9423_v20  ;;  %v5084_v12 = vshrl.u32 %v4993_v49, 16 }
 0x234   : > { %7639 = vmatpush3.bf16.msra.mxu1 %v8089_v41  ;;  %v6687_v31 = vcombine.low %v9389_v10, %v9370_v35  ;;  %v4990_v41 = vld [vmem:[#allocation2 + $0x24] sm:$0xf]  ;;  %v2624_v38 = vrot.slane %v8195_v63, 5  ;;  %v5087_v18 = vshll.u32 %v4993_v49, 16  ;;  %v5076_v5 = vor.u32 %v5075_v54, %v9429_v62  ;;  %v9474_v39 = vld [vmem:[#allocation2 + $0x38] sm:$0x1] }
 0x235   : > { %7421 = vmatmul.mubr.bf16.gmra.mrb[40].mxu0 %v6682_v28  ;;  %7640 = vmatprep.subr.bf16.mxu1 %v8092_v46  ;;  %v2635_v28 = vrot.slane %v8968_v37, 5  ;;  %v5063_v30 = vshll.u32 %v4990_v41, 16  ;;  %v6660_v25 = vrot.slane %v2492_v19, 9  ;;  %v5079_v8 = vshll.u32 %v4992_v58, 16  ;;  %v9496_v54 = vld [vmem:[#allocation2 + $0x40] sm:$0xf] }
 0x236   : > { %7424 = vmatprep.mubr.bf16.mxu0 %v6683_v3  ;;  %7453 = vmatpush3.bf16.msra.mxu0 %v8108_v33  ;;  %v2628_v33 = vrot.slane %v8194_v32, 5  ;;  %v8117_v3 = vld [vmem:[%s10297_s4 + $0xf8] sm:$0xff]   ;;  %v9457_v48 = vsel %vm9010_vm14, %v2623_v23, %v2624_v38  ;;  %v5086_v32 = vrot.slane %v5084_v12, 4  ;;  %v5077_v38 = vrot.slane %v5076_v5, 4  ;;  %v9504_v23 = vld [vmem:[#allocation2 + $0x4c] sm:$0xf] }
 0x237   : > { %7609 = vmatmul.mubr.bf16.gmra.mrb[4].mxu1 %v8090_v21  ;;  %7454 = vmatprep.subr.bf16.mxu0 %v8112_v45  ;;  %v2637_v53 = vrot.slane %v2635_v28, 4  ;;  %v5065_v16 = vrot.slane %v5063_v30, 5  ;;  %v9482_v30 = vsel %vm9010_vm14, %v6660_v25, %v2635_v28  ;;  %v8097_v49 = vld [vmem:[#allocation2 + $0x78] sm:$0xff]   ;;  %v4999_v58 = vld [vmem:[#allocation2 + $0x48] sm:$0xf]  ;;  %v5145_v12 = vshrl.u32 %v9504_v23, 16 }
 0x238   : > { %7612 = vmatprep.mubr.bf16.mxu1 %v8091_v51  ;;  %7641 = vmatpush3.bf16.msra.mxu1 %v8092_v46  ;;  %v5060_v46 = vshrl.u32 %v4990_v41, 16  ;;  %v2630_v21 = vrot.slane %v2628_v33, 4  ;;  %v2631_v51 = vrot.slane %v8196_v15, 5  ;;  %v5042_v41 = vor.u32 %v5041_v52, %v5038_v14  ;;  %v8114_v52 = vld [vmem:[%s10297_s4 + $0x1f8] sm:$0xff]   ;;  %v9523_v15 = vld [vmem:[%s10297_s4 + $0x200] sm:$0xff]  }
 0x239   : > { %7642 = vmatprep.subr.bf16.mxu1 %v8095_v1  ;;  %v9464_v26 = vsel %vm9010_vm14, %v6659_v17, %v2628_v33  ;;  %v5093_v33 = vshll.u32 %v9453_v42, 16  ;;  %v4996_v17 = vld [vmem:[#allocation2 + $0x3c] sm:$0xf]  ;;  %v6690_v14 = vcombine.low %v9441_v55, %v9457_v48  ;;  %v9591_v48 = vld [vmem:[#allocation2 + $0x68] sm:$0x1] }
 0x23a   : > { %7455 = vmatpush3.bf16.msra.mxu0 %v8112_v45  ;;  %v6688_v45 = vcombine.low %v9400_v9, %v9416_v40  ;;  %v5062_v11 = vrot.slane %v5060_v46, 4  ;;  %v9468_v13 = vsel %vm9010_vm14, %v2630_v21, %v2631_v51  ;;  %v5097_v46 = vshrl.u32 %v9453_v42, 16 }
 0x23b   : > { %7456 = vmatprep.subr.bf16.mxu0 %v8113_v24  ;;  %v5043_v61 = vrot.slane %v5042_v41, 4  ;;  %v6691_v37 = vcombine.low %v9464_v26, %v9468_v13  ;;  %v5108_v19 = vshrl.u32 %v4996_v17, 16  ;;  %v5121_v51 = vshrl.u32 %v9496_v54, 16  ;;  %v9597_v13 = vld [vmem:[#allocation2 + $0x74] sm:$0x1] }
 0x23c   : > { %7643 = vmatpush3.bf16.msra.mxu1 %v8095_v1  ;;  %v4989_v1 = vld [vmem:[#allocation2 + $0x20] sm:$0x1] }
 0x23d   : > { %7425 = vmatmul.mubr.bf16.gmra.mrb[44].mxu0 %v6684_v43  ;;  %7644 = vmatprep.subr.bf16.mxu1 %v8099_v57  ;;  %v5052_v43 = vor.u32 %v5051_v59, %v9419_v56  ;;  %v5055_v7 = vshll.u32 %v4989_v1, 16  ;;  %v5089_v59 = vrot.slane %v5087_v18, 5  ;;  %v9506_v1 = vrot.slane %v5093_v33, 5  ;;  %v5005_v33 = vld [vmem:[#allocation2 + $0x60] sm:$0xf] }
 0x23e   : > { %7428 = vmatprep.mubr.bf16.mxu0 %v6685_v29  ;;  %7457 = vmatpush3.bf16.msra.mxu0 %v8113_v24  ;;  %v2638_v29 = vrot.slane %v10342_v0, 5  ;;  %v8109_v24 = vld [vmem:[%s10297_s4 + $0x1f0] sm:$0xff]   ;;  %v5048_v35 = vsel %vm8404_vm7, %v5043_v61, %v9419_v56  ;;  %v5141_v56 = vshll.u32 %v9504_v23, 16  ;;  %v5135_v61 = vshll.u32 %v4999_v58, 16 }
 0x23f   : > { %7613 = vmatmul.mubr.bf16.gmra.mrb[8].mxu1 %v8093_v2  ;;  %7458 = vmatprep.subr.bf16.mxu0 %v8117_v3  ;;  %v5053_v27 = vrot.slane %v5052_v43, 4  ;;  %v5057_v63 = vrot.slane %v5055_v7, 5  ;;  %v5081_v2 = vrot.slane %v5079_v8, 5  ;;  %v5090_v21 = vor.u32 %v5089_v59, %v5086_v32  ;;  %v8100_v7 = vld [vmem:[#allocation2 + $0x84] sm:$0xff]  }
 0x240   : > { %7616 = vmatprep.mubr.bf16.mxu1 %v8094_v50  ;;  %7645 = vmatpush3.bf16.msra.mxu1 %v8099_v57  ;;  %v9472_v47 = vsel %vm9010_vm14, %v2637_v53, %v2638_v29  ;;  %v5066_v57 = vor.u32 %v5065_v16, %v5062_v11  ;;  %v5099_v50 = vrot.slane %v5097_v46, 4  ;;  %v9508_v53 = vld [vmem:[#allocation2 + $0x58] sm:$0xf]  ;;  %v5111_v43 = vshll.u32 %v4996_v17, 16  ;;  %v9549_v17 = vld [vmem:[#allocation2 + $0x64] sm:$0xf] }
 0x241   : > { %7646 = vmatprep.subr.bf16.mxu1 %v8104_v4  ;;  %v6692_v28 = vcombine.low %v9482_v30, %v9472_v47  ;;  %v5058_v60 = vsel %vm8404_vm7, %v5053_v27, %v5057_v63  ;;  %v5082_v10 = vsel %vm8404_vm7, %v5077_v38, %v5081_v2  ;;  %v5117_v11 = vshll.u32 %v9496_v54, 16 }
 0x242   : > { %7459 = vmatpush3.bf16.msra.mxu0 %v8117_v3  ;;  %v8096_v3 = vld [vmem:[#allocation2 + $0x6c] sm:$0xff]   ;;  %v9518_v16 = vcombine.low %v5048_v35, %v5058_v60  ;;  %v5165_v29 = vshll.u32 %v9508_v53, 16  ;;  %v5169_v41 = vshrl.u32 %v9508_v53, 16  ;;  %v5100_v25 = vor.u32 %v5099_v50, %v9506_v1 }
 0x243   : > { %v5110_v27 = vrot.slane %v5108_v19, 4  ;;  %v5113_v8 = vrot.slane %v5111_v43, 5  ;;  %v9540_v32 = vrot.slane %v5117_v11, 5  ;;  %v5132_v59 = vshrl.u32 %v4999_v58, 16  ;;  %v5008_v50 = vld [vmem:[#allocation2 + $0x6c] sm:$0xf] }
 0x244   : > { %7647 = vmatpush3.bf16.msra.mxu1 %v8104_v4  ;;  %v5103_v4 = vshll.u32 %v9474_v39, 16  ;;  %v5123_v46 = vrot.slane %v5121_v51, 4  ;;  %v9547_v63 = vrot.slane %v5141_v56, 5  ;;  %v5147_v38 = vrot.slane %v5145_v12, 4  ;;  %v9571_v51 = vld [vmem:[#allocation2 + $0x5c] sm:$0x1] }
 0x245   : > { %7429 = vmatmul.mubr.bf16.gmra.mrb[48].mxu0 %v6686_v6  ;;  %7648 = vmatprep.subr.bf16.mxu1 %v8109_v24  ;;  %v5067_v6 = vrot.slane %v5066_v57, 4  ;;  %v5002_v57 = vld [vmem:[#allocation2 + $0x54] sm:$0xf]  ;;  %v9554_v60 = vrot.slane %v5165_v29, 5  ;;  %v5171_v9 = vrot.slane %v5169_v41, 4  ;;  %v5180_v2 = vshrl.u32 %v5005_v33, 16 }
 0x246   : > { %7432 = vmatprep.mubr.bf16.mxu0 %v6687_v31  ;;  %v9515_v31 = vld [vmem:[#allocation2 + $0x44] sm:$0x1]  ;;  %v9531_v0 = vrot.slane %v5103_v4, 5  ;;  %v5183_v4 = vshll.u32 %v5005_v33, 16  ;;  %v5114_v36 = vor.u32 %v5113_v8, %v5110_v27  ;;  %v5124_v19 = vor.u32 %v5123_v46, %v9540_v32  ;;  %v9574_v41 = vld [vmem:[#allocation2 + $0x70] sm:$0xf] }
 0x247   : > { %7617 = vmatmul.mubr.bf16.gmra.mrb[12].mxu1 %v8096_v3  ;;  %v5072_v18 = vsel %vm8404_vm7, %v5067_v6, %v9429_v62  ;;  %v5127_v62 = vshll.u32 %v9515_v31, 16  ;;  %v8101_v3 = vld [vmem:[#allocation2 + $0x90] sm:$0xff]   ;;  %v5134_v35 = vrot.slane %v5132_v59, 4  ;;  %v5148_v43 = vor.u32 %v5147_v38, %v9547_v63  ;;  %v8105_v59 = vld [vmem:[#allocation2 + $0x9c] sm:$0xff]  }
 0x248   : > { %7620 = vmatprep.mubr.bf16.mxu1 %v8097_v49  ;;  %7649 = vmatpush3.bf16.msra.mxu1 %v8109_v24  ;;  %v9535_v5 = vcombine.low %v5072_v18, %v5082_v10  ;;  %v9537_v24 = vrot.slane %v5090_v21, 4  ;;  %v5159_v49 = vshll.u32 %v5002_v57, 16  ;;  %v9562_v6 = vld [vmem:[#allocation2 + $0x50] sm:$0x1]  ;;  %v5193_v21 = vshrl.u32 %v9549_v17, 16 }
 0x249   : > { %7650 = vmatprep.subr.bf16.mxu1 %v8114_v52  ;;  %v9564_v20 = vrot.slane %v5127_v62, 5  ;;  %v5137_v10 = vrot.slane %v5135_v61, 5  ;;  %v5151_v11 = vshll.u32 %v9562_v6, 16  ;;  %v5172_v12 = vor.u32 %v5171_v9, %v9554_v60 }
 0x24a   : > { %v5096_v40 = vsel %vm8404_vm7, %v9537_v24, %v9506_v1  ;;  %v5161_v56 = vrot.slane %v5159_v49, 5  ;;  %v5182_v18 = vrot.slane %v5180_v2, 4  ;;  %v5185_v29 = vrot.slane %v5183_v4, 5  ;;  %v9647_v24 = vld [vmem:[#allocation2 + $0x84] sm:$0xf] }
 0x24b   : > { %v5195_v62 = vrot.slane %v5193_v21, 4  ;;  %v5125_v33 = vrot.slane %v5124_v19, 4  ;;  %v5138_v46 = vor.u32 %v5137_v10, %v5134_v35  ;;  %v5149_v61 = vrot.slane %v5148_v43, 4  ;;  %v9604_v10 = vld [vmem:[#allocation2 + $0x7c] sm:$0xf] }
 0x24c   : > { %7651 = vmatpush3.bf16.msra.mxu1 %v8114_v52  ;;  %v5156_v52 = vshrl.u32 %v5002_v57, 16  ;;  %v5115_v57 = vrot.slane %v5114_v36, 4  ;;  %v5175_v38 = vshll.u32 %v9571_v51, 16  ;;  %v5213_v9 = vshll.u32 %v9574_v41, 16 }
 0x24d   : > { %7433 = vmatmul.mubr.bf16.gmra.mrb[52].mxu0 %v6688_v45  ;;  %7684 = vmatprep.subr.bf16.mxu1 %v9523_v15  ;;  %v9560_v45 = vrot.slane %v5100_v25, 4  ;;  %v5207_v25 = vshll.u32 %v5008_v50, 16  ;;  %v5173_v55 = vrot.slane %v5172_v12, 4  ;;  %v5130_v21 = vsel %vm8404_vm7, %v5125_v33, %v9564_v20 }
 0x24e   : > { %7436 = vmatprep.mubr.bf16.mxu0 %v6689_v44  ;;  %v5189_v44 = vshll.u32 %v9549_v17, 16  ;;  %v5158_v58 = vrot.slane %v5156_v52, 4  ;;  %v8106_v52 = vld [vmem:[#allocation2 + $0xa8] sm:$0xff]   ;;  %v5120_v36 = vsel %vm8404_vm7, %v5115_v57, %v9540_v32  ;;  %v5177_v35 = vrot.slane %v5175_v38, 5  ;;  %v9636_v38 = vld [vmem:[#allocation2 + $0x80] sm:$0x1] }
 0x24f   : > { %7621 = vmatmul.mubr.bf16.gmra.mrb[16].mxu1 %v8100_v7  ;;  %v5204_v7 = vshrl.u32 %v5008_v50, 16  ;;  %v5106_v27 = vsel %vm8404_vm7, %v9560_v45, %v9531_v0  ;;  %v5153_v0 = vrot.slane %v5151_v11, 5  ;;  %v5217_v45 = vshrl.u32 %v9574_v41, 16 }
 0x250   : > { %7624 = vmatprep.mubr.bf16.mxu1 %v8101_v3  ;;  %v9580_v8 = vrot.slane %v5189_v44, 5  ;;  %v5011_v3 = vld [vmem:[#allocation2 + $0x78] sm:$0xf]  ;;  %v5162_v49 = vor.u32 %v5161_v56, %v5158_v58  ;;  %v5209_v4 = vrot.slane %v5207_v25, 5  ;;  %v5139_v50 = vrot.slane %v5138_v46, 4 }
 0x251   : > { %v5206_v2 = vrot.slane %v5204_v7, 4  ;;  %v5231_v44 = vshll.u32 %v5011_v3, 16  ;;  %v5154_v19 = vsel %vm8404_vm7, %v5149_v61, %v5153_v0  ;;  %v5199_v32 = vshll.u32 %v9591_v48, 16 }
 0x252   : > { %v5196_v26 = vor.u32 %v5195_v62, %v9580_v8  ;;  %v5163_v43 = vrot.slane %v5162_v49, 4  ;;  %v9607_v11 = vrot.slane %v5213_v9, 5  ;;  %v5219_v58 = vrot.slane %v5217_v45, 4  ;;  %v9659_v49 = vld [vmem:[#allocation2 + $0x88] sm:$0xf] }
 0x253   : > { %v5178_v56 = vsel %vm8404_vm7, %v5173_v55, %v5177_v35  ;;  %v5223_v20 = vshll.u32 %v9597_v13, 16  ;;  %v9618_v57 = vrot.slane %v5231_v44, 5  ;;  %v5237_v62 = vshll.u32 %v9604_v10, 16  ;;  %v5752_v9 = vld [vmem:[#allocation2 + $0x9c] sm:$0xe] }
 0x254   : > { %v9614_v7 = vrot.slane %v5196_v26, 4  ;;  %v9629_v33 = vcombine.low %v5096_v40, %v5106_v27  ;;  %v9631_v46 = vcombine.low %v5120_v36, %v5130_v21  ;;  %v5144_v61 = vsel %vm8404_vm7, %v5139_v50, %v9547_v63  ;;  %v5744_v21 = vld [vmem:[#allocation2 + $0x3c] sm:$0xe] }
 0x255   : > { %7437 = vmatmul.mubr.bf16.gmra.mrb[56].mxu0 %v6690_v14  ;;  %v5186_v14 = vor.u32 %v5185_v29, %v5182_v18  ;;  %v5210_v18 = vor.u32 %v5209_v4, %v5206_v2  ;;  %v8115_v29 = vld [vmem:[#allocation2 + $0xc] sm:$0xff]   ;;  %v9639_v47 = vcombine.low %v5144_v61, %v5154_v19  ;;  %v5168_v30 = vsel %vm8404_vm7, %v5163_v43, %v9554_v60  ;;  %v9672_v2 = vld [vmem:[#allocation2 + $0x94] sm:$0xf] }
 0x256   : > { %7440 = vmatprep.mubr.bf16.mxu0 %v6691_v37  ;;  %v5228_v37 = vshrl.u32 %v5011_v3, 16  ;;  %v5241_v3 = vshrl.u32 %v9604_v10, 16  ;;  %v5220_v1 = vor.u32 %v5219_v58, %v9607_v11  ;;  %v9649_v63 = vcombine.low %v5168_v30, %v5178_v56  ;;  %v9661_v60 = vld [vmem:[#allocation2 + $0x90] sm:$0xf]  ;;  %v8118_v56 = vld [vmem:[#allocation2 + $0x18] sm:$0xff]   ;;  %v8124_v61 = vld [vmem:[#allocation2 + $0x48] sm:$0xff]  }
 0x257   : > { %7625 = vmatmul.mubr.bf16.gmra.mrb[20].mxu1 %v8105_v59  ;;  %v9611_v12 = vrot.slane %v5186_v14, 4  ;;  %v8110_v59 = vld [vmem:[#allocation2 + $0xb4] sm:$0xff]   ;;  %v9655_v27 = vrot.slane %v5210_v18, 4  ;;  %v9657_v0 = vrot.slane %v5223_v20, 5  ;;  %v9669_v55 = vrot.slane %v5237_v62, 5  ;;  %v8116_v58 = vld [vmem:[#allocation2 + $0xcc] sm:$0xff]  }
 0x258   : > { %7628 = vmatprep.mubr.bf16.mxu1 %v8106_v52  ;;  %v9616_v25 = vrot.slane %v5228_v37, 4  ;;  %v8111_v52 = vld [vmem:[#allocation2 + $0xc0] sm:$0xff]   ;;  %v5743_v4 = vld [vmem:[#allocation2 + $0x30] sm:$0xe]  ;;  %v9674_v36 = vrot.slane %v5241_v3, 4  ;;  %v5821_v44 = vrot.slane %v9453_v42, 5 }
 0x259   : > { %v9679_v50 = vrot.slane %v5220_v1, 4  ;;  %v6919_v20 = vrot.slane %v5743_v4, 9  ;;  %v5824_v62 = vrot.slane %v9474_v39, 5  ;;  %v6920_v3 = vrot.slane %v5744_v21, 9  ;;  %v5746_v14 = vld [vmem:[#allocation2 + $0x54] sm:$0xe] }
 0x25a   : > { %v5835_v39 = vrot.slane %v9504_v23, 5  ;;  %v5838_v23 = vrot.slane %v9562_v6, 5  ;;  %v5870_v40 = vrot.slane %v9659_v49, 5  ;;  %v9791_v42 = vld [vmem:[#allocation2 + $0xb0] sm:$0x1] }
 0x25b   : > { %v9691_v30 = vsel %vm9010_vm14, %v6919_v20, %v5821_v44  ;;  %v9802_v18 = vld [vmem:[#allocation2 + $0xc4] sm:$0xf] }
 0x25d   : > { %7441 = vmatmul.mubr.bf16.gmra.mrb[60].mxu0 %v6692_v28  ;;  %v9644_v28 = vrot.slane %v5199_v32, 5  ;;  %v5745_v32 = vld [vmem:[#allocation2 + $0x48] sm:$0xe] }
 0x25e   : > { %7460 = vmatprep.mubr.bf16.mxu0 %v8115_v29  ;;  %v5823_v29 = vrot.slane %v5821_v44, 4  ;;  %v6921_v4 = vrot.slane %v5745_v32, 9  ;;  %v5831_v44 = vrot.slane %v9515_v31, 5  ;;  %v5837_v32 = vrot.slane %v5835_v39, 4 }
 0x25f   : > { %7629 = vmatmul.mubr.bf16.gmra.mrb[24].mxu1 %v8110_v59  ;;  %v8120_v59 = vld [vmem:[#allocation2 + $0x24] sm:$0xff]   ;;  %v5845_v31 = vrot.slane %v9571_v51, 5 }
 0x260   : > { %7632 = vmatprep.mubr.bf16.mxu1 %v8111_v52  ;;  %v5828_v52 = vrot.slane %v9496_v54, 5  ;;  %v9695_v1 = vsel %vm9010_vm14, %v5823_v29, %v5824_v62  ;;  %v9707_v20 = vsel %vm9010_vm14, %v6921_v4, %v5835_v39  ;;  %v5842_v29 = vrot.slane %v9508_v53, 5 }
 0x261   : > { %v9722_v6 = vsel %vm9010_vm14, %v5837_v32, %v5838_v23  ;;  %v5856_v39 = vrot.slane %v9574_v41, 5  ;;  %v5866_v41 = vrot.slane %v9636_v38, 5 }
 0x262   : > { %v9702_v54 = vsel %vm9010_vm14, %v6920_v3, %v5828_v52  ;;  %v5830_v21 = vrot.slane %v5828_v52, 4  ;;  %v5748_v3 = vld [vmem:[#allocation2 + $0x6c] sm:$0xe]  ;;  %v5844_v53 = vrot.slane %v5842_v29, 4  ;;  %v9731_v52 = vld [vmem:[#allocation2 + $0x8c] sm:$0x1] }
 0x263   : > { %v6924_v23 = vrot.slane %v5748_v3, 9 }
 0x264   : > { %v9714_v62 = vsel %vm9010_vm14, %v5830_v21, %v5831_v44  ;;  %v8121_v21 = vld [vmem:[#allocation2 + $0x30] sm:$0xff]   ;;  %v8123_v44 = vld [vmem:[#allocation2 + $0x3c] sm:$0xff]   ;;  %v9735_v32 = vsel %vm9010_vm14, %v5844_v53, %v5845_v31  ;;  %v5863_v31 = vrot.slane %v9604_v10, 5  ;;  %v5750_v53 = vld [vmem:[#allocation2 + $0x84] sm:$0xe] }
 0x265   : > { %7461 = vmatmul.mubr.bf16.vlgmr.msra.gmra.mrb[32].mxu0 %v8118_v56  ;;  %v5747_v56 = vld [vmem:[#allocation2 + $0x60] sm:$0xe]  ;;  %v9758_v3 = vsel %vm9010_vm14, %v6924_v23, %v5856_v39  ;;  %v9763_v10 = vld [vmem:[#allocation2 + $0xac] sm:$0xf]  ;;  %v5877_v23 = vrot.slane %v9672_v2, 5 }
 0x266   : > { %7464 = vmatprep.mubr.bf16.mxu0 %v8120_v59  ;;  %v6922_v59 = vrot.slane %v5746_v14, 9  ;;  %v6923_v4 = vrot.slane %v5747_v56, 9 }
 0x267   : > { %7633 = vmatmul.mubr.bf16.gmra.mrb[28].mxu1 %v8116_v58  ;;  %v5849_v58 = vrot.slane %v9549_v17, 5  ;;  %v5852_v17 = vrot.slane %v9591_v48, 5  ;;  %v5865_v48 = vrot.slane %v5863_v31, 4 }
 0x268   : > { %7652 = vmatprep.mubr.bf16.mxu1 %v9518_v16  ;;  %v5749_v16 = vld [vmem:[#allocation2 + $0x78] sm:$0xe]  ;;  %v9728_v14 = vsel %vm9010_vm14, %v6922_v59, %v5842_v29  ;;  %v9742_v29 = vld [vmem:[#allocation2 + $0x98] sm:$0x1] }
 0x269   : > { %v5851_v51 = vrot.slane %v5849_v58, 4  ;;  %v9739_v56 = vsel %vm9010_vm14, %v6923_v4, %v5849_v58  ;;  %v6925_v45 = vrot.slane %v5749_v16, 9  ;;  %v8122_v58 = vld [vmem:[%s10297_s4 + $0x208] sm:$0xff]   ;;  %v5858_v4 = vrot.slane %v5856_v39, 4  ;;  %v9761_v16 = vld [vmem:[#allocation2 + $0xa0] sm:$0xf] }
 0x26a   : > { %v6926_v39 = vrot.slane %v5750_v53, 9  ;;  %v5884_v19 = vrot.slane %v9761_v16, 5 }
 0x26b   : > { %v9748_v59 = vsel %vm9010_vm14, %v5851_v51, %v5852_v17  ;;  %v5859_v51 = vrot.slane %v9597_v13, 5  ;;  %v5751_v17 = vld [vmem:[#allocation2 + $0x90] sm:$0xe] }
 0x26c   : > { %v6927_v53 = vrot.slane %v5751_v17, 9  ;;  %v9800_v17 = vld [vmem:[#allocation2 + $0xb8] sm:$0xf]  ;;  %v10373_v22 = vcombine.low %v9739_v56, %v9748_v59 }
 0x26d   : > { %7465 = vmatmul.mubr.bf16.gmra.mrb[36].mxu0 %v8121_v21  ;;  %v9767_v21 = vsel %vm9010_vm14, %v6925_v45, %v5863_v31  ;;  %v9774_v13 = vsel %vm9010_vm14, %v5858_v4, %v5859_v51  ;;  %v9780_v45 = vld [vmem:[#allocation2 + $0xa4] sm:$0x1]  ;;  %v5872_v4 = vrot.slane %v5870_v40, 4  ;;  %v5753_v51 = vld [vmem:[#allocation2 + $0xa8] sm:$0xe]  ;;  %v9797_v31 = vsel %vm9010_vm14, %v6926_v39, %v5870_v40 }
 0x26e   : > { %7468 = vmatprep.mubr.bf16.mxu0 %v8123_v44  ;;  %10344 = vst [vmem:[#allocation5_spill] sm:$0xff] %v9767_v21  ;;  %v5873_v44 = vrot.slane %v9731_v52, 5  ;;  %10346 = vst [vmem:[#allocation4_spill] sm:$0xff] %v9797_v31  ;;  %v9810_v35 = vsel %vm9010_vm14, %v6927_v53, %v5877_v23  ;;  %v9813_v40 = vld [vmem:[#allocation2 + $0xbc] sm:$0x1]  ;;  %v6929_v26 = vrot.slane %v5753_v51, 9 }
 0x26f   : > { %7653 = vmatmul.mubr.bf16.vlgmr.msra.gmra.mrb[0].mxu1 %v9535_v5  ;;  %v9786_v5 = vsel %vm9010_vm14, %v5865_v48, %v5866_v41  ;;  %v5879_v48 = vrot.slane %v5877_v23, 4  ;;  %v5880_v41 = vrot.slane %v9742_v29, 5  ;;  %10348 = vst [vmem:[#allocation7_spill] sm:$0xff] %v9810_v35  ;;  %v5886_v53 = vrot.slane %v5884_v19, 4  ;;  %v8128_v51 = vld [vmem:[%s10297_s4 + $0x218] sm:$0xff]  }
 0x270   : > { %7685 = vmatpush3.bf16.msra.mxu1 %v9523_v15  ;;  %7656 = vmatprep.mubr.bf16.mxu1 %v9629_v33  ;;  %10345 = vst [vmem:[#allocation6_spill] sm:$0xff] %v9786_v5  ;;  %v8125_v15 = vld [vmem:[%s10297_s4 + $0x210] sm:$0xff]   ;;  %v9806_v43 = vsel %vm9010_vm14, %v5872_v4, %v5873_v44  ;;  %v6928_v33 = vrot.slane %v5752_v9, 9  ;;  %v5891_v44 = vrot.slane %v9763_v10, 5  ;;  %v5887_v39 = vrot.slane %v9780_v45, 5 }
 0x271   : > { %7686 = vmatprep.subr.bf16.mxu1 %v8122_v58  ;;  %10347 = vst [vmem:[#allocation3_spill] sm:$0xff] %v9806_v43  ;;  %v9819_v37 = vsel %vm9010_vm14, %v5879_v48, %v5880_v41  ;;  %v5754_v4 = vld [vmem:[#allocation2 + $0xb4] sm:$0xe]  ;;  %v5755_v43 = vld [vmem:[#allocation2 + $0xc0] sm:$0xe]  ;;  %v5905_v35 = vrot.slane %v9802_v18, 5 }
 0x272   : > { %10349 = vst [vmem:[#allocation8_spill] sm:$0xff] %v9819_v37  ;;  %v8126_v5 = vld [vmem:[#allocation2 + $0x54] sm:$0xff]   ;;  %v9826_v23 = vsel %vm9010_vm14, %v6928_v33, %v5884_v19  ;;  %v9832_v48 = vld [vmem:[#allocation2 + $0xc8] sm:$0x1]  ;;  %v5893_v41 = vrot.slane %v5891_v44, 4  ;;  %v5894_v33 = vrot.slane %v9791_v42, 5 }
 0x273   : > { %10350 = vst [vmem:[#allocation9_spill] sm:$0xff] %v9826_v23  ;;  %v5898_v19 = vrot.slane %v9800_v17, 5  ;;  %v6930_v9 = vrot.slane %v5754_v4, 9  ;;  %v5901_v37 = vrot.slane %v9813_v40, 5  ;;  %v5756_v31 = vld [vmem:[#allocation2 + $0xcc] sm:$0xe] }
 0x274   : > { %7687 = vmatpush3.bf16.msra.mxu1 %v8122_v58  ;;  %v9836_v58 = vsel %vm9010_vm14, %v6929_v26, %v5891_v44  ;;  %v9851_v44 = vsel %vm9010_vm14, %v5893_v41, %v5894_v33  ;;  %v6931_v21 = vrot.slane %v5755_v43, 9  ;;  %v9856_v4 = vld [vmem:[#allocation2 + $0xd4] sm:$0x1]  ;;  %v5907_v26 = vrot.slane %v5905_v35, 4 }
 0x275   : > { %7469 = vmatmul.mubr.bf16.gmra.mrb[40].mxu0 %v8124_v61  ;;  %7688 = vmatprep.subr.bf16.mxu1 %v8125_v15  ;;  %10351 = vst [vmem:[#allocation10_spill] sm:$0xff] %v9836_v58  ;;  %v9842_v61 = vsel %vm9010_vm14, %v5886_v53, %v5887_v39  ;;  %10353 = vst [vmem:[#allocation12_spill] sm:$0xff] %v9851_v44  ;;  %v9854_v39 = vld [vmem:[#allocation2 + $0xd0] sm:$0xf]  ;;  %v5908_v41 = vrot.slane %v9832_v48, 5  ;;  %v5915_v53 = vrot.slane %v9856_v4, 5 }
 0x276   : > { %7472 = vmatprep.mubr.bf16.mxu0 %v8126_v5  ;;  %10352 = vst [vmem:[#allocation11_spill] sm:$0xff] %v9842_v61  ;;  %v5900_v5 = vrot.slane %v5898_v19, 4  ;;  %v5912_v33 = vrot.slane %v9854_v39, 5  ;;  %v9880_v44 = vsel %vm9010_vm14, %v6931_v21, %v5905_v35  ;;  %v10358_v35 = vshll.u32 %v9647_v24, 16 }
 0x277   : > { %7657 = vmatmul.mubr.bf16.gmra.mrb[4].mxu1 %v9631_v46  ;;  %v9862_v46 = vsel %vm9010_vm14, %v6930_v9, %v5898_v19  ;;  %v5244_v9 = vor.u32 %v9674_v36, %v9669_v55  ;;  %v9884_v58 = vsel %vm9010_vm14, %v5907_v26, %v5908_v41  ;;  %v10359_v26 = vshll.u32 %v9659_v49, 16 }
 0x278   : > { %7660 = vmatprep.mubr.bf16.mxu1 %v9639_v47  ;;  %7689 = vmatpush3.bf16.msra.mxu1 %v8125_v15  ;;  %10354 = vst [vmem:[#allocation13_spill] sm:$0xff] %v9862_v46  ;;  %v8131_v47 = vld [vmem:[%s10297_s4 + $0x220] sm:$0xff]   ;;  %v9870_v43 = vsel %vm9010_vm14, %v5900_v5, %v5901_v37  ;;  %v6932_v15 = vrot.slane %v5756_v31, 9  ;;  %10356 = vst [vmem:[#allocation15_spill] sm:$0xff] %v9884_v58  ;;  %v10357_v31 = vshrl.u32 %v9647_v24, 16  ;;  %v5914_v19 = vrot.slane %v5912_v33, 4 }
 0x279   : > { %7690 = vmatprep.subr.bf16.mxu1 %v8128_v51  ;;  %10355 = vst [vmem:[#allocation14_spill] sm:$0xff] %v9870_v43  ;;  %v8127_v37 = vld [vmem:[#allocation2 + $0x60] sm:$0xff]   ;;  %v8129_v43 = vld [vmem:[#allocation2 + $0x6c] sm:$0xff]   ;;  %v5257_v21 = vrot.slane %v10358_v35, 5  ;;  %v9898_v41 = vrot.slane %v10359_v26, 5  ;;  %v10360_v46 = vshrl.u32 %v9659_v49, 16  ;;  %v10367_v26 = vor.u32 %v9618_v57, %v9616_v25 }
 0x27a   : > { %v5254_v5 = vrot.slane %v10357_v31, 4  ;;  %v9892_v36 = vsel %vm9010_vm14, %v6932_v15, %v5912_v33  ;;  %v10361_v23 = vshrl.u32 %v9661_v60, 16  ;;  %v10362_v15 = vshll.u32 %v9661_v60, 16  ;;  %v8134_v49 = vld [vmem:[%s10297_s4 + $0x228] sm:$0xff]  }
 0x27b   : > { %v5267_v31 = vrot.slane %v10360_v46, 4  ;;  %v10364_v24 = vshrl.u32 %v9672_v2, 16  ;;  %v5020_v46 = vld [vmem:[#allocation2 + $0x9c] sm:$0xf]  ;;  %v10365_v60 = vsel %vm8404_vm7, %v9614_v7, %v9644_v28  ;;  %v5216_v7 = vsel %vm8404_vm7, %v9655_v27, %v9607_v11  ;;  %v8137_v27 = vld [vmem:[%s10297_s4 + $0x230] sm:$0xff]  }
 0x27c   : > { %7691 = vmatpush3.bf16.msra.mxu1 %v8128_v51  ;;  %v5278_v61 = vrot.slane %v10361_v23, 4  ;;  %v5281_v33 = vrot.slane %v10362_v15, 5  ;;  %v10363_v51 = vshll.u32 %v9672_v2, 16  ;;  %v9917_v23 = vsel %vm9010_vm14, %v5914_v19, %v5915_v53  ;;  %v10387_v59 = vld [vmem:[#allocation10_spill] sm:$0xff] }
 0x27d   : > { %7473 = vmatmul.mubr.bf16.gmra.mrb[44].mxu0 %v8127_v37  ;;  %7692 = vmatprep.subr.bf16.mxu1 %v8131_v47  ;;  %v5291_v35 = vrot.slane %v10364_v24, 4  ;;  %v10366_v2 = vsel %vm8404_vm7, %v9611_v12, %v9580_v8  ;;  %v5235_v15 = vrot.slane %v10367_v26, 4  ;;  %v6964_v53 = vcombine.low %v9892_v36, %v9917_v23 }
 0x27e   : > { %v9908_v58 = vrot.slane %v10363_v51, 5  ;;  %v6899_v37 = vcombine.low %v10366_v2, %v10365_v60  ;;  %7476 = vmatprep.mubr.bf16.mxu0 %v8129_v43  ;;  %v5226_v8 = vsel %vm8404_vm7, %v9679_v50, %v9657_v0  ;;  %v5245_v12 = vrot.slane %v5244_v9, 4  ;;  %v5023_v9 = vld [vmem:[#allocation2 + $0xa8] sm:$0xf] }
 0x27f   : > { %7661 = vmatmul.mubr.bf16.gmra.mrb[8].mxu1 %v9649_v63  ;;  %v5258_v28 = vor.u32 %v5257_v21, %v5254_v5  ;;  %v5268_v25 = vor.u32 %v5267_v31, %v9898_v41  ;;  %v5300_v57 = vshrl.u32 %v5020_v46, 16  ;;  %v5303_v43 = vshll.u32 %v5020_v46, 16 }
 0x280   : > { %7664 = vmatprep.mubr.bf16.mxu1 %v6899_v37  ;;  %7693 = vmatpush3.bf16.msra.mxu1 %v8131_v47  ;;  %v10368_v63 = vshll.u32 %v9636_v38, 16  ;;  %v5271_v51 = vshll.u32 %v9731_v52, 16  ;;  %v5282_v24 = vor.u32 %v5281_v33, %v5278_v61  ;;  %v5292_v11 = vor.u32 %v5291_v35, %v9908_v58  ;;  %v8130_v61 = vld [vmem:[#allocation2 + $0x78] sm:$0xff]   ;;  %v8132_v33 = vld [vmem:[#allocation2 + $0x84] sm:$0xff]  }
 0x281   : > { %7694 = vmatprep.subr.bf16.mxu1 %v8134_v49  ;;  %v6900_v0 = vcombine.low %v5216_v7, %v5226_v8  ;;  %v5240_v50 = vsel %vm8404_vm7, %v5235_v15, %v9669_v55  ;;  %v5309_v47 = vshll.u32 %v9761_v16, 16  ;;  %v5313_v38 = vshrl.u32 %v9761_v16, 16 }
 0x282   : > { %v5249_v19 = vrot.slane %v10368_v63, 5  ;;  %v5295_v5 = vshll.u32 %v9742_v29, 16  ;;  %v5333_v21 = vshll.u32 %v9763_v10, 16  ;;  %v5337_v31 = vshrl.u32 %v9763_v10, 16  ;;  %v8140_v29 = vld [vmem:[%s10297_s4 + $0x238] sm:$0xff]  }
 0x283   : > { %v5259_v35 = vrot.slane %v5258_v28, 4  ;;  %v5269_v46 = vrot.slane %v5268_v25, 4  ;;  %v5302_v60 = vrot.slane %v5300_v57, 4  ;;  %v5305_v55 = vrot.slane %v5303_v43, 5  ;;  %v5026_v25 = vld [vmem:[#allocation2 + $0xb4] sm:$0xf] }
 0x284   : > { %v5250_v52 = vsel %vm8404_vm7, %v5245_v12, %v5249_v19  ;;  %7695 = vmatpush3.bf16.msra.mxu1 %v8134_v49  ;;  %v5283_v2 = vrot.slane %v5282_v24, 4  ;;  %v5293_v16 = vrot.slane %v5292_v11, 4  ;;  %v5324_v37 = vshrl.u32 %v5023_v9, 16 }
 0x285   : > { %7477 = vmatmul.mubr.bf16.gmra.mrb[48].mxu0 %v8130_v61  ;;  %v5327_v26 = vshll.u32 %v5023_v9, 16  ;;  %7696 = vmatprep.subr.bf16.mxu1 %v8137_v27  ;;  %v6901_v15 = vcombine.low %v5240_v50, %v5250_v52  ;;  %v5273_v7 = vrot.slane %v5271_v51, 5  ;;  %v9964_v10 = vrot.slane %v5309_v47, 5  ;;  %v5029_v9 = vld [vmem:[#allocation2 + $0xc0] sm:$0xf] }
 0x286   : > { %7480 = vmatprep.mubr.bf16.mxu0 %v8132_v33  ;;  %v5315_v8 = vrot.slane %v5313_v38, 4  ;;  %v5297_v12 = vrot.slane %v5295_v5, 5  ;;  %v9966_v28 = vrot.slane %v5333_v21, 5  ;;  %v5339_v49 = vrot.slane %v5337_v31, 4  ;;  %v8135_v31 = vld [vmem:[#allocation2 + $0x9c] sm:$0xff]  }
 0x287   : > { %7665 = vmatmul.mubr.bf16.gmra.mrb[12].mxu1 %v6900_v0  ;;  %v5264_v57 = vsel %vm8404_vm7, %v5259_v35, %v9898_v41  ;;  %v5274_v43 = vsel %vm8404_vm7, %v5269_v46, %v5273_v7  ;;  %v5306_v63 = vor.u32 %v5305_v55, %v5302_v60  ;;  %v5319_v19 = vshll.u32 %v9780_v45, 16  ;;  %v8133_v45 = vld [vmem:[#allocation2 + $0x90] sm:$0xff]  }
 0x288   : > { %7668 = vmatprep.mubr.bf16.mxu1 %v6901_v15  ;;  %7697 = vmatpush3.bf16.msra.mxu1 %v8137_v27  ;;  %v5288_v51 = vsel %vm8404_vm7, %v5283_v2, %v9908_v58  ;;  %v5298_v24 = vsel %vm8404_vm7, %v5293_v16, %v5297_v12  ;;  %v5326_v11 = vrot.slane %v5324_v37, 4  ;;  %v5329_v0 = vrot.slane %v5327_v26, 5  ;;  %v5032_v2 = vld [vmem:[#allocation2 + $0xcc] sm:$0xf] }
 0x289   : > { %7698 = vmatprep.subr.bf16.mxu1 %v8140_v29  ;;  %v5316_v50 = vor.u32 %v5315_v8, %v9964_v10  ;;  %v5348_v41 = vshrl.u32 %v5026_v25, 16  ;;  %v5357_v47 = vshll.u32 %v9800_v17, 16  ;;  %v5361_v38 = vshrl.u32 %v9800_v17, 16 }
 0x28a   : > { %v5340_v27 = vor.u32 %v5339_v49, %v9966_v28  ;;  %v5351_v52 = vshll.u32 %v5026_v25, 16  ;;  %v5381_v58 = vshll.u32 %v9802_v18, 16  ;;  %v5385_v61 = vshrl.u32 %v9802_v18, 16 }
 0x28b   : > { %v6902_v5 = vcombine.low %v5264_v57, %v5274_v43  ;;  %v6903_v21 = vcombine.low %v5288_v51, %v5298_v24  ;;  %v5307_v33 = vrot.slane %v5306_v63, 4  ;;  %v5321_v35 = vrot.slane %v5319_v19, 5 }
 0x28c   : > { %7699 = vmatpush3.bf16.msra.mxu1 %v8140_v29  ;;  %v5330_v46 = vor.u32 %v5329_v0, %v5326_v11  ;;  %v5343_v60 = vshll.u32 %v9791_v42, 16  ;;  %v5372_v17 = vshrl.u32 %v5029_v9, 16  ;;  %v5375_v55 = vshll.u32 %v5029_v9, 16 }
 0x28d   : > { %7481 = vmatmul.mubr.bf16.gmra.mrb[52].mxu0 %v8133_v45  ;;  %v5317_v16 = vrot.slane %v5316_v50, 4  ;;  %v5350_v37 = vrot.slane %v5348_v41, 4  ;;  %v5359_v26 = vrot.slane %v5357_v47, 5  ;;  %v5363_v15 = vrot.slane %v5361_v38, 4  ;;  %v8136_v50 = vld [vmem:[#allocation2 + $0xa8] sm:$0xff]   ;;  %v8138_v38 = vld [vmem:[#allocation2 + $0xb4] sm:$0xff]  }
 0x28e   : > { %7484 = vmatprep.mubr.bf16.mxu0 %v8135_v31  ;;  %v5341_v18 = vrot.slane %v5340_v27, 4  ;;  %v5353_v7 = vrot.slane %v5351_v52, 5  ;;  %v5383_v8 = vrot.slane %v5381_v58, 5  ;;  %v5387_v12 = vrot.slane %v5385_v61, 4 }
 0x28f   : > { %7669 = vmatmul.mubr.bf16.gmra.mrb[16].mxu1 %v6902_v5  ;;  %v5396_v49 = vshrl.u32 %v5032_v2, 16  ;;  %v5399_v29 = vshll.u32 %v5032_v2, 16  ;;  %v5405_v25 = vshll.u32 %v9854_v39, 16  ;;  %v5409_v42 = vshrl.u32 %v9854_v39, 16 }
 0x290   : > { %7672 = vmatprep.mubr.bf16.mxu1 %v6903_v21  ;;  %v5331_v57 = vrot.slane %v5330_v46, 4  ;;  %v5345_v43 = vrot.slane %v5343_v60, 5  ;;  %v5374_v63 = vrot.slane %v5372_v17, 4  ;;  %v5377_v19 = vrot.slane %v5375_v55, 5 }
 0x291   : > { %v5312_v51 = vsel %vm8404_vm7, %v5307_v33, %v9964_v10  ;;  %v5322_v24 = vsel %vm8404_vm7, %v5317_v16, %v5321_v35  ;;  %v5364_v11 = vor.u32 %v5363_v15, %v5359_v26  ;;  %v5354_v41 = vor.u32 %v5353_v7, %v5350_v37  ;;  %v8139_v16 = vld [vmem:[#allocation2 + $0xc0] sm:$0xff]   ;;  %v8197_v37 = vld [vmem:[#allocation2 + $0x1c] sm:$0xf] }
 0x292   : > { %v5346_v0 = vsel %vm8404_vm7, %v5341_v18, %v5345_v43  ;;  %v5367_v47 = vshll.u32 %v9813_v40, 16  ;;  %v5388_v39 = vor.u32 %v5387_v12, %v5383_v8  ;;  %v5398_v9 = vrot.slane %v5396_v49, 4 }
 0x293   : > { %v5401_v45 = vrot.slane %v5399_v29, 5  ;;  %v5407_v27 = vrot.slane %v5405_v25, 5  ;;  %v5411_v52 = vrot.slane %v5409_v42, 4  ;;  %v6904_v58 = vcombine.low %v5312_v51, %v5322_v24  ;;  %v8199_v51 = vld [vmem:[#allocation2 + $0x28] sm:$0xf] }
 0x294   : > { %v5336_v10 = vsel %vm8404_vm7, %v5331_v57, %v9966_v28  ;;  %v5378_v61 = vor.u32 %v5377_v19, %v5374_v63  ;;  %v5391_v5 = vshll.u32 %v9832_v48, 16  ;;  %v5365_v31 = vrot.slane %v5364_v11, 4  ;;  %v5741_v63 = vld [vmem:[#allocation2 + $0x18] sm:$0xe] }
 0x295   : > { %7485 = vmatmul.mubr.bf16.gmra.mrb[56].mxu0 %v8136_v50  ;;  %v6905_v21 = vcombine.low %v5336_v10, %v5346_v0  ;;  %v5369_v40 = vrot.slane %v5367_v47, 5  ;;  %v5389_v33 = vrot.slane %v5388_v39, 4  ;;  %v5355_v35 = vrot.slane %v5354_v41, 4  ;;  %v5742_v39 = vld [vmem:[#allocation2 + $0x24] sm:$0xe] }
 0x296   : > { %7488 = vmatprep.mubr.bf16.mxu0 %v8138_v38  ;;  %v5402_v46 = vor.u32 %v5401_v45, %v5398_v9  ;;  %v5412_v60 = vor.u32 %v5411_v52, %v5407_v27  ;;  %v5415_v17 = vshll.u32 %v9856_v4, 16  ;;  %v5379_v55 = vrot.slane %v5378_v61, 4 }
 0x297   : > { %7673 = vmatmul.mubr.bf16.gmra.mrb[20].mxu1 %v6904_v58  ;;  %v5393_v2 = vrot.slane %v5391_v5, 5  ;;  %v5370_v28 = vsel %vm8404_vm7, %v5365_v31, %v5369_v40  ;;  %v5807_v15 = vrot.slane %v8197_v37, 5  ;;  %v5360_v18 = vsel %vm8404_vm7, %v5355_v35, %v5359_v26  ;;  %v8198_v26 = vld [vmem:[#allocation2 + $0x20] sm:$0x1]  ;;  %v10379_v31 = vld [vmem:[#allocation3_spill] sm:$0xff] }
 0x298   : > { %7676 = vmatprep.mubr.bf16.mxu1 %v6905_v21  ;;  %v5403_v7 = vrot.slane %v5402_v46, 4  ;;  %v5413_v12 = vrot.slane %v5412_v60, 4  ;;  %v5417_v49 = vrot.slane %v5415_v17, 5  ;;  %v6906_v29 = vcombine.low %v5360_v18, %v5370_v28  ;;  %v10376_v21 = vld [vmem:[#allocation6_spill] sm:$0xff]  ;;  %v10382_v40 = vld [vmem:[#allocation8_spill] sm:$0xff]  ;;  %v10393_v17 = vld [vmem:[#allocation15_spill] sm:$0xff] }
 0x299   : > { %v5394_v48 = vsel %vm8404_vm7, %v5389_v33, %v5393_v2  ;;  %v5384_v4 = vsel %vm8404_vm7, %v5379_v55, %v5383_v8  ;;  %v5809_v42 = vrot.slane %v5807_v15, 4  ;;  %v5810_v19 = vrot.slane %v8198_v26, 5  ;;  %v10385_v33 = vld [vmem:[#allocation11_spill] sm:$0xff]  ;;  %v10388_v35 = vld [vmem:[#allocation12_spill] sm:$0xff]  ;;  %v10391_v46 = vld [vmem:[#allocation14_spill] sm:$0xff] }
 0x29a   : > { %v6907_v25 = vcombine.low %v5384_v4, %v5394_v48  ;;  %v5408_v57 = vsel %vm8404_vm7, %v5403_v7, %v5407_v27  ;;  %v5418_v43 = vsel %vm8404_vm7, %v5413_v12, %v5417_v49  ;;  %v5814_v24 = vrot.slane %v8199_v51, 5 }
 0x29b   : > { %v6908_v11 = vcombine.low %v5408_v57, %v5418_v43  ;;  %v6917_v0 = vrot.slane %v5741_v63, 9  ;;  %v5811_v8 = vsel %vm9010_vm14, %v5809_v42, %v5810_v19  ;;  %v5817_v38 = vrot.slane %v8200_v34, 5 }
 0x29c   : > { %v5816_v47 = vrot.slane %v5814_v24, 4  ;;  %v6918_v9 = vrot.slane %v5742_v39, 9  ;;  %v10369_v58 = vcombine.low %v9691_v30, %v9695_v1  ;;  %v10370_v10 = vcombine.low %v9702_v54, %v9714_v62  ;;  %v10375_v1 = vld [vmem:[#allocation5_spill] sm:$0xff]  ;;  %v10378_v62 = vld [vmem:[#allocation4_spill] sm:$0xff] }
 0x29d   : > { %7489 = vmatmul.mubr.bf16.gmra.mrb[60].mxu0 %v8139_v16  ;;  %v5808_v50 = vsel %vm9010_vm14, %v6917_v0, %v5807_v15  ;;  %v10371_v61 = vcombine.low %v9707_v20, %v9722_v6  ;;  %v10372_v5 = vcombine.low %v9728_v14, %v9735_v32  ;;  %v10374_v30 = vcombine.low %v9758_v3, %v9774_v13  ;;  %v10381_v6 = vld [vmem:[#allocation7_spill] sm:$0xff]  ;;  %v10384_v32 = vld [vmem:[#allocation9_spill] sm:$0xff] }
 0x29e   : > { %v6949_v41 = vcombine.low %v5808_v50, %v5811_v8  ;;  %v5818_v45 = vsel %vm9010_vm14, %v5816_v47, %v5817_v38  ;;  %v5815_v27 = vsel %vm9010_vm14, %v6918_v9, %v5814_v24  ;;  %v10377_v54 = vcombine.low %v10375_v1, %v10376_v21  ;;  %v10390_v13 = vld [vmem:[#allocation13_spill] sm:$0xff]  ;;  %v10119_v38 = vld [vmem:[%s10298_s5] ss:$0 sm:$0xff] }
 0x29f   : > { %7677 = vmatmul.mubr.bf16.gmra.mrb[24].mxu1 %v6906_v29  ;;  %v6950_v52 = vcombine.low %v5815_v27, %v5818_v45  ;;  %v10380_v20 = vcombine.low %v10378_v62, %v10379_v31  ;;  %v10383_v14 = vcombine.low %v10381_v6, %v10382_v40  ;;  %v10386_v56 = vcombine.low %v10384_v32, %v10385_v33  ;;  %v10129_v27 = vld [vmem:[%s10299_s6] ss:$0 sm:$0xff]  ;;  %v6240_v32 = vld [vmem:[%s10124_s26 + $0x8] sm:$0xff] }
 0x2a0   : > { %7680 = vmatprep.mubr.bf16.mxu1 %v6907_v25  ;;  %v10389_v3 = vcombine.low %v10387_v59, %v10388_v35  ;;  %v10392_v60 = vcombine.low %v10390_v13, %v10391_v46  ;;  %v10394_v55 = vcombine.low %v9880_v44, %v10393_v17 }
 0x2a7   : > { %7681 = vmatmul.mubr.bf16.gmra.mrb[28].mxu1 %v6908_v11 }
 0x2a8   : > { %7700 = vmatprep.mubr.bf16.mxu1 %v6949_v41 }
 0x2af   : > { %7701 = vmatmul.mubr.bf16.vlgmr.msra.gmra.mrb[0].mxu1 %v6950_v52 }
 0x2b0   : > { %7704 = vmatprep.mubr.bf16.mxu1 %v10369_v58 }
 0x2b7   : > { %7705 = vmatmul.mubr.bf16.gmra.mrb[4].mxu1 %v10370_v10 }
 0x2b8   : > { %7708 = vmatprep.mubr.bf16.mxu1 %v10371_v61 }
 0x2bf   : > { %7709 = vmatmul.mubr.bf16.gmra.mrb[8].mxu1 %v10372_v5 }
 0x2c0   : > { %7712 = vmatprep.mubr.bf16.mxu1 %v10373_v22  ;;  %v6241_v22 = vld [vmem:[%s10124_s26 + $0x10] sm:$0xff] }
 0x2c7   : > { %7713 = vmatmul.mubr.bf16.gmra.mrb[12].mxu1 %v10374_v30 }
 0x2c8   : > { %7716 = vmatprep.mubr.bf16.mxu1 %v10377_v54  ;;  %v6239_v54 = vld [vmem:[%s10124_s26] sm:$0xff] }
 0x2cf   : > { %7717 = vmatmul.mubr.bf16.gmra.mrb[16].mxu1 %v10380_v20  ;;  %v6242_v20 = vld [vmem:[%s10124_s26 + $0x18] sm:$0xff] }
 0x2d0   : > { %7720 = vmatprep.mubr.bf16.mxu1 %v10383_v14 }
 0x2d7   : > { %7721 = vmatmul.mubr.bf16.gmra.mrb[20].mxu1 %v10386_v56 }
 0x2d8   : > { %7724 = vmatprep.mubr.bf16.mxu1 %v10389_v3 }
 0x2df   : > { %7725 = vmatmul.mubr.bf16.gmra.mrb[24].mxu1 %v10392_v60 }
 0x2e0   : > { %7728 = vmatprep.mubr.bf16.mxu1 %v10394_v55 }
 0x2e7   : > { %7729 = vmatmul.mubr.bf16.gmra.mrb[28].mxu1 %v6964_v53 }
 0x338   : > { %v7462_v2 = vpop.f32.mrb[32].mxu0 }
 0x339   : > { %v3189_v28 = vpop.f32.mrb[33].mxu0 }
 0x33a   : > { %v7463_v48 = vpop.f32.mrb[34].mxu0 }
 0x33b   : > { %v3192_v16 = vpop.f32.mrb[35].mxu0 }
 0x340   : > { %v7466_v37 = vpop.f32.mrb[36].mxu0 }
 0x341   : > { %v3205_v15 = vpop.f32.mrb[37].mxu0 }
 0x342   : > { %v10063_v18 = vpop.f32.mrb[38].mxu0 }
 0x343   : > { %v10065_v7 = vpop.f32.mrb[39].mxu0 }
 0x348   : > { %v10067_v12 = vpop.f32.mrb[40].mxu0 }
 0x349   : > { %v10069_v49 = vpop.f32.mrb[41].mxu0 }
 0x34a   : > { %v10071_v44 = vpop.f32.mrb[42].mxu0 }
 0x34b   : > { %v10073_v29 = vpop.f32.mrb[43].mxu0 }
 0x350   : > { %v10075_v36 = vpop.f32.mrb[44].mxu0 }
 0x351   : > { %v10077_v23 = vpop.f32.mrb[45].mxu0 }
 0x352   : > { %v10079_v53 = vpop.f32.mrb[46].mxu0 }
 0x353   : > { %v10081_v4 = vpop.f32.mrb[47].mxu0 }
 0x358   : > { %v10083_v25 = vpop.f32.mrb[48].mxu0 }
 0x359   : > { %v10085_v42 = vpop.f32.mrb[49].mxu0 }
 0x35a   : > { %v10087_v57 = vpop.f32.mrb[50].mxu0 }
 0x35b   : > { %v10089_v43 = vpop.f32.mrb[51].mxu0 }
 0x360   : > { %v10091_v63 = vpop.f32.mrb[52].mxu0 }
 0x361   : > { %v10093_v26 = vpop.f32.mrb[53].mxu0 }
 0x362   : > { %v10095_v19 = vpop.f32.mrb[54].mxu0 }
 0x363   : > { %v10097_v51 = vpop.f32.mrb[55].mxu0 }
 0x368   : > { %v10099_v24 = vpop.f32.mrb[56].mxu0 }
 0x369   : > { %v10101_v11 = vpop.f32.mrb[57].mxu0 }
 0x36a   : > { %v10103_v0 = vpop.f32.mrb[58].mxu0 }
 0x36b   : > { %v10105_v8 = vpop.f32.mrb[59].mxu0 }
 0x370   : > { %v10107_v50 = vpop.f32.mrb[60].mxu0 }
 0x371   : > { %v10109_v41 = vpop.f32.mrb[61].mxu0 }
 0x372   : > { %v10111_v47 = vpop.f32.mrb[62].mxu0 }
 0x373   : > { %v10113_v39 = vpop.f32.mrb[63].mxu0 }
 0x382   : > { %v7702_v34 = vpop.f32.mrb[0].mxu1 }
 0x383   : > { %v7732_v9 = vadd.f32 %v7702_v34, %v7462_v2  ;;  %v6080_v45 = vpop.f32.mrb[1].mxu1 }
 0x384   : > { %v7733_v52 = vadd.f32 %v6080_v45, %v3189_v28  ;;  %v7703_v58 = vpop.f32.mrb[2].mxu1 }
 0x385   : > { %v6280_v10 = vmul.f32 %v7732_v9, %v10119_v38  ;;  %v7734_v61 = vadd.f32 %v7703_v58, %v7463_v48  ;;  %v6083_v5 = vpop.f32.mrb[3].mxu1  ;;  %v6243_v58 = vld [vmem:[%s10124_s26 + $0x20] sm:$0xff] }
 0x386   : > { %v6278_v30 = vmul.f32 %v7733_v52, %v10119_v38  ;;  %v7735_v1 = vadd.f32 %v6083_v5, %v3192_v16  ;;  %v6246_v5 = vld [vmem:[%s10124_s26 + $0x38] sm:$0xff] }
 0x387   : > { %v6319_v21 = vadd.f32 %v10129_v27, %v6280_v10  ;;  %v6281_v62 = vmul.f32 %v7734_v61, %v10119_v38 }
 0x388   : > { %v6317_v31 = vadd.f32 %v10129_v27, %v6278_v30  ;;  %v6279_v6 = vmul.f32 %v7735_v1, %v10119_v38  ;;  %v6244_v1 = vld [vmem:[%s10124_s26 + $0x28] sm:$0xff] }
 0x389   : > { %v6351_v40 = vadd.f32 %v6319_v21, %v6241_v22  ;;  %v6320_v14 = vadd.f32 %v10129_v27, %v6281_v62 }
 0x38a   : > { %v6349_v33 = vadd.f32 %v6317_v31, %v6239_v54  ;;  %v6318_v56 = vadd.f32 %v10129_v27, %v6279_v6  ;;  %v7706_v59 = vpop.f32.mrb[4].mxu1 }
 0x38b   : > { %v6383_v35 = vmax.f32 %v6351_v40, 0.0  ;;  %v6352_v3 = vadd.f32 %v6320_v14, %v6242_v20  ;;  %v7736_v13 = vadd.f32 %v7706_v59, %v7466_v37  ;;  %v6096_v46 = vpop.f32.mrb[5].mxu1  ;;  %v6245_v37 = vld [vmem:[%s10124_s26 + $0x30] sm:$0xff] }
 0x38c   : > { %v6381_v60 = vmax.f32 %v6349_v33, 0.0  ;;  %v6350_v17 = vadd.f32 %v6318_v56, %v6240_v32  ;;  %v7737_v55 = vadd.f32 %v6096_v46, %v3205_v15  ;;  %v7707_v2 = vpop.f32.mrb[6].mxu1 }
 0x38d   : > { %6415 = vst [vmem:[%s10145_s10 + $0x10] sm:$0xff] %v6383_v35  ;;  %v6384_v28 = vmax.f32 %v6352_v3, 0.0  ;;  %v6284_v48 = vmul.f32 %v7736_v13, %v10119_v38  ;;  %v7738_v16 = vadd.f32 %v7707_v2, %v10063_v18  ;;  %v6099_v34 = vpop.f32.mrb[7].mxu1  ;;  %v6249_v13 = vld [vmem:[%s10124_s26 + $0x50] sm:$0xff] }
 0x38e   : > { %6413 = vst [vmem:[%s10145_s10] sm:$0xff] %v6381_v60  ;;  %v6382_v9 = vmax.f32 %v6350_v17, 0.0  ;;  %v6282_v45 = vmul.f32 %v7737_v55, %v10119_v38  ;;  %v7739_v52 = vadd.f32 %v6099_v34, %v10065_v7  ;;  %v6247_v17 = vld [vmem:[%s10124_s26 + $0x40] sm:$0xff]  ;;  %v6248_v34 = vld [vmem:[%s10124_s26 + $0x48] sm:$0xff] }
 0x38f   : > { %6416 = vst [vmem:[%s10145_s10 + $0x18] sm:$0xff] %v6384_v28  ;;  %v6323_v15 = vadd.f32 %v10129_v27, %v6284_v48  ;;  %v6285_v10 = vmul.f32 %v7738_v16, %v10119_v38  ;;  %v6250_v28 = vld [vmem:[%s10124_s26 + $0x58] sm:$0xff] }
 0x390   : > { %6414 = vst [vmem:[%s10145_s10 + $0x8] sm:$0xff] %v6382_v9  ;;  %v6321_v61 = vadd.f32 %v10129_v27, %v6282_v45  ;;  %v6283_v18 = vmul.f32 %v7739_v52, %v10119_v38 }
 0x391   : > { %v6355_v22 = vadd.f32 %v6323_v15, %v6245_v37  ;;  %v6324_v30 = vadd.f32 %v10129_v27, %v6285_v10 }
 0x392   : > { %v6353_v21 = vadd.f32 %v6321_v61, %v6243_v58  ;;  %v6322_v7 = vadd.f32 %v10129_v27, %v6283_v18  ;;  %v7710_v54 = vpop.f32.mrb[8].mxu1 }
 0x393   : > { %v6387_v62 = vmax.f32 %v6355_v22, 0.0  ;;  %v6356_v31 = vadd.f32 %v6324_v30, %v6246_v5  ;;  %v7740_v20 = vadd.f32 %v7710_v54, %v10067_v12  ;;  %v6112_v6 = vpop.f32.mrb[9].mxu1 }
 0x394   : > { %v6385_v40 = vmax.f32 %v6353_v21, 0.0  ;;  %v6354_v14 = vadd.f32 %v6322_v7, %v6244_v1  ;;  %v7741_v32 = vadd.f32 %v6112_v6, %v10069_v49  ;;  %v7711_v33 = vpop.f32.mrb[10].mxu1  ;;  %v6253_v7 = vld [vmem:[%s10124_s26 + $0x70] sm:$0xff] }
 0x395   : > { %6419 = vst [vmem:[%s10145_s10 + $0x30] sm:$0xff] %v6387_v62  ;;  %v6388_v56 = vmax.f32 %v6356_v31, 0.0  ;;  %v6288_v59 = vmul.f32 %v7740_v20, %v10119_v38  ;;  %v7742_v35 = vadd.f32 %v7711_v33, %v10071_v44  ;;  %v6115_v3 = vpop.f32.mrb[11].mxu1  ;;  %v6251_v31 = vld [vmem:[%s10124_s26 + $0x60] sm:$0xff]  ;;  %v6252_v33 = vld [vmem:[%s10124_s26 + $0x68] sm:$0xff] }
 0x396   : > { %6417 = vst [vmem:[%s10145_s10 + $0x20] sm:$0xff] %v6385_v40  ;;  %v6386_v12 = vmax.f32 %v6354_v14, 0.0  ;;  %v6286_v46 = vmul.f32 %v7741_v32, %v10119_v38  ;;  %v7743_v60 = vadd.f32 %v6115_v3, %v10073_v29  ;;  %v6254_v40 = vld [vmem:[%s10124_s26 + $0x78] sm:$0xff] }
 0x397   : > { %6420 = vst [vmem:[%s10145_s10 + $0x38] sm:$0xff] %v6388_v56  ;;  %v6327_v49 = vadd.f32 %v10129_v27, %v6288_v59  ;;  %v6289_v55 = vmul.f32 %v7742_v35, %v10119_v38 }
 0x398   : > { %6418 = vst [vmem:[%s10145_s10 + $0x28] sm:$0xff] %v6386_v12  ;;  %v6325_v2 = vadd.f32 %v10129_v27, %v6286_v46  ;;  %v6287_v44 = vmul.f32 %v7743_v60, %v10119_v38 }
 0x399   : > { %v6359_v48 = vadd.f32 %v6327_v49, %v6249_v13  ;;  %v6328_v16 = vadd.f32 %v10129_v27, %v6289_v55 }
 0x39a   : > { %v6357_v9 = vadd.f32 %v6325_v2, %v6247_v17  ;;  %v6326_v29 = vadd.f32 %v10129_v27, %v6287_v44  ;;  %v7714_v37 = vpop.f32.mrb[12].mxu1 }
 0x39b   : > { %v6391_v45 = vmax.f32 %v6359_v48, 0.0  ;;  %v6360_v52 = vadd.f32 %v6328_v16, %v6250_v28  ;;  %v7744_v15 = vadd.f32 %v7714_v37, %v10075_v36  ;;  %v6128_v58 = vpop.f32.mrb[13].mxu1  ;;  %v6257_v48 = vld [vmem:[%s10124_s26 + $0x90] sm:$0xff] }
 0x39c   : > { %v6389_v10 = vmax.f32 %v6357_v9, 0.0  ;;  %v6358_v61 = vadd.f32 %v6326_v29, %v6248_v34  ;;  %v7745_v5 = vadd.f32 %v6128_v58, %v10077_v23  ;;  %v7715_v18 = vpop.f32.mrb[14].mxu1  ;;  %v6255_v9 = vld [vmem:[%s10124_s26 + $0x80] sm:$0xff]  ;;  %v6256_v58 = vld [vmem:[%s10124_s26 + $0x88] sm:$0xff] }
 0x39d   : > { %6423 = vst [vmem:[%s10145_s10 + $0x50] sm:$0xff] %v6391_v45  ;;  %v6392_v22 = vmax.f32 %v6360_v52, 0.0  ;;  %v6292_v30 = vmul.f32 %v7744_v15, %v10119_v38  ;;  %v7746_v1 = vadd.f32 %v7715_v18, %v10079_v53  ;;  %v6131_v21 = vpop.f32.mrb[15].mxu1  ;;  %v6258_v45 = vld [vmem:[%s10124_s26 + $0x98] sm:$0xff] }
 0x39e   : > { %6421 = vst [vmem:[%s10145_s10 + $0x40] sm:$0xff] %v6389_v10  ;;  %v6390_v36 = vmax.f32 %v6358_v61, 0.0  ;;  %v6290_v54 = vmul.f32 %v7745_v5, %v10119_v38  ;;  %v7747_v62 = vadd.f32 %v6131_v21, %v10081_v4 }
 0x39f   : > { %6424 = vst [vmem:[%s10145_s10 + $0x58] sm:$0xff] %v6392_v22  ;;  %v6331_v23 = vadd.f32 %v10129_v27, %v6292_v30  ;;  %v6293_v20 = vmul.f32 %v7746_v1, %v10119_v38 }
 0x3a0   : > { %6422 = vst [vmem:[%s10145_s10 + $0x48] sm:$0xff] %v6390_v36  ;;  %v6329_v6 = vadd.f32 %v10129_v27, %v6290_v54  ;;  %v6291_v53 = vmul.f32 %v7747_v62, %v10119_v38 }
 0x3a1   : > { %v6363_v14 = vadd.f32 %v6331_v23, %v6253_v7  ;;  %v6332_v32 = vadd.f32 %v10129_v27, %v6293_v20  ;;  %v6261_v20 = vld [vmem:[%s10124_s26 + $0xb0] sm:$0xff] }
 0x3a2   : > { %v6361_v56 = vadd.f32 %v6329_v6, %v6251_v31  ;;  %v6330_v4 = vadd.f32 %v10129_v27, %v6291_v53  ;;  %v7718_v59 = vpop.f32.mrb[16].mxu1  ;;  %v6259_v53 = vld [vmem:[%s10124_s26 + $0xa0] sm:$0xff] }
 0x3a3   : > { %v6395_v35 = vmax.f32 %v6363_v14, 0.0  ;;  %v6364_v3 = vadd.f32 %v6332_v32, %v6254_v40  ;;  %v7748_v12 = vadd.f32 %v7718_v59, %v10083_v25  ;;  %v6144_v13 = vpop.f32.mrb[17].mxu1  ;;  %v6260_v59 = vld [vmem:[%s10124_s26 + $0xa8] sm:$0xff] }
 0x3a4   : > { %v6393_v46 = vmax.f32 %v6361_v56, 0.0  ;;  %v6362_v60 = vadd.f32 %v6330_v4, %v6252_v33  ;;  %v7749_v49 = vadd.f32 %v6144_v13, %v10085_v42  ;;  %v7719_v17 = vpop.f32.mrb[18].mxu1  ;;  %v6262_v33 = vld [vmem:[%s10124_s26 + $0xb8] sm:$0xff] }
 0x3a5   : > { %6427 = vst [vmem:[%s10145_s10 + $0x70] sm:$0xff] %v6395_v35  ;;  %v6396_v55 = vmax.f32 %v6364_v3, 0.0  ;;  %v6296_v2 = vmul.f32 %v7748_v12, %v10119_v38  ;;  %v7750_v28 = vadd.f32 %v7719_v17, %v10087_v57  ;;  %v6147_v44 = vpop.f32.mrb[19].mxu1 }
 0x3a6   : > { %6425 = vst [vmem:[%s10145_s10 + $0x60] sm:$0xff] %v6393_v46  ;;  %v6394_v25 = vmax.f32 %v6362_v60, 0.0  ;;  %v6294_v16 = vmul.f32 %v7749_v49, %v10119_v38  ;;  %v7751_v34 = vadd.f32 %v6147_v44, %v10089_v43 }
 0x3a7   : > { %6428 = vst [vmem:[%s10145_s10 + $0x78] sm:$0xff] %v6396_v55  ;;  %v6335_v42 = vadd.f32 %v10129_v27, %v6296_v2  ;;  %v6297_v29 = vmul.f32 %v7750_v28, %v10119_v38 }
 0x3a8   : > { %6426 = vst [vmem:[%s10145_s10 + $0x68] sm:$0xff] %v6394_v25  ;;  %v6333_v37 = vadd.f32 %v10129_v27, %v6294_v16  ;;  %v6295_v57 = vmul.f32 %v7751_v34, %v10119_v38  ;;  %v6265_v16 = vld [vmem:[%s10124_s26 + $0xd0] sm:$0xff] }
 0x3a9   : > { %v6367_v52 = vadd.f32 %v6335_v42, %v6257_v48  ;;  %v6336_v15 = vadd.f32 %v10129_v27, %v6297_v29 }
 0x3aa   : > { %v6365_v10 = vadd.f32 %v6333_v37, %v6255_v9  ;;  %v6334_v43 = vadd.f32 %v10129_v27, %v6295_v57  ;;  %v7722_v61 = vpop.f32.mrb[20].mxu1  ;;  %v6263_v9 = vld [vmem:[%s10124_s26 + $0xc0] sm:$0xff] }
 0x3ab   : > { %v6399_v5 = vmax.f32 %v6367_v52, 0.0  ;;  %v6368_v18 = vadd.f32 %v6336_v15, %v6258_v45  ;;  %v7752_v22 = vadd.f32 %v7722_v61, %v10091_v63  ;;  %v6160_v30 = vpop.f32.mrb[21].mxu1  ;;  %v6266_v45 = vld [vmem:[%s10124_s26 + $0xd8] sm:$0xff]  ;;  %v6264_v15 = vld [vmem:[%s10124_s26 + $0xc8] sm:$0xff] }
 0x3ac   : > { %v6397_v1 = vmax.f32 %v6365_v10, 0.0  ;;  %v6366_v21 = vadd.f32 %v6334_v43, %v6256_v58  ;;  %v7753_v36 = vadd.f32 %v6160_v30, %v10093_v26  ;;  %v7723_v7 = vpop.f32.mrb[22].mxu1 }
 0x3ad   : > { %6431 = vst [vmem:[%s10145_s10 + $0x90] sm:$0xff] %v6399_v5  ;;  %v6400_v54 = vmax.f32 %v6368_v18, 0.0  ;;  %v6300_v62 = vmul.f32 %v7752_v22, %v10119_v38  ;;  %v7754_v23 = vadd.f32 %v7723_v7, %v10095_v19  ;;  %v6163_v31 = vpop.f32.mrb[23].mxu1 }
 0x3ae   : > { %6429 = vst [vmem:[%s10145_s10 + $0x80] sm:$0xff] %v6397_v1  ;;  %v6398_v63 = vmax.f32 %v6366_v21, 0.0  ;;  %v6298_v6 = vmul.f32 %v7753_v36, %v10119_v38  ;;  %v7755_v40 = vadd.f32 %v6163_v31, %v10097_v51 }
 0x3af   : > { %6432 = vst [vmem:[%s10145_s10 + $0x98] sm:$0xff] %v6400_v54  ;;  %v6339_v26 = vadd.f32 %v10129_v27, %v6300_v62  ;;  %v6301_v14 = vmul.f32 %v7754_v23, %v10119_v38  ;;  %v6269_v23 = vld [vmem:[%s10124_s26 + $0xf0] sm:$0xff] }
 0x3b0   : > { %6430 = vst [vmem:[%s10145_s10 + $0x88] sm:$0xff] %v6398_v63  ;;  %v6337_v32 = vadd.f32 %v10129_v27, %v6298_v6  ;;  %v6299_v19 = vmul.f32 %v7755_v40, %v10119_v38  ;;  %v6270_v40 = vld [vmem:[%s10124_s26 + $0xf8] sm:$0xff] }
 0x3b1   : > { %v6371_v56 = vadd.f32 %v6339_v26, %v6261_v20  ;;  %v6340_v4 = vadd.f32 %v10129_v27, %v6301_v14  ;;  %v6267_v20 = vld [vmem:[%s10124_s26 + $0xe0] sm:$0xff] }
 0x3b2   : > { %v6369_v35 = vadd.f32 %v6337_v32, %v6259_v53  ;;  %v6338_v51 = vadd.f32 %v10129_v27, %v6299_v19  ;;  %v7726_v3 = vpop.f32.mrb[24].mxu1 }
 0x3b3   : > { %v6403_v12 = vmax.f32 %v6371_v56, 0.0  ;;  %v6372_v13 = vadd.f32 %v6340_v4, %v6262_v33  ;;  %v7756_v46 = vadd.f32 %v7726_v3, %v10099_v24  ;;  %v6176_v60 = vpop.f32.mrb[25].mxu1 }
 0x3b4   : > { %v6401_v49 = vmax.f32 %v6369_v35, 0.0  ;;  %v6370_v17 = vadd.f32 %v6338_v51, %v6260_v59  ;;  %v7757_v55 = vadd.f32 %v6176_v60, %v10101_v11  ;;  %v7727_v2 = vpop.f32.mrb[26].mxu1 }
 0x3b5   : > { %6435 = vst [vmem:[%s10145_s10 + $0xb0] sm:$0xff] %v6403_v12  ;;  %v6404_v28 = vmax.f32 %v6372_v13, 0.0  ;;  %v6304_v44 = vmul.f32 %v7756_v46, %v10119_v38  ;;  %v7758_v25 = vadd.f32 %v7727_v2, %v10103_v0  ;;  %v6179_v48 = vpop.f32.mrb[27].mxu1 }
 0x3b6   : > { %6433 = vst [vmem:[%s10145_s10 + $0xa0] sm:$0xff] %v6401_v49  ;;  %v6402_v24 = vmax.f32 %v6370_v17, 0.0  ;;  %v6302_v34 = vmul.f32 %v7757_v55, %v10119_v38  ;;  %v7759_v42 = vadd.f32 %v6179_v48, %v10105_v8 }
 0x3b7   : > { %6436 = vst [vmem:[%s10145_s10 + $0xb8] sm:$0xff] %v6404_v28  ;;  %v6343_v11 = vadd.f32 %v10129_v27, %v6304_v44  ;;  %v6305_v29 = vmul.f32 %v7758_v25, %v10119_v38 }
 0x3b8   : > { %6434 = vst [vmem:[%s10145_s10 + $0xa8] sm:$0xff] %v6402_v24  ;;  %v6341_v37 = vadd.f32 %v10129_v27, %v6302_v34  ;;  %v6303_v0 = vmul.f32 %v7759_v42, %v10119_v38 }
 0x3b9   : > { %v6375_v57 = vadd.f32 %v6343_v11, %v6265_v16  ;;  %v6344_v52 = vadd.f32 %v10129_v27, %v6305_v29 }
 0x3ba   : > { %v6373_v58 = vadd.f32 %v6341_v37, %v6263_v9  ;;  %v6342_v8 = vadd.f32 %v10129_v27, %v6303_v0  ;;  %v7730_v10 = vpop.f32.mrb[28].mxu1 }
 0x3bb   : > { %v6407_v43 = vmax.f32 %v6375_v57, 0.0  ;;  %v6376_v61 = vadd.f32 %v6344_v52, %v6266_v45  ;;  %v7760_v5 = vadd.f32 %v7730_v10, %v10107_v50  ;;  %v6192_v18 = vpop.f32.mrb[29].mxu1 }
 0x3bc   : > { %v6405_v22 = vmax.f32 %v6373_v58, 0.0  ;;  %v6374_v30 = vadd.f32 %v6342_v8, %v6264_v15  ;;  %v7761_v1 = vadd.f32 %v6192_v18, %v10109_v41  ;;  %v7731_v21 = vpop.f32.mrb[30].mxu1 }
 0x3bd   : > { %6439 = vst [vmem:[%s10145_s10 + $0xd0] sm:$0xff] %v6407_v43  ;;  %v6408_v36 = vmax.f32 %v6376_v61, 0.0  ;;  %v6308_v7 = vmul.f32 %v7760_v5, %v10119_v38  ;;  %v7762_v54 = vadd.f32 %v7731_v21, %v10111_v47  ;;  %v6195_v62 = vpop.f32.mrb[31].mxu1 }
 0x3be   : > { %6437 = vst [vmem:[%s10145_s10 + $0xc0] sm:$0xff] %v6405_v22  ;;  %v6406_v50 = vmax.f32 %v6374_v30, 0.0  ;;  %v6306_v31 = vmul.f32 %v7761_v1, %v10119_v38  ;;  %v7763_v63 = vadd.f32 %v6195_v62, %v10113_v39  ;;  %v6268_v39 = vld [vmem:[%s10124_s26 + $0xe8] sm:$0xff] }
 0x3bf   : > { %6440 = vst [vmem:[%s10145_s10 + $0xd8] sm:$0xff] %v6408_v36  ;;  %v6347_v41 = vadd.f32 %v10129_v27, %v6308_v7  ;;  %v6309_v6 = vmul.f32 %v7762_v54, %v10119_v38 }
 0x3c0   : > { %6438 = vst [vmem:[%s10145_s10 + $0xc8] sm:$0xff] %v6406_v50  ;;  %v6345_v47 = vadd.f32 %v10129_v27, %v6306_v31  ;;  %v6307_v26 = vmul.f32 %v7763_v63, %v10119_v38 }
 0x3c1   : > { %v6379_v53 = vadd.f32 %v6347_v41, %v6269_v23  ;;  %v6348_v14 = vadd.f32 %v10129_v27, %v6309_v6 }
 0x3c2   : > { %v6377_v32 = vadd.f32 %v6345_v47, %v6267_v20  ;;  %v6346_v33 = vadd.f32 %v10129_v27, %v6307_v26 }
 0x3c3   : > { %v6411_v19 = vmax.f32 %v6379_v53, 0.0  ;;  %v6380_v56 = vadd.f32 %v6348_v14, %v6270_v40 }
 0x3c4   : > { %v6409_v4 = vmax.f32 %v6377_v32, 0.0  ;;  %v6378_v59 = vadd.f32 %v6346_v33, %v6268_v39 }
 0x3c5   : > { %6443 = vst [vmem:[%s10145_s10 + $0xf0] sm:$0xff] %v6411_v19  ;;  %v6412_v35 = vmax.f32 %v6380_v56, 0.0 }
 0x3c6   : > { %6441 = vst [vmem:[%s10145_s10 + $0xe0] sm:$0xff] %v6409_v4  ;;  %v6410_v51 = vmax.f32 %v6378_v59, 0.0 }
 0x3c7   : > { %6444 = vst [vmem:[%s10145_s10 + $0xf8] sm:$0xff] %v6412_v35 }
 0x3c8   : > { %6442 = vst [vmem:[%s10145_s10 + $0xe8] sm:$0xff] %v6410_v51 }
 0x3c9 PF: > { %s18_s27 = sadd.s32 1, %s8207_s27  }
 0x3ca   : > { %p15_p4 = scmp.ge.s32.totalorder %s18_s27, 4  }
 0x3cc   :  { %17 = sbr.rel (!%p15_p4) target bundleno = 1 (0x1), region = 96 }

</bundles_post_ra>
